<compile_context>
chip_gen: v7x
topology: tpu7x:2x2x1
jax: 0.10.0
libtpu: 0.0.40
codegen_flags: <defaults>
</compile_context>

<pallas_src>
import math
from functools import partial

import numpy as np
import jax
import jax.numpy as jnp
from jax import lax
from jax.experimental import pallas as pl
from jax.experimental.pallas import tpu as pltpu


# ----------------------------- generation config ------------------------------
def _tpu_config():
    """Tile / VMEM settings gated by VMEM capacity (v5e/v6e: 128 MiB, v7x: 64 MiB)."""
    vmem_bytes = 64 * 1024 * 1024          # conservative default (v7x-safe)
    try:
        vmem_bytes = int(pltpu.get_tpu_info().vmem_capacity_bytes)
    except Exception:
        pass
    if vmem_bytes >= 100 * 1024 * 1024:    # v5e / v6e: 128 MiB VMEM
        return dict(tm=512, tn=256, tk=1024, tq=512, tkv=256,
                    vmem_limit=96 * 1024 * 1024)
    # v7x: 64 MiB VMEM -> keep the double-buffered live set well under the cap.
    return dict(tm=256, tn=256, tk=512, tq=256, tkv=256,
                vmem_limit=40 * 1024 * 1024)


# ------------------------------ tiling helper ---------------------------------
def _tile(dim, target):
    """Largest tile <= target that divides dim (128-granular), else full dim."""
    # TODO(synk): non-128-multiple dims (e.g. N=197 ViT tokens) fall back to one
    # full-dim tile; pad such inputs to a multiple of 128 before calling.
    if dim <= target:
        return dim
    if dim % target == 0:
        return target
    for t in range(target, 0, -128):
        if t > 0 and dim % t == 0:
            return t
    return dim


# ------------------------------- exact GELU ------------------------------------
def _erf(x):
    # Abramowitz & Stegun 7.1.26 rational approximation (|err| < 1.5e-7),
    # exp/mul/add only (guaranteed to lower on the TPU VPU/EUP).
    a1, a2, a3, a4, a5 = 0.254829592, -0.284496736, 1.421413741, -1.453152027, 1.061405429
    p = 0.3275911
    z = jnp.abs(x)
    t = pl.reciprocal(1.0 + p * z, approx=True)   # EUP slot (idle in this epilogue)
    poly = ((((a5 * t + a4) * t + a3) * t + a2) * t + a1) * t
    y = 1.0 - poly * jnp.exp(-z * z)
    return jnp.where(x >= 0, y, -y)


def _gelu(x):
    # matches torch.nn.GELU() (exact, erf-based)
    return 0.5 * x * (1.0 + _erf(x * 0.7071067811865476))


# ------------------- tiled Linear (fused LN / GELU / residual) -----------------
def _make_linear_kernel(*, ln_eps, activation, has_residual, single_k):
    fuse_ln = ln_eps is not None

    def kernel(*refs):
        it = iter(refs)
        x_ref = next(it)
        w_ref = next(it)
        b_ref = next(it)
        g_ref = next(it) if fuse_ln else None
        bt_ref = next(it) if fuse_ln else None
        res_ref = next(it) if has_residual else None
        o_ref = next(it)
        acc_ref = None if single_k else next(it)

        x = x_ref[...]
        if fuse_ln:
            # LayerNorm fused into the matmul prologue (requires TK == IN).
            xf = x.astype(jnp.float32)
            mean = jnp.mean(xf, axis=-1, keepdims=True)
            xc = xf - mean
            var = jnp.mean(xc * xc, axis=-1, keepdims=True)
            xn = xc * lax.rsqrt(var + ln_eps)
            xn = xn * g_ref[...].astype(jnp.float32) + bt_ref[...].astype(jnp.float32)
            x = xn.astype(x_ref.dtype)            # keep the MXU on the input dtype

        def epilogue(acc):
            y = acc + b_ref[...].astype(jnp.float32)
            if activation == "gelu":
                y = _gelu(y)
            if has_residual:
                y = y + res_ref[...].astype(jnp.float32)
            o_ref[...] = y.astype(o_ref.dtype)

        if single_k:
            epilogue(jnp.dot(x, w_ref[...], preferred_element_type=jnp.float32))
        else:
            kk = pl.program_id(2)

            @pl.when(kk == 0)
            def _():
                acc_ref[...] = jnp.zeros_like(acc_ref)

            acc_ref[...] += jnp.dot(x, w_ref[...], preferred_element_type=jnp.float32)

            @pl.when(kk == pl.num_programs(2) - 1)
            def _():
                epilogue(acc_ref[...])

    return kernel


def linear(x, w, b, *, activation=None, residual=None, ln=None, ln_eps=1e-5, cfg=None):
    """y = act(LN?(x) @ w + b) [+ residual], tiled over (rows, out-cols, K).
    When ln=(gamma, beta) is given, LayerNorm is fused into the matmul prologue
    (single K step, TK = IN)."""
    cfg = cfg or _tpu_config()
    R, IN = x.shape
    OUT = w.shape[1]
    TM = _tile(R, cfg["tm"])
    TN = _tile(OUT, cfg["tn"])
    TK = IN if ln is not None else _tile(IN, cfg["tk"])
    single_k = (TK == IN)
    grid = (R // TM, OUT // TN, IN // TK)
    b2 = b.reshape(1, OUT)

    in_specs = [
        pl.BlockSpec((TM, TK), lambda i, j, kk: (i, kk)),
        pl.BlockSpec((TK, TN), lambda i, j, kk: (kk, j)),
        pl.BlockSpec((1, TN), lambda i, j, kk: (0, j)),
    ]
    args = [x, w, b2]
    if ln is not None:
        gamma, beta = ln
        in_specs += [pl.BlockSpec((1, IN), lambda i, j, kk: (0, 0)),
                     pl.BlockSpec((1, IN), lambda i, j, kk: (0, 0))]
        args += [gamma.reshape(1, IN), beta.reshape(1, IN)]
    if residual is not None:
        in_specs.append(pl.BlockSpec((TM, TN), lambda i, j, kk: (i, j)))
        args.append(residual)

    scratch = [] if single_k else [pltpu.VMEM((TM, TN), jnp.float32)]

    return pl.pallas_call(
        _make_linear_kernel(ln_eps=ln_eps if ln is not None else None,
                            activation=activation,
                            has_residual=residual is not None,
                            single_k=single_k),
        out_shape=jax.ShapeDtypeStruct((R, OUT), x.dtype),
        grid_spec=pltpu.PrefetchScalarGridSpec(
            num_scalar_prefetch=0,
            grid=grid,
            in_specs=in_specs,
            out_specs=pl.BlockSpec((TM, TN), lambda i, j, kk: (i, j)),
            scratch_shapes=scratch,
        ),
        compiler_params=pltpu.CompilerParams(
            dimension_semantics=("parallel", "parallel", "arbitrary"),
            vmem_limit_bytes=cfg["vmem_limit"],
        ),
    )(*args)


# -------------------- lane-dense, KV-tiled flash attention ---------------------
def _attn_kernel(q_ref, k_ref, v_ref, o_ref, m_sc, l_sc, acc_sc, *, heads):
    # Blocks carry ALL heads: q_ref (1, TQ, E), k_ref/v_ref (1, TKV, E), E = H*D.
    # Softmax 1/sqrt(E) scale is pre-folded into the Q projection weights.
    # m/l scratch are lane-broadcast over each head's D lanes so every scratch
    # update is a single full-width (TQ, E) store (no per-head masked RMWs).
    ki = pl.program_id(2)

    @pl.when(ki == 0)
    def _():
        m_sc[...] = jnp.full_like(m_sc, -jnp.inf)
        l_sc[...] = jnp.zeros_like(l_sc)
        acc_sc[...] = jnp.zeros_like(acc_sc)

    q = q_ref[0]          # keep input dtype: bf16 inputs stay on the MXU fast path
    k = k_ref[0]
    v = v_ref[0]
    TQ, E = q.shape
    D = E // heads

    m_prev = m_sc[...]    # (TQ, E) f32, one full-width read per KV step
    l_prev = l_sc[...]

    m_cols, l_cols, a_cols, pv_cols = [], [], [], []
    # NOTE: static unroll over heads; if bundle dumps show spill-driven vld/vst
    # saturation at large TQ/TKV, drop cfg["tkv"] to 128.
    for h in range(heads):
        sl = slice(h * D, (h + 1) * D)
        s = lax.dot_general(q[:, sl], k[:, sl], (((1,), (1,)), ((), ())),
                            preferred_element_type=jnp.float32)       # (TQ, TKV) f32
        # TODO(synk): nn.Dropout(p) on attention weights is identity in eval; omitted.
        mp = m_prev[:, h * D:h * D + 1]                                # (TQ, 1)
        lp = l_prev[:, h * D:h * D + 1]
        mn = jnp.maximum(mp, jnp.max(s, axis=-1, keepdims=True))
        alpha = jnp.exp(mp - mn)                                       # (TQ, 1)
        p = jnp.exp(s - mn)                                            # (TQ, TKV)
        l_new = alpha * lp + jnp.sum(p, axis=-1, keepdims=True)
        pv = jnp.dot(p.astype(v.dtype), v[:, sl],
                     preferred_element_type=jnp.float32)               # (TQ, D) f32
        m_cols.append(jnp.broadcast_to(mn, (TQ, D)))
        l_cols.append(jnp.broadcast_to(l_new, (TQ, D)))
        a_cols.append(jnp.broadcast_to(alpha, (TQ, D)))
        pv_cols.append(pv)

    # Single full-width commit per KV step.
    m_sc[...] = jnp.concatenate(m_cols, axis=-1)
    l_sc[...] = jnp.concatenate(l_cols, axis=-1)
    acc_sc[...] = (jnp.concatenate(a_cols, axis=-1) * acc_sc[...]
                   + jnp.concatenate(pv_cols, axis=-1))

    @pl.when(ki == pl.num_programs(2) - 1)
    def _():
        inv = pl.reciprocal(l_sc[...], approx=True)                    # EUP slot
        o_ref[0] = (acc_sc[...] * inv).astype(o_ref.dtype)             # lane-dense store


def attention(qkv, *, heads, cfg=None):
    """qkv: (B, N, 3E) packed [Q | K | V], head-major (h d) columns, Q pre-scaled.
    Returns (B, N, E) in the same head-major column layout."""
    cfg = cfg or _tpu_config()
    B, N, E3 = qkv.shape
    E = E3 // 3
    assert E % heads == 0

    TQ = _tile(N, cfg["tq"])
    # v7x has two TensorCores: keep >= 2 parallel grid blocks when B == 1.
    if B * (N // TQ) < 2:
        half = _tile(N, max(TQ // 2, 8))
        if half < TQ and (half % 8 == 0 or half == N):
            TQ = half
    TK = _tile(N, cfg["tkv"])

    if E % 128 == 0:
        # Read Q / K / V directly out of the packed activation: same array three
        # times, last-dim block index 0 / 1 / 2 (no slicing copies).
        q_arr = k_arr = v_arr = qkv
        q_idx, k_idx, v_idx = 0, 1, 2
    else:
        # Fallback for non-128-multiple emb: explicit slices (one extra HBM pass).
        q_arr, k_arr, v_arr = qkv[..., :E], qkv[..., E:2 * E], qkv[..., 2 * E:]
        q_idx = k_idx = v_idx = 0

    return pl.pallas_call(
        partial(_attn_kernel, heads=heads),
        out_shape=jax.ShapeDtypeStruct((B, N, E), qkv.dtype),
        grid_spec=pltpu.PrefetchScalarGridSpec(
            num_scalar_prefetch=0,
            grid=(B, N // TQ, N // TK),
            in_specs=[
                pl.BlockSpec((1, TQ, E), lambda b, qi, ki: (b, qi, q_idx)),   # Q slab
                pl.BlockSpec((1, TK, E), lambda b, qi, ki: (b, ki, k_idx)),   # K slab
                pl.BlockSpec((1, TK, E), lambda b, qi, ki: (b, ki, v_idx)),   # V slab
            ],
            out_specs=pl.BlockSpec((1, TQ, E), lambda b, qi, ki: (b, qi, 0)),
            scratch_shapes=[
                pltpu.VMEM((TQ, E), jnp.float32),   # running max (lane-broadcast per head)
                pltpu.VMEM((TQ, E), jnp.float32),   # running denom (lane-broadcast per head)
                pltpu.VMEM((TQ, E), jnp.float32),   # running numerator (all heads)
            ],
        ),
        compiler_params=pltpu.CompilerParams(
            dimension_semantics=("parallel", "parallel", "arbitrary"),
            vmem_limit_bytes=cfg["vmem_limit"],
        ),
    )(q_arr, k_arr, v_arr)


# --------------------------- parameter preparation ------------------------------
def prepare_params(p, emb, heads):
    """Host-side, one-time parameter prep:
      * permute the interleaved '(h d q)' qkv weight columns to a packed
        [Q | K | V] layout with head-major (h d) columns, and
      * fold the softmax 1/sqrt(emb) scale into the Q columns,
    so the kernels need no runtime rearranges and no per-KV-step scaling."""
    D = emb // heads
    perm = np.arange(3 * emb).reshape(heads, D, 3).transpose(2, 0, 1).reshape(-1)
    w = np.asarray(p["w_qkv"])[:, perm].copy()
    b = np.asarray(p["b_qkv"])[perm].copy()
    scale = 1.0 / math.sqrt(emb)      # the PyTorch module divides by emb**0.5
    w[:, :emb] *= scale
    b[:emb] *= scale
    kp = dict(p)
    kp["w_qkv_hm"] = jnp.asarray(w)
    kp["b_qkv_hm"] = jnp.asarray(b)
    del kp["w_qkv"], kp["b_qkv"]
    return kp


# ------------------------------ block forward -----------------------------------
def transformer_block(x, params, *, heads, eps=1e-5):
    # TODO(synk): DropPath(dp) and nn.Dropout(p) are identity in eval mode; omitted.
    B, N, E = x.shape
    R = B * N
    cfg = _tpu_config()
    x2 = x.reshape(R, E)

    # --- x = x + MHA(LayerNorm(x)) ---   (LN fused into the packed QKV matmul)
    qkv = linear(x2, params["w_qkv_hm"], params["b_qkv_hm"],
                 ln=(params["ln1_g"], params["ln1_b"]), ln_eps=eps, cfg=cfg)
    attn = attention(qkv.reshape(B, N, 3 * E), heads=heads, cfg=cfg).reshape(R, E)
    x2 = linear(attn, params["w_proj"], params["b_proj"], residual=x2, cfg=cfg)

    # --- x = x + FFN(LayerNorm(x)) ---   (LN fused into FF1, GELU + residual epilogues)
    f = linear(x2, params["w_ff1"], params["b_ff1"],
               ln=(params["ln2_g"], params["ln2_b"]), ln_eps=eps,
               activation="gelu", cfg=cfg)
    x2 = linear(f, params["w_ff2"], params["b_ff2"], residual=x2, cfg=cfg)

    return x2.reshape(B, N, E)


# --------------------------------- reference -------------------------------------
def reference(x, params, heads):
    """Pure-JAX replica of the PyTorch TransformerBlock forward (eval mode),
    using the ORIGINAL interleaved '(h d q)' qkv layout."""
    def ln(t, g, b):
        mean = t.mean(-1, keepdims=True)
        var = ((t - mean) ** 2).mean(-1, keepdims=True)
        return (t - mean) / jnp.sqrt(var + 1e-5) * g + b

    B, N, E = x.shape
    D = E // heads

    h1 = ln(x, params["ln1_g"], params["ln1_b"])
    qkv = h1 @ params["w_qkv"] + params["b_qkv"]
    qkv = qkv.reshape(B, N, heads, D, 3).transpose(4, 0, 2, 1, 3)
    q, k, v = qkv[0], qkv[1], qkv[2]
    att = jax.nn.softmax(jnp.einsum("bhnd,bhmd->bhnm", q, k) / math.sqrt(E), axis=-1)
    out = jnp.einsum("bhnm,bhmd->bhnd", att, v).transpose(0, 2, 1, 3).reshape(B, N, E)
    x = x + (out @ params["w_proj"] + params["b_proj"])

    h2 = ln(x, params["ln2_g"], params["ln2_b"])
    f = jax.nn.gelu(h2 @ params["w_ff1"] + params["b_ff1"], approximate=False)
    x = x + (f @ params["w_ff2"] + params["b_ff2"])
    return x


# ----------------------------------- main ----------------------------------------
if __name__ == "__main__":
    # Module defaults: emb=256, heads=8, exp=2 (head_dim = 32, ffn hidden = 512).
    B, N, E, H, EXP = 2, 8, 256, 8, 2

    key = jax.random.PRNGKey(0)
    keys = jax.random.split(key, 13)
    x = jax.random.normal(keys[0], (B, N, E), dtype=jnp.float32)

    bnd = 1.0 / math.sqrt(E)
    bnd_ff2 = 1.0 / math.sqrt(EXP * E)
    params = {
        "ln1_g": 1.0 + 0.1 * jax.random.normal(keys[1], (E,), jnp.float32),
        "ln1_b": 0.1 * jax.random.normal(keys[2], (E,), jnp.float32),
        "w_qkv": jax.random.uniform(keys[3], (E, 3 * E), jnp.float32, -bnd, bnd),
        "b_qkv": jax.random.uniform(keys[4], (3 * E,), jnp.float32, -bnd, bnd),
        "w_proj": jax.random.uniform(keys[5], (E, E), jnp.float32, -bnd, bnd),
        "b_proj": jax.random.uniform(keys[6], (E,), jnp.float32, -bnd, bnd),
        "ln2_g": 1.0 + 0.1 * jax.random.normal(keys[7], (E,), jnp.float32),
        "ln2_b": 0.1 * jax.random.normal(keys[8], (E,), jnp.float32),
        "w_ff1": jax.random.uniform(keys[9], (E, EXP * E), jnp.float32, -bnd, bnd),
        "b_ff1": jax.random.uniform(keys[10], (EXP * E,), jnp.float32, -bnd, bnd),
        "w_ff2": jax.random.uniform(keys[11], (EXP * E, E), jnp.float32, -bnd_ff2, bnd_ff2),
        "b_ff2": jax.random.uniform(keys[12], (E,), jnp.float32, -bnd_ff2, bnd_ff2),
    }

    kparams = prepare_params(params, E, H)

    fwd = jax.jit(partial(transformer_block, heads=H))
    out = jax.block_until_ready(fwd(x, kparams))

    ref = reference(x, params, H)
    assert out.shape == (B, N, E), out.shape
    err = float(jnp.max(jnp.abs(out - ref)))
    assert jnp.allclose(out, ref, atol=2e-3, rtol=2e-3), (
        "mismatch vs reference; max abs err = %g" % err)

    print("KERNEL_OK")
</pallas_src>

<mosaic_0001>
module attributes {stable_mosaic.version = 11 : i64} {
  func.func @_attn_kernel(%arg0: i32, %arg1: i32, %arg2: i32, %arg3: memref<1x8x256xf32, #tpu.memory_space<vmem>>, %arg4: memref<1x8x256xf32, #tpu.memory_space<vmem>>, %arg5: memref<1x8x256xf32, #tpu.memory_space<vmem>>, %arg6: memref<1x8x256xf32, #tpu.memory_space<vmem>>, %arg7: memref<8x256xf32, #tpu.memory_space<vmem>>, %arg8: memref<8x256xf32, #tpu.memory_space<vmem>>, %arg9: memref<8x256xf32, #tpu.memory_space<vmem>>) attributes {dimension_semantics = [#tpu.dimension_semantics<parallel>, #tpu.dimension_semantics<parallel>, #tpu.dimension_semantics<arbitrary>], iteration_bounds = array<i64: 2, 1, 1>, scalar_prefetch = 0 : i64, scratch_operands = 3 : i64, tpu.core_type = #tpu.core_type<tc>, window_params = [{transform_indices = @transform_0, window_bounds = array<i64: 1, 8, 256>}, {transform_indices = @transform_1, window_bounds = array<i64: 1, 8, 256>}, {transform_indices = @transform_2, window_bounds = array<i64: 1, 8, 256>}, {transform_indices = @transform_3, window_bounds = array<i64: 1, 8, 256>}]} {
    %c0_i32 = arith.constant 0 : i32
    %0 = arith.cmpi eq, %arg2, %c0_i32 : i32
    %1 = arith.extui %0 : i1 to i32
    %c0_i32_0 = arith.constant 0 : i32
    %2 = arith.cmpi ne, %1, %c0_i32_0 : i32
    scf.if %2 {
      %cst_54 = arith.constant 0xFF800000 : f32
      %224 = vector.broadcast %cst_54 : f32 to vector<8x256xf32>
      %c0_55 = arith.constant 0 : index
      %c0_56 = arith.constant 0 : index
      %225 = vector.load %arg7[%c0_55, %c0_56] : memref<8x256xf32, #tpu.memory_space<vmem>>, vector<8x256xf32>
      tpu.vector_store %arg7[%c0_55, %c0_56], %224 {strides = array<i32>} : memref<8x256xf32, #tpu.memory_space<vmem>>, vector<8x256xf32>,
      %cst_57 = arith.constant 0.000000e+00 : f32
      %226 = vector.broadcast %cst_57 : f32 to vector<8x256xf32>
      %c0_58 = arith.constant 0 : index
      %c0_59 = arith.constant 0 : index
      %227 = vector.load %arg8[%c0_58, %c0_59] : memref<8x256xf32, #tpu.memory_space<vmem>>, vector<8x256xf32>
      tpu.vector_store %arg8[%c0_58, %c0_59], %226 {strides = array<i32>} : memref<8x256xf32, #tpu.memory_space<vmem>>, vector<8x256xf32>,
      %cst_60 = arith.constant 0.000000e+00 : f32
      %228 = vector.broadcast %cst_60 : f32 to vector<8x256xf32>
      %c0_61 = arith.constant 0 : index
      %c0_62 = arith.constant 0 : index
      %229 = vector.load %arg9[%c0_61, %c0_62] : memref<8x256xf32, #tpu.memory_space<vmem>>, vector<8x256xf32>
      tpu.vector_store %arg9[%c0_61, %c0_62], %228 {strides = array<i32>} : memref<8x256xf32, #tpu.memory_space<vmem>>, vector<8x256xf32>,
    } else {
    }
    %c0 = arith.constant 0 : index
    %c0_1 = arith.constant 0 : index
    %c0_2 = arith.constant 0 : index
    %3 = vector.load %arg3[%c0, %c0_1, %c0_2] : memref<1x8x256xf32, #tpu.memory_space<vmem>>, vector<1x8x256xf32>
    %4 = vector.shape_cast %3 : vector<1x8x256xf32> to vector<8x256xf32>
    %c0_3 = arith.constant 0 : index
    %c0_4 = arith.constant 0 : index
    %c0_5 = arith.constant 0 : index
    %5 = vector.load %arg4[%c0_3, %c0_4, %c0_5] : memref<1x8x256xf32, #tpu.memory_space<vmem>>, vector<1x8x256xf32>
    %6 = vector.shape_cast %5 : vector<1x8x256xf32> to vector<8x256xf32>
    %c0_6 = arith.constant 0 : index
    %c0_7 = arith.constant 0 : index
    %c0_8 = arith.constant 0 : index
    %7 = vector.load %arg5[%c0_6, %c0_7, %c0_8] : memref<1x8x256xf32, #tpu.memory_space<vmem>>, vector<1x8x256xf32>
    %8 = vector.shape_cast %7 : vector<1x8x256xf32> to vector<8x256xf32>
    %c0_9 = arith.constant 0 : index
    %c0_10 = arith.constant 0 : index
    %9 = vector.load %arg7[%c0_9, %c0_10] : memref<8x256xf32, #tpu.memory_space<vmem>>, vector<8x256xf32>
    %c0_11 = arith.constant 0 : index
    %c0_12 = arith.constant 0 : index
    %10 = vector.load %arg8[%c0_11, %c0_12] : memref<8x256xf32, #tpu.memory_space<vmem>>, vector<8x256xf32>
    %11 = vector.extract_strided_slice %4 {offsets = [0, 0], sizes = [8, 32], strides = [1, 1]} : vector<8x256xf32> to vector<8x32xf32>
    %12 = vector.extract_strided_slice %6 {offsets = [0, 0], sizes = [8, 32], strides = [1, 1]} : vector<8x256xf32> to vector<8x32xf32>
    %cst = arith.constant dense<0.000000e+00> : vector<8x8xf32>
    %13 = tpu.matmul %11, %12, %cst {dimension_numbers = #tpu.dot_dimension_numbers<[1], [1], [0], [0], [0, 0, 1, 0], [], []>} : vector<8x32xf32>, vector<8x32xf32>, vector<8x8xf32> -> vector<8x8xf32>
    %14 = vector.extract_strided_slice %9 {offsets = [0, 0], sizes = [8, 1], strides = [1, 1]} : vector<8x256xf32> to vector<8x1xf32>
    %15 = vector.extract_strided_slice %10 {offsets = [0, 0], sizes = [8, 1], strides = [1, 1]} : vector<8x256xf32> to vector<8x1xf32>
    %cst_13 = arith.constant dense<0xFF800000> : vector<8xf32>
    %16 = vector.multi_reduction <maximumf>, %13, %cst_13 [1] : vector<8x8xf32> to vector<8xf32>
    %17 = vector.shape_cast %16 : vector<8xf32> to vector<8x1xf32>
    %18 = arith.maximumf %14, %17 : vector<8x1xf32>
    %19 = arith.subf %14, %18 : vector<8x1xf32>
    %20 = math.exp %19 : vector<8x1xf32>
    %21 = vector.broadcast %18 : vector<8x1xf32> to vector<8x8xf32>
    %22 = arith.subf %13, %21 : vector<8x8xf32>
    %23 = math.exp %22 : vector<8x8xf32>
    %24 = arith.mulf %20, %15 : vector<8x1xf32>
    %cst_14 = arith.constant dense<0.000000e+00> : vector<8xf32>
    %25 = vector.multi_reduction <add>, %23, %cst_14 [1] : vector<8x8xf32> to vector<8xf32>
    %26 = vector.shape_cast %25 : vector<8xf32> to vector<8x1xf32>
    %27 = arith.addf %24, %26 : vector<8x1xf32>
    %28 = vector.extract_strided_slice %8 {offsets = [0, 0], sizes = [8, 32], strides = [1, 1]} : vector<8x256xf32> to vector<8x32xf32>
    %cst_15 = arith.constant dense<0.000000e+00> : vector<8x32xf32>
    %29 = tpu.matmul %23, %28, %cst_15 {dimension_numbers = #tpu.dot_dimension_numbers<[1], [0], [0], [1], [0, 0, 1, 1], [], []>} : vector<8x8xf32>, vector<8x32xf32>, vector<8x32xf32> -> vector<8x32xf32>
    %30 = vector.shape_cast %18 : vector<8x1xf32> to vector<8x1xf32>
    %31 = vector.broadcast %30 : vector<8x1xf32> to vector<8x32xf32>
    %32 = vector.shape_cast %27 : vector<8x1xf32> to vector<8x1xf32>
    %33 = vector.broadcast %32 : vector<8x1xf32> to vector<8x32xf32>
    %34 = vector.shape_cast %20 : vector<8x1xf32> to vector<8x1xf32>
    %35 = vector.broadcast %34 : vector<8x1xf32> to vector<8x32xf32>
    %36 = vector.extract_strided_slice %4 {offsets = [0, 32], sizes = [8, 32], strides = [1, 1]} : vector<8x256xf32> to vector<8x32xf32>
    %37 = vector.extract_strided_slice %6 {offsets = [0, 32], sizes = [8, 32], strides = [1, 1]} : vector<8x256xf32> to vector<8x32xf32>
    %cst_16 = arith.constant dense<0.000000e+00> : vector<8x8xf32>
    %38 = tpu.matmul %36, %37, %cst_16 {dimension_numbers = #tpu.dot_dimension_numbers<[1], [1], [0], [0], [0, 0, 1, 0], [], []>} : vector<8x32xf32>, vector<8x32xf32>, vector<8x8xf32> -> vector<8x8xf32>
    %39 = vector.extract_strided_slice %9 {offsets = [0, 32], sizes = [8, 1], strides = [1, 1]} : vector<8x256xf32> to vector<8x1xf32>
    %40 = vector.extract_strided_slice %10 {offsets = [0, 32], sizes = [8, 1], strides = [1, 1]} : vector<8x256xf32> to vector<8x1xf32>
    %cst_17 = arith.constant dense<0xFF800000> : vector<8xf32>
    %41 = vector.multi_reduction <maximumf>, %38, %cst_17 [1] : vector<8x8xf32> to vector<8xf32>
    %42 = vector.shape_cast %41 : vector<8xf32> to vector<8x1xf32>
    %43 = arith.maximumf %39, %42 : vector<8x1xf32>
    %44 = arith.subf %39, %43 : vector<8x1xf32>
    %45 = math.exp %44 : vector<8x1xf32>
    %46 = vector.broadcast %43 : vector<8x1xf32> to vector<8x8xf32>
    %47 = arith.subf %38, %46 : vector<8x8xf32>
    %48 = math.exp %47 : vector<8x8xf32>
    %49 = arith.mulf %45, %40 : vector<8x1xf32>
    %cst_18 = arith.constant dense<0.000000e+00> : vector<8xf32>
    %50 = vector.multi_reduction <add>, %48, %cst_18 [1] : vector<8x8xf32> to vector<8xf32>
    %51 = vector.shape_cast %50 : vector<8xf32> to vector<8x1xf32>
    %52 = arith.addf %49, %51 : vector<8x1xf32>
    %53 = vector.extract_strided_slice %8 {offsets = [0, 32], sizes = [8, 32], strides = [1, 1]} : vector<8x256xf32> to vector<8x32xf32>
    %cst_19 = arith.constant dense<0.000000e+00> : vector<8x32xf32>
    %54 = tpu.matmul %48, %53, %cst_19 {dimension_numbers = #tpu.dot_dimension_numbers<[1], [0], [0], [1], [0, 0, 1, 1], [], []>} : vector<8x8xf32>, vector<8x32xf32>, vector<8x32xf32> -> vector<8x32xf32>
    %55 = vector.shape_cast %43 : vector<8x1xf32> to vector<8x1xf32>
    %56 = vector.broadcast %55 : vector<8x1xf32> to vector<8x32xf32>
    %57 = vector.shape_cast %52 : vector<8x1xf32> to vector<8x1xf32>
    %58 = vector.broadcast %57 : vector<8x1xf32> to vector<8x32xf32>
    %59 = vector.shape_cast %45 : vector<8x1xf32> to vector<8x1xf32>
    %60 = vector.broadcast %59 : vector<8x1xf32> to vector<8x32xf32>
    %61 = vector.extract_strided_slice %4 {offsets = [0, 64], sizes = [8, 32], strides = [1, 1]} : vector<8x256xf32> to vector<8x32xf32>
    %62 = vector.extract_strided_slice %6 {offsets = [0, 64], sizes = [8, 32], strides = [1, 1]} : vector<8x256xf32> to vector<8x32xf32>
    %cst_20 = arith.constant dense<0.000000e+00> : vector<8x8xf32>
    %63 = tpu.matmul %61, %62, %cst_20 {dimension_numbers = #tpu.dot_dimension_numbers<[1], [1], [0], [0], [0, 0, 1, 0], [], []>} : vector<8x32xf32>, vector<8x32xf32>, vector<8x8xf32> -> vector<8x8xf32>
    %64 = vector.extract_strided_slice %9 {offsets = [0, 64], sizes = [8, 1], strides = [1, 1]} : vector<8x256xf32> to vector<8x1xf32>
    %65 = vector.extract_strided_slice %10 {offsets = [0, 64], sizes = [8, 1], strides = [1, 1]} : vector<8x256xf32> to vector<8x1xf32>
    %cst_21 = arith.constant dense<0xFF800000> : vector<8xf32>
    %66 = vector.multi_reduction <maximumf>, %63, %cst_21 [1] : vector<8x8xf32> to vector<8xf32>
    %67 = vector.shape_cast %66 : vector<8xf32> to vector<8x1xf32>
    %68 = arith.maximumf %64, %67 : vector<8x1xf32>
    %69 = arith.subf %64, %68 : vector<8x1xf32>
    %70 = math.exp %69 : vector<8x1xf32>
    %71 = vector.broadcast %68 : vector<8x1xf32> to vector<8x8xf32>
    %72 = arith.subf %63, %71 : vector<8x8xf32>
    %73 = math.exp %72 : vector<8x8xf32>
    %74 = arith.mulf %70, %65 : vector<8x1xf32>
    %cst_22 = arith.constant dense<0.000000e+00> : vector<8xf32>
    %75 = vector.multi_reduction <add>, %73, %cst_22 [1] : vector<8x8xf32> to vector<8xf32>
    %76 = vector.shape_cast %75 : vector<8xf32> to vector<8x1xf32>
    %77 = arith.addf %74, %76 : vector<8x1xf32>
    %78 = vector.extract_strided_slice %8 {offsets = [0, 64], sizes = [8, 32], strides = [1, 1]} : vector<8x256xf32> to vector<8x32xf32>
    %cst_23 = arith.constant dense<0.000000e+00> : vector<8x32xf32>
    %79 = tpu.matmul %73, %78, %cst_23 {dimension_numbers = #tpu.dot_dimension_numbers<[1], [0], [0], [1], [0, 0, 1, 1], [], []>} : vector<8x8xf32>, vector<8x32xf32>, vector<8x32xf32> -> vector<8x32xf32>
    %80 = vector.shape_cast %68 : vector<8x1xf32> to vector<8x1xf32>
    %81 = vector.broadcast %80 : vector<8x1xf32> to vector<8x32xf32>
    %82 = vector.shape_cast %77 : vector<8x1xf32> to vector<8x1xf32>
    %83 = vector.broadcast %82 : vector<8x1xf32> to vector<8x32xf32>
    %84 = vector.shape_cast %70 : vector<8x1xf32> to vector<8x1xf32>
    %85 = vector.broadcast %84 : vector<8x1xf32> to vector<8x32xf32>
    %86 = vector.extract_strided_slice %4 {offsets = [0, 96], sizes = [8, 32], strides = [1, 1]} : vector<8x256xf32> to vector<8x32xf32>
    %87 = vector.extract_strided_slice %6 {offsets = [0, 96], sizes = [8, 32], strides = [1, 1]} : vector<8x256xf32> to vector<8x32xf32>
    %cst_24 = arith.constant dense<0.000000e+00> : vector<8x8xf32>
    %88 = tpu.matmul %86, %87, %cst_24 {dimension_numbers = #tpu.dot_dimension_numbers<[1], [1], [0], [0], [0, 0, 1, 0], [], []>} : vector<8x32xf32>, vector<8x32xf32>, vector<8x8xf32> -> vector<8x8xf32>
    %89 = vector.extract_strided_slice %9 {offsets = [0, 96], sizes = [8, 1], strides = [1, 1]} : vector<8x256xf32> to vector<8x1xf32>
    %90 = vector.extract_strided_slice %10 {offsets = [0, 96], sizes = [8, 1], strides = [1, 1]} : vector<8x256xf32> to vector<8x1xf32>
    %cst_25 = arith.constant dense<0xFF800000> : vector<8xf32>
    %91 = vector.multi_reduction <maximumf>, %88, %cst_25 [1] : vector<8x8xf32> to vector<8xf32>
    %92 = vector.shape_cast %91 : vector<8xf32> to vector<8x1xf32>
    %93 = arith.maximumf %89, %92 : vector<8x1xf32>
    %94 = arith.subf %89, %93 : vector<8x1xf32>
    %95 = math.exp %94 : vector<8x1xf32>
    %96 = vector.broadcast %93 : vector<8x1xf32> to vector<8x8xf32>
    %97 = arith.subf %88, %96 : vector<8x8xf32>
    %98 = math.exp %97 : vector<8x8xf32>
    %99 = arith.mulf %95, %90 : vector<8x1xf32>
    %cst_26 = arith.constant dense<0.000000e+00> : vector<8xf32>
    %100 = vector.multi_reduction <add>, %98, %cst_26 [1] : vector<8x8xf32> to vector<8xf32>
    %101 = vector.shape_cast %100 : vector<8xf32> to vector<8x1xf32>
    %102 = arith.addf %99, %101 : vector<8x1xf32>
    %103 = vector.extract_strided_slice %8 {offsets = [0, 96], sizes = [8, 32], strides = [1, 1]} : vector<8x256xf32> to vector<8x32xf32>
    %cst_27 = arith.constant dense<0.000000e+00> : vector<8x32xf32>
    %104 = tpu.matmul %98, %103, %cst_27 {dimension_numbers = #tpu.dot_dimension_numbers<[1], [0], [0], [1], [0, 0, 1, 1], [], []>} : vector<8x8xf32>, vector<8x32xf32>, vector<8x32xf32> -> vector<8x32xf32>
    %105 = vector.shape_cast %93 : vector<8x1xf32> to vector<8x1xf32>
    %106 = vector.broadcast %105 : vector<8x1xf32> to vector<8x32xf32>
    %107 = vector.shape_cast %102 : vector<8x1xf32> to vector<8x1xf32>
    %108 = vector.broadcast %107 : vector<8x1xf32> to vector<8x32xf32>
    %109 = vector.shape_cast %95 : vector<8x1xf32> to vector<8x1xf32>
    %110 = vector.broadcast %109 : vector<8x1xf32> to vector<8x32xf32>
    %111 = vector.extract_strided_slice %4 {offsets = [0, 128], sizes = [8, 32], strides = [1, 1]} : vector<8x256xf32> to vector<8x32xf32>
    %112 = vector.extract_strided_slice %6 {offsets = [0, 128], sizes = [8, 32], strides = [1, 1]} : vector<8x256xf32> to vector<8x32xf32>
    %cst_28 = arith.constant dense<0.000000e+00> : vector<8x8xf32>
    %113 = tpu.matmul %111, %112, %cst_28 {dimension_numbers = #tpu.dot_dimension_numbers<[1], [1], [0], [0], [0, 0, 1, 0], [], []>} : vector<8x32xf32>, vector<8x32xf32>, vector<8x8xf32> -> vector<8x8xf32>
    %114 = vector.extract_strided_slice %9 {offsets = [0, 128], sizes = [8, 1], strides = [1, 1]} : vector<8x256xf32> to vector<8x1xf32>
    %115 = vector.extract_strided_slice %10 {offsets = [0, 128], sizes = [8, 1], strides = [1, 1]} : vector<8x256xf32> to vector<8x1xf32>
    %cst_29 = arith.constant dense<0xFF800000> : vector<8xf32>
    %116 = vector.multi_reduction <maximumf>, %113, %cst_29 [1] : vector<8x8xf32> to vector<8xf32>
    %117 = vector.shape_cast %116 : vector<8xf32> to vector<8x1xf32>
    %118 = arith.maximumf %114, %117 : vector<8x1xf32>
    %119 = arith.subf %114, %118 : vector<8x1xf32>
    %120 = math.exp %119 : vector<8x1xf32>
    %121 = vector.broadcast %118 : vector<8x1xf32> to vector<8x8xf32>
    %122 = arith.subf %113, %121 : vector<8x8xf32>
    %123 = math.exp %122 : vector<8x8xf32>
    %124 = arith.mulf %120, %115 : vector<8x1xf32>
    %cst_30 = arith.constant dense<0.000000e+00> : vector<8xf32>
    %125 = vector.multi_reduction <add>, %123, %cst_30 [1] : vector<8x8xf32> to vector<8xf32>
    %126 = vector.shape_cast %125 : vector<8xf32> to vector<8x1xf32>
    %127 = arith.addf %124, %126 : vector<8x1xf32>
    %128 = vector.extract_strided_slice %8 {offsets = [0, 128], sizes = [8, 32], strides = [1, 1]} : vector<8x256xf32> to vector<8x32xf32>
    %cst_31 = arith.constant dense<0.000000e+00> : vector<8x32xf32>
    %129 = tpu.matmul %123, %128, %cst_31 {dimension_numbers = #tpu.dot_dimension_numbers<[1], [0], [0], [1], [0, 0, 1, 1], [], []>} : vector<8x8xf32>, vector<8x32xf32>, vector<8x32xf32> -> vector<8x32xf32>
    %130 = vector.shape_cast %118 : vector<8x1xf32> to vector<8x1xf32>
    %131 = vector.broadcast %130 : vector<8x1xf32> to vector<8x32xf32>
    %132 = vector.shape_cast %127 : vector<8x1xf32> to vector<8x1xf32>
    %133 = vector.broadcast %132 : vector<8x1xf32> to vector<8x32xf32>
    %134 = vector.shape_cast %120 : vector<8x1xf32> to vector<8x1xf32>
    %135 = vector.broadcast %134 : vector<8x1xf32> to vector<8x32xf32>
    %136 = vector.extract_strided_slice %4 {offsets = [0, 160], sizes = [8, 32], strides = [1, 1]} : vector<8x256xf32> to vector<8x32xf32>
    %137 = vector.extract_strided_slice %6 {offsets = [0, 160], sizes = [8, 32], strides = [1, 1]} : vector<8x256xf32> to vector<8x32xf32>
    %cst_32 = arith.constant dense<0.000000e+00> : vector<8x8xf32>
    %138 = tpu.matmul %136, %137, %cst_32 {dimension_numbers = #tpu.dot_dimension_numbers<[1], [1], [0], [0], [0, 0, 1, 0], [], []>} : vector<8x32xf32>, vector<8x32xf32>, vector<8x8xf32> -> vector<8x8xf32>
    %139 = vector.extract_strided_slice %9 {offsets = [0, 160], sizes = [8, 1], strides = [1, 1]} : vector<8x256xf32> to vector<8x1xf32>
    %140 = vector.extract_strided_slice %10 {offsets = [0, 160], sizes = [8, 1], strides = [1, 1]} : vector<8x256xf32> to vector<8x1xf32>
    %cst_33 = arith.constant dense<0xFF800000> : vector<8xf32>
    %141 = vector.multi_reduction <maximumf>, %138, %cst_33 [1] : vector<8x8xf32> to vector<8xf32>
    %142 = vector.shape_cast %141 : vector<8xf32> to vector<8x1xf32>
    %143 = arith.maximumf %139, %142 : vector<8x1xf32>
    %144 = arith.subf %139, %143 : vector<8x1xf32>
    %145 = math.exp %144 : vector<8x1xf32>
    %146 = vector.broadcast %143 : vector<8x1xf32> to vector<8x8xf32>
    %147 = arith.subf %138, %146 : vector<8x8xf32>
    %148 = math.exp %147 : vector<8x8xf32>
    %149 = arith.mulf %145, %140 : vector<8x1xf32>
    %cst_34 = arith.constant dense<0.000000e+00> : vector<8xf32>
    %150 = vector.multi_reduction <add>, %148, %cst_34 [1] : vector<8x8xf32> to vector<8xf32>
    %151 = vector.shape_cast %150 : vector<8xf32> to vector<8x1xf32>
    %152 = arith.addf %149, %151 : vector<8x1xf32>
    %153 = vector.extract_strided_slice %8 {offsets = [0, 160], sizes = [8, 32], strides = [1, 1]} : vector<8x256xf32> to vector<8x32xf32>
    %cst_35 = arith.constant dense<0.000000e+00> : vector<8x32xf32>
    %154 = tpu.matmul %148, %153, %cst_35 {dimension_numbers = #tpu.dot_dimension_numbers<[1], [0], [0], [1], [0, 0, 1, 1], [], []>} : vector<8x8xf32>, vector<8x32xf32>, vector<8x32xf32> -> vector<8x32xf32>
    %155 = vector.shape_cast %143 : vector<8x1xf32> to vector<8x1xf32>
    %156 = vector.broadcast %155 : vector<8x1xf32> to vector<8x32xf32>
    %157 = vector.shape_cast %152 : vector<8x1xf32> to vector<8x1xf32>
    %158 = vector.broadcast %157 : vector<8x1xf32> to vector<8x32xf32>
    %159 = vector.shape_cast %145 : vector<8x1xf32> to vector<8x1xf32>
    %160 = vector.broadcast %159 : vector<8x1xf32> to vector<8x32xf32>
    %161 = vector.extract_strided_slice %4 {offsets = [0, 192], sizes = [8, 32], strides = [1, 1]} : vector<8x256xf32> to vector<8x32xf32>
    %162 = vector.extract_strided_slice %6 {offsets = [0, 192], sizes = [8, 32], strides = [1, 1]} : vector<8x256xf32> to vector<8x32xf32>
    %cst_36 = arith.constant dense<0.000000e+00> : vector<8x8xf32>
    %163 = tpu.matmul %161, %162, %cst_36 {dimension_numbers = #tpu.dot_dimension_numbers<[1], [1], [0], [0], [0, 0, 1, 0], [], []>} : vector<8x32xf32>, vector<8x32xf32>, vector<8x8xf32> -> vector<8x8xf32>
    %164 = vector.extract_strided_slice %9 {offsets = [0, 192], sizes = [8, 1], strides = [1, 1]} : vector<8x256xf32> to vector<8x1xf32>
    %165 = vector.extract_strided_slice %10 {offsets = [0, 192], sizes = [8, 1], strides = [1, 1]} : vector<8x256xf32> to vector<8x1xf32>
    %cst_37 = arith.constant dense<0xFF800000> : vector<8xf32>
    %166 = vector.multi_reduction <maximumf>, %163, %cst_37 [1] : vector<8x8xf32> to vector<8xf32>
    %167 = vector.shape_cast %166 : vector<8xf32> to vector<8x1xf32>
    %168 = arith.maximumf %164, %167 : vector<8x1xf32>
    %169 = arith.subf %164, %168 : vector<8x1xf32>
    %170 = math.exp %169 : vector<8x1xf32>
    %171 = vector.broadcast %168 : vector<8x1xf32> to vector<8x8xf32>
    %172 = arith.subf %163, %171 : vector<8x8xf32>
    %173 = math.exp %172 : vector<8x8xf32>
    %174 = arith.mulf %170, %165 : vector<8x1xf32>
    %cst_38 = arith.constant dense<0.000000e+00> : vector<8xf32>
    %175 = vector.multi_reduction <add>, %173, %cst_38 [1] : vector<8x8xf32> to vector<8xf32>
    %176 = vector.shape_cast %175 : vector<8xf32> to vector<8x1xf32>
    %177 = arith.addf %174, %176 : vector<8x1xf32>
    %178 = vector.extract_strided_slice %8 {offsets = [0, 192], sizes = [8, 32], strides = [1, 1]} : vector<8x256xf32> to vector<8x32xf32>
    %cst_39 = arith.constant dense<0.000000e+00> : vector<8x32xf32>
    %179 = tpu.matmul %173, %178, %cst_39 {dimension_numbers = #tpu.dot_dimension_numbers<[1], [0], [0], [1], [0, 0, 1, 1], [], []>} : vector<8x8xf32>, vector<8x32xf32>, vector<8x32xf32> -> vector<8x32xf32>
    %180 = vector.shape_cast %168 : vector<8x1xf32> to vector<8x1xf32>
    %181 = vector.broadcast %180 : vector<8x1xf32> to vector<8x32xf32>
    %182 = vector.shape_cast %177 : vector<8x1xf32> to vector<8x1xf32>
    %183 = vector.broadcast %182 : vector<8x1xf32> to vector<8x32xf32>
    %184 = vector.shape_cast %170 : vector<8x1xf32> to vector<8x1xf32>
    %185 = vector.broadcast %184 : vector<8x1xf32> to vector<8x32xf32>
    %186 = vector.extract_strided_slice %4 {offsets = [0, 224], sizes = [8, 32], strides = [1, 1]} : vector<8x256xf32> to vector<8x32xf32>
    %187 = vector.extract_strided_slice %6 {offsets = [0, 224], sizes = [8, 32], strides = [1, 1]} : vector<8x256xf32> to vector<8x32xf32>
    %cst_40 = arith.constant dense<0.000000e+00> : vector<8x8xf32>
    %188 = tpu.matmul %186, %187, %cst_40 {dimension_numbers = #tpu.dot_dimension_numbers<[1], [1], [0], [0], [0, 0, 1, 0], [], []>} : vector<8x32xf32>, vector<8x32xf32>, vector<8x8xf32> -> vector<8x8xf32>
    %189 = vector.extract_strided_slice %9 {offsets = [0, 224], sizes = [8, 1], strides = [1, 1]} : vector<8x256xf32> to vector<8x1xf32>
    %190 = vector.extract_strided_slice %10 {offsets = [0, 224], sizes = [8, 1], strides = [1, 1]} : vector<8x256xf32> to vector<8x1xf32>
    %cst_41 = arith.constant dense<0xFF800000> : vector<8xf32>
    %191 = vector.multi_reduction <maximumf>, %188, %cst_41 [1] : vector<8x8xf32> to vector<8xf32>
    %192 = vector.shape_cast %191 : vector<8xf32> to vector<8x1xf32>
    %193 = arith.maximumf %189, %192 : vector<8x1xf32>
    %194 = arith.subf %189, %193 : vector<8x1xf32>
    %195 = math.exp %194 : vector<8x1xf32>
    %196 = vector.broadcast %193 : vector<8x1xf32> to vector<8x8xf32>
    %197 = arith.subf %188, %196 : vector<8x8xf32>
    %198 = math.exp %197 : vector<8x8xf32>
    %199 = arith.mulf %195, %190 : vector<8x1xf32>
    %cst_42 = arith.constant dense<0.000000e+00> : vector<8xf32>
    %200 = vector.multi_reduction <add>, %198, %cst_42 [1] : vector<8x8xf32> to vector<8xf32>
    %201 = vector.shape_cast %200 : vector<8xf32> to vector<8x1xf32>
    %202 = arith.addf %199, %201 : vector<8x1xf32>
    %203 = vector.extract_strided_slice %8 {offsets = [0, 224], sizes = [8, 32], strides = [1, 1]} : vector<8x256xf32> to vector<8x32xf32>
    %cst_43 = arith.constant dense<0.000000e+00> : vector<8x32xf32>
    %204 = tpu.matmul %198, %203, %cst_43 {dimension_numbers = #tpu.dot_dimension_numbers<[1], [0], [0], [1], [0, 0, 1, 1], [], []>} : vector<8x8xf32>, vector<8x32xf32>, vector<8x32xf32> -> vector<8x32xf32>
    %205 = vector.shape_cast %193 : vector<8x1xf32> to vector<8x1xf32>
    %206 = vector.broadcast %205 : vector<8x1xf32> to vector<8x32xf32>
    %207 = vector.shape_cast %202 : vector<8x1xf32> to vector<8x1xf32>
    %208 = vector.broadcast %207 : vector<8x1xf32> to vector<8x32xf32>
    %209 = vector.shape_cast %195 : vector<8x1xf32> to vector<8x1xf32>
    %210 = vector.broadcast %209 : vector<8x1xf32> to vector<8x32xf32>
    %211 = tpu.concatenate %31, %56, %81, %106, %131, %156, %181, %206 in 1 : vector<8x32xf32>, vector<8x32xf32>, vector<8x32xf32>, vector<8x32xf32>, vector<8x32xf32>, vector<8x32xf32>, vector<8x32xf32>, vector<8x32xf32> -> vector<8x256xf32>
    %c0_44 = arith.constant 0 : index
    %c0_45 = arith.constant 0 : index
    %212 = vector.load %arg7[%c0_44, %c0_45] : memref<8x256xf32, #tpu.memory_space<vmem>>, vector<8x256xf32>
    tpu.vector_store %arg7[%c0_44, %c0_45], %211 {strides = array<i32>} : memref<8x256xf32, #tpu.memory_space<vmem>>, vector<8x256xf32>,
    %213 = tpu.concatenate %33, %58, %83, %108, %133, %158, %183, %208 in 1 : vector<8x32xf32>, vector<8x32xf32>, vector<8x32xf32>, vector<8x32xf32>, vector<8x32xf32>, vector<8x32xf32>, vector<8x32xf32>, vector<8x32xf32> -> vector<8x256xf32>
    %c0_46 = arith.constant 0 : index
    %c0_47 = arith.constant 0 : index
    %214 = vector.load %arg8[%c0_46, %c0_47] : memref<8x256xf32, #tpu.memory_space<vmem>>, vector<8x256xf32>
    tpu.vector_store %arg8[%c0_46, %c0_47], %213 {strides = array<i32>} : memref<8x256xf32, #tpu.memory_space<vmem>>, vector<8x256xf32>,
    %215 = tpu.concatenate %35, %60, %85, %110, %135, %160, %185, %210 in 1 : vector<8x32xf32>, vector<8x32xf32>, vector<8x32xf32>, vector<8x32xf32>, vector<8x32xf32>, vector<8x32xf32>, vector<8x32xf32>, vector<8x32xf32> -> vector<8x256xf32>
    %c0_48 = arith.constant 0 : index
    %c0_49 = arith.constant 0 : index
    %216 = vector.load %arg9[%c0_48, %c0_49] : memref<8x256xf32, #tpu.memory_space<vmem>>, vector<8x256xf32>
    %217 = arith.mulf %215, %216 : vector<8x256xf32>
    %218 = tpu.concatenate %29, %54, %79, %104, %129, %154, %179, %204 in 1 : vector<8x32xf32>, vector<8x32xf32>, vector<8x32xf32>, vector<8x32xf32>, vector<8x32xf32>, vector<8x32xf32>, vector<8x32xf32>, vector<8x32xf32> -> vector<8x256xf32>
    %219 = arith.addf %217, %218 : vector<8x256xf32>
    %c0_50 = arith.constant 0 : index
    %c0_51 = arith.constant 0 : index
    %220 = vector.load %arg9[%c0_50, %c0_51] : memref<8x256xf32, #tpu.memory_space<vmem>>, vector<8x256xf32>
    tpu.vector_store %arg9[%c0_50, %c0_51], %219 {strides = array<i32>} : memref<8x256xf32, #tpu.memory_space<vmem>>, vector<8x256xf32>,
    %c0_i32_52 = arith.constant 0 : i32
    %221 = arith.cmpi eq, %arg2, %c0_i32_52 : i32
    %222 = arith.extui %221 : i1 to i32
    %c0_i32_53 = arith.constant 0 : i32
    %223 = arith.cmpi ne, %222, %c0_i32_53 : i32
    scf.if %223 {
      %c0_54 = arith.constant 0 : index
      %c0_55 = arith.constant 0 : index
      %224 = vector.load %arg8[%c0_54, %c0_55] : memref<8x256xf32, #tpu.memory_space<vmem>>, vector<8x256xf32>
      %225 = tpu.reciprocal %224 {approx = true} : vector<8x256xf32> -> vector<8x256xf32>
      %c0_56 = arith.constant 0 : index
      %c0_57 = arith.constant 0 : index
      %226 = vector.load %arg9[%c0_56, %c0_57] : memref<8x256xf32, #tpu.memory_space<vmem>>, vector<8x256xf32>
      %227 = arith.mulf %226, %225 : vector<8x256xf32>
      %c0_58 = arith.constant 0 : index
      %c0_59 = arith.constant 0 : index
      %c0_60 = arith.constant 0 : index
      %228 = vector.load %arg6[%c0_58, %c0_59, %c0_60] : memref<1x8x256xf32, #tpu.memory_space<vmem>>, vector<1x8x256xf32>
      %229 = vector.shape_cast %228 : vector<1x8x256xf32> to vector<8x256xf32>
      %230 = vector.shape_cast %227 : vector<8x256xf32> to vector<1x8x256xf32>
      tpu.vector_store %arg6[%c0_58, %c0_59, %c0_60], %230 {strides = array<i32>} : memref<1x8x256xf32, #tpu.memory_space<vmem>>, vector<1x8x256xf32>,
    } else {
    }
    return
  }
  func.func @transform_0(%arg0: i32, %arg1: i32, %arg2: i32) -> (i32, i32, i32) {
    %c0_i32 = arith.constant 0 : i32
    %c0_i32_0 = arith.constant 0 : i32
    return %arg0, %arg1, %c0_i32 : i32, i32, i32
  }
  func.func @transform_1(%arg0: i32, %arg1: i32, %arg2: i32) -> (i32, i32, i32) {
    %c1_i32 = arith.constant 1 : i32
    %c0_i32 = arith.constant 0 : i32
    return %arg0, %arg2, %c1_i32 : i32, i32, i32
  }
  func.func @transform_2(%arg0: i32, %arg1: i32, %arg2: i32) -> (i32, i32, i32) {
    %c2_i32 = arith.constant 2 : i32
    %c0_i32 = arith.constant 0 : i32
    return %arg0, %arg2, %c2_i32 : i32, i32, i32
  }
  func.func @transform_3(%arg0: i32, %arg1: i32, %arg2: i32) -> (i32, i32, i32) {
    %c0_i32 = arith.constant 0 : i32
    %c0_i32_0 = arith.constant 0 : i32
    return %arg0, %arg1, %c0_i32 : i32, i32, i32
  }
}

module attributes {stable_mosaic.version = 11 : i64} {
  func.func @kernel(%arg0: i32, %arg1: i32, %arg2: i32, %arg3: memref<16x256xf32, #tpu.memory_space<vmem>>, %arg4: memref<256x256xf32, #tpu.memory_space<vmem>>, %arg5: memref<1x256xf32, #tpu.memory_space<vmem>>, %arg6: memref<16x256xf32, #tpu.memory_space<vmem>>, %arg7: memref<16x256xf32, #tpu.memory_space<vmem>>) attributes {dimension_semantics = [#tpu.dimension_semantics<parallel>, #tpu.dimension_semantics<parallel>, #tpu.dimension_semantics<arbitrary>], iteration_bounds = array<i64: 1, 1, 1>, scalar_prefetch = 0 : i64, scratch_operands = 0 : i64, tpu.core_type = #tpu.core_type<tc>, window_params = [{transform_indices = @transform_0, window_bounds = array<i64: 16, 256>}, {transform_indices = @transform_1, window_bounds = array<i64: 256, 256>}, {transform_indices = @transform_2, window_bounds = array<i64: 1, 256>}, {transform_indices = @transform_3, window_bounds = array<i64: 16, 256>}, {transform_indices = @transform_4, window_bounds = array<i64: 16, 256>}]} {
    %c0 = arith.constant 0 : index
    %c0_0 = arith.constant 0 : index
    %0 = vector.load %arg3[%c0, %c0_0] : memref<16x256xf32, #tpu.memory_space<vmem>>, vector<16x256xf32>
    %c0_1 = arith.constant 0 : index
    %c0_2 = arith.constant 0 : index
    %1 = vector.load %arg4[%c0_1, %c0_2] : memref<256x256xf32, #tpu.memory_space<vmem>>, vector<256x256xf32>
    %cst = arith.constant dense<0.000000e+00> : vector<16x256xf32>
    %2 = tpu.matmul %0, %1, %cst {dimension_numbers = #tpu.dot_dimension_numbers<[1], [0], [0], [1], [0, 0, 1, 1], [], []>} : vector<16x256xf32>, vector<256x256xf32>, vector<16x256xf32> -> vector<16x256xf32>
    %c0_3 = arith.constant 0 : index
    %c0_4 = arith.constant 0 : index
    %3 = vector.load %arg5[%c0_3, %c0_4] : memref<1x256xf32, #tpu.memory_space<vmem>>, vector<1x256xf32>
    %4 = vector.broadcast %3 : vector<1x256xf32> to vector<16x256xf32>
    %5 = arith.addf %2, %4 : vector<16x256xf32>
    %c0_5 = arith.constant 0 : index
    %c0_6 = arith.constant 0 : index
    %6 = vector.load %arg6[%c0_5, %c0_6] : memref<16x256xf32, #tpu.memory_space<vmem>>, vector<16x256xf32>
    %7 = arith.addf %5, %6 : vector<16x256xf32>
    %c0_7 = arith.constant 0 : index
    %c0_8 = arith.constant 0 : index
    %8 = vector.load %arg7[%c0_7, %c0_8] : memref<16x256xf32, #tpu.memory_space<vmem>>, vector<16x256xf32>
    tpu.vector_store %arg7[%c0_7, %c0_8], %7 {strides = array<i32>} : memref<16x256xf32, #tpu.memory_space<vmem>>, vector<16x256xf32>,
    return
  }
  func.func @transform_0(%arg0: i32, %arg1: i32, %arg2: i32) -> (i32, i32) {
    %c0_i32 = arith.constant 0 : i32
    return %arg0, %arg2 : i32, i32
  }
  func.func @transform_1(%arg0: i32, %arg1: i32, %arg2: i32) -> (i32, i32) {
    %c0_i32 = arith.constant 0 : i32
    return %arg2, %arg1 : i32, i32
  }
  func.func @transform_2(%arg0: i32, %arg1: i32, %arg2: i32) -> (i32, i32) {
    %c0_i32 = arith.constant 0 : i32
    %c0_i32_0 = arith.constant 0 : i32
    return %c0_i32, %arg1 : i32, i32
  }
  func.func @transform_3(%arg0: i32, %arg1: i32, %arg2: i32) -> (i32, i32) {
    %c0_i32 = arith.constant 0 : i32
    return %arg0, %arg1 : i32, i32
  }
  func.func @transform_4(%arg0: i32, %arg1: i32, %arg2: i32) -> (i32, i32) {
    %c0_i32 = arith.constant 0 : i32
    return %arg0, %arg1 : i32, i32
  }
}

module attributes {stable_mosaic.version = 11 : i64} {
  func.func @kernel(%arg0: i32, %arg1: i32, %arg2: i32, %arg3: memref<16x256xf32, #tpu.memory_space<vmem>>, %arg4: memref<256x256xf32, #tpu.memory_space<vmem>>, %arg5: memref<1x256xf32, #tpu.memory_space<vmem>>, %arg6: memref<1x256xf32, #tpu.memory_space<vmem>>, %arg7: memref<1x256xf32, #tpu.memory_space<vmem>>, %arg8: memref<16x256xf32, #tpu.memory_space<vmem>>) attributes {dimension_semantics = [#tpu.dimension_semantics<parallel>, #tpu.dimension_semantics<parallel>, #tpu.dimension_semantics<arbitrary>], iteration_bounds = array<i64: 1, 3, 1>, scalar_prefetch = 0 : i64, scratch_operands = 0 : i64, tpu.core_type = #tpu.core_type<tc>, window_params = [{transform_indices = @transform_0, window_bounds = array<i64: 16, 256>}, {transform_indices = @transform_1, window_bounds = array<i64: 256, 256>}, {transform_indices = @transform_2, window_bounds = array<i64: 1, 256>}, {pipeline_mode = #tpu.pipeline_mode<synchronous>, transform_indices = @transform_3, window_bounds = array<i64: 1, 256>}, {pipeline_mode = #tpu.pipeline_mode<synchronous>, transform_indices = @transform_4, window_bounds = array<i64: 1, 256>}, {transform_indices = @transform_5, window_bounds = array<i64: 16, 256>}]} {
    %c0 = arith.constant 0 : index
    %c0_0 = arith.constant 0 : index
    %0 = vector.load %arg3[%c0, %c0_0] : memref<16x256xf32, #tpu.memory_space<vmem>>, vector<16x256xf32>
    %cst = arith.constant dense<0.000000e+00> : vector<16xf32>
    %1 = vector.multi_reduction <add>, %0, %cst [1] : vector<16x256xf32> to vector<16xf32>
    %2 = vector.shape_cast %1 : vector<16xf32> to vector<16x1xf32>
    %cst_1 = arith.constant 2.560000e+02 : f32
    %3 = vector.broadcast %cst_1 : f32 to vector<16x1xf32>
    %4 = arith.divf %2, %3 : vector<16x1xf32>
    %5 = vector.broadcast %4 : vector<16x1xf32> to vector<16x256xf32>
    %6 = arith.subf %0, %5 : vector<16x256xf32>
    %7 = arith.mulf %6, %6 : vector<16x256xf32>
    %cst_2 = arith.constant dense<0.000000e+00> : vector<16xf32>
    %8 = vector.multi_reduction <add>, %7, %cst_2 [1] : vector<16x256xf32> to vector<16xf32>
    %9 = vector.shape_cast %8 : vector<16xf32> to vector<16x1xf32>
    %cst_3 = arith.constant 2.560000e+02 : f32
    %10 = vector.broadcast %cst_3 : f32 to vector<16x1xf32>
    %11 = arith.divf %9, %10 : vector<16x1xf32>
    %cst_4 = arith.constant 9.99999974E-6 : f32
    %12 = vector.broadcast %cst_4 : f32 to vector<16x1xf32>
    %13 = arith.addf %11, %12 : vector<16x1xf32>
    %14 = math.rsqrt %13 : vector<16x1xf32>
    %15 = vector.broadcast %14 : vector<16x1xf32> to vector<16x256xf32>
    %16 = arith.mulf %6, %15 : vector<16x256xf32>
    %c0_5 = arith.constant 0 : index
    %c0_6 = arith.constant 0 : index
    %17 = vector.load %arg6[%c0_5, %c0_6] : memref<1x256xf32, #tpu.memory_space<vmem>>, vector<1x256xf32>
    %18 = vector.broadcast %17 : vector<1x256xf32> to vector<16x256xf32>
    %19 = arith.mulf %16, %18 : vector<16x256xf32>
    %c0_7 = arith.constant 0 : index
    %c0_8 = arith.constant 0 : index
    %20 = vector.load %arg7[%c0_7, %c0_8] : memref<1x256xf32, #tpu.memory_space<vmem>>, vector<1x256xf32>
    %21 = vector.broadcast %20 : vector<1x256xf32> to vector<16x256xf32>
    %22 = arith.addf %19, %21 : vector<16x256xf32>
    %c0_9 = arith.constant 0 : index
    %c0_10 = arith.constant 0 : index
    %23 = vector.load %arg4[%c0_9, %c0_10] : memref<256x256xf32, #tpu.memory_space<vmem>>, vector<256x256xf32>
    %cst_11 = arith.constant dense<0.000000e+00> : vector<16x256xf32>
    %24 = tpu.matmul %22, %23, %cst_11 {dimension_numbers = #tpu.dot_dimension_numbers<[1], [0], [0], [1], [0, 0, 1, 1], [], []>} : vector<16x256xf32>, vector<256x256xf32>, vector<16x256xf32> -> vector<16x256xf32>
    %c0_12 = arith.constant 0 : index
    %c0_13 = arith.constant 0 : index
    %25 = vector.load %arg5[%c0_12, %c0_13] : memref<1x256xf32, #tpu.memory_space<vmem>>, vector<1x256xf32>
    %26 = vector.broadcast %25 : vector<1x256xf32> to vector<16x256xf32>
    %27 = arith.addf %24, %26 : vector<16x256xf32>
    %c0_14 = arith.constant 0 : index
    %c0_15 = arith.constant 0 : index
    %28 = vector.load %arg8[%c0_14, %c0_15] : memref<16x256xf32, #tpu.memory_space<vmem>>, vector<16x256xf32>
    tpu.vector_store %arg8[%c0_14, %c0_15], %27 {strides = array<i32>} : memref<16x256xf32, #tpu.memory_space<vmem>>, vector<16x256xf32>,
    return
  }
  func.func @transform_0(%arg0: i32, %arg1: i32, %arg2: i32) -> (i32, i32) {
    %c0_i32 = arith.constant 0 : i32
    return %arg0, %arg2 : i32, i32
  }
  func.func @transform_1(%arg0: i32, %arg1: i32, %arg2: i32) -> (i32, i32) {
    %c0_i32 = arith.constant 0 : i32
    return %arg2, %arg1 : i32, i32
  }
  func.func @transform_2(%arg0: i32, %arg1: i32, %arg2: i32) -> (i32, i32) {
    %c0_i32 = arith.constant 0 : i32
    %c0_i32_0 = arith.constant 0 : i32
    return %c0_i32, %arg1 : i32, i32
  }
  func.func @transform_3(%arg0: i32, %arg1: i32, %arg2: i32) -> (i32, i32) {
    %c0_i32 = arith.constant 0 : i32
    %c0_i32_0 = arith.constant 0 : i32
    %c0_i32_1 = arith.constant 0 : i32
    return %c0_i32, %c0_i32_0 : i32, i32
  }
  func.func @transform_4(%arg0: i32, %arg1: i32, %arg2: i32) -> (i32, i32) {
    %c0_i32 = arith.constant 0 : i32
    %c0_i32_0 = arith.constant 0 : i32
    %c0_i32_1 = arith.constant 0 : i32
    return %c0_i32, %c0_i32_0 : i32, i32
  }
  func.func @transform_5(%arg0: i32, %arg1: i32, %arg2: i32) -> (i32, i32) {
    %c0_i32 = arith.constant 0 : i32
    return %arg0, %arg1 : i32, i32
  }
}

module attributes {stable_mosaic.version = 11 : i64} {
  func.func @kernel(%arg0: i32, %arg1: i32, %arg2: i32, %arg3: memref<16x256xf32, #tpu.memory_space<vmem>>, %arg4: memref<256x256xf32, #tpu.memory_space<vmem>>, %arg5: memref<1x256xf32, #tpu.memory_space<vmem>>, %arg6: memref<1x256xf32, #tpu.memory_space<vmem>>, %arg7: memref<1x256xf32, #tpu.memory_space<vmem>>, %arg8: memref<16x256xf32, #tpu.memory_space<vmem>>) attributes {dimension_semantics = [#tpu.dimension_semantics<parallel>, #tpu.dimension_semantics<parallel>, #tpu.dimension_semantics<arbitrary>], iteration_bounds = array<i64: 1, 2, 1>, scalar_prefetch = 0 : i64, scratch_operands = 0 : i64, tpu.core_type = #tpu.core_type<tc>, window_params = [{transform_indices = @transform_0, window_bounds = array<i64: 16, 256>}, {transform_indices = @transform_1, window_bounds = array<i64: 256, 256>}, {transform_indices = @transform_2, window_bounds = array<i64: 1, 256>}, {pipeline_mode = #tpu.pipeline_mode<synchronous>, transform_indices = @transform_3, window_bounds = array<i64: 1, 256>}, {pipeline_mode = #tpu.pipeline_mode<synchronous>, transform_indices = @transform_4, window_bounds = array<i64: 1, 256>}, {transform_indices = @transform_5, window_bounds = array<i64: 16, 256>}]} {
    %c0 = arith.constant 0 : index
    %c0_0 = arith.constant 0 : index
    %0 = vector.load %arg3[%c0, %c0_0] : memref<16x256xf32, #tpu.memory_space<vmem>>, vector<16x256xf32>
    %cst = arith.constant dense<0.000000e+00> : vector<16xf32>
    %1 = vector.multi_reduction <add>, %0, %cst [1] : vector<16x256xf32> to vector<16xf32>
    %2 = vector.shape_cast %1 : vector<16xf32> to vector<16x1xf32>
    %cst_1 = arith.constant 2.560000e+02 : f32
    %3 = vector.broadcast %cst_1 : f32 to vector<16x1xf32>
    %4 = arith.divf %2, %3 : vector<16x1xf32>
    %5 = vector.broadcast %4 : vector<16x1xf32> to vector<16x256xf32>
    %6 = arith.subf %0, %5 : vector<16x256xf32>
    %7 = arith.mulf %6, %6 : vector<16x256xf32>
    %cst_2 = arith.constant dense<0.000000e+00> : vector<16xf32>
    %8 = vector.multi_reduction <add>, %7, %cst_2 [1] : vector<16x256xf32> to vector<16xf32>
    %9 = vector.shape_cast %8 : vector<16xf32> to vector<16x1xf32>
    %cst_3 = arith.constant 2.560000e+02 : f32
    %10 = vector.broadcast %cst_3 : f32 to vector<16x1xf32>
    %11 = arith.divf %9, %10 : vector<16x1xf32>
    %cst_4 = arith.constant 9.99999974E-6 : f32
    %12 = vector.broadcast %cst_4 : f32 to vector<16x1xf32>
    %13 = arith.addf %11, %12 : vector<16x1xf32>
    %14 = math.rsqrt %13 : vector<16x1xf32>
    %15 = vector.broadcast %14 : vector<16x1xf32> to vector<16x256xf32>
    %16 = arith.mulf %6, %15 : vector<16x256xf32>
    %c0_5 = arith.constant 0 : index
    %c0_6 = arith.constant 0 : index
    %17 = vector.load %arg6[%c0_5, %c0_6] : memref<1x256xf32, #tpu.memory_space<vmem>>, vector<1x256xf32>
    %18 = vector.broadcast %17 : vector<1x256xf32> to vector<16x256xf32>
    %19 = arith.mulf %16, %18 : vector<16x256xf32>
    %c0_7 = arith.constant 0 : index
    %c0_8 = arith.constant 0 : index
    %20 = vector.load %arg7[%c0_7, %c0_8] : memref<1x256xf32, #tpu.memory_space<vmem>>, vector<1x256xf32>
    %21 = vector.broadcast %20 : vector<1x256xf32> to vector<16x256xf32>
    %22 = arith.addf %19, %21 : vector<16x256xf32>
    %c0_9 = arith.constant 0 : index
    %c0_10 = arith.constant 0 : index
    %23 = vector.load %arg4[%c0_9, %c0_10] : memref<256x256xf32, #tpu.memory_space<vmem>>, vector<256x256xf32>
    %cst_11 = arith.constant dense<0.000000e+00> : vector<16x256xf32>
    %24 = tpu.matmul %22, %23, %cst_11 {dimension_numbers = #tpu.dot_dimension_numbers<[1], [0], [0], [1], [0, 0, 1, 1], [], []>} : vector<16x256xf32>, vector<256x256xf32>, vector<16x256xf32> -> vector<16x256xf32>
    %c0_12 = arith.constant 0 : index
    %c0_13 = arith.constant 0 : index
    %25 = vector.load %arg5[%c0_12, %c0_13] : memref<1x256xf32, #tpu.memory_space<vmem>>, vector<1x256xf32>
    %26 = vector.broadcast %25 : vector<1x256xf32> to vector<16x256xf32>
    %27 = arith.addf %24, %26 : vector<16x256xf32>
    %cst_14 = arith.constant 5.000000e-01 : f32
    %28 = vector.broadcast %cst_14 : f32 to vector<16x256xf32>
    %29 = arith.mulf %28, %27 : vector<16x256xf32>
    %cst_15 = arith.constant 0.707106769 : f32
    %30 = vector.broadcast %cst_15 : f32 to vector<16x256xf32>
    %31 = arith.mulf %27, %30 : vector<16x256xf32>
    %32 = math.absf %31 : vector<16x256xf32>
    %cst_16 = arith.constant 0.327591091 : f32
    %33 = vector.broadcast %cst_16 : f32 to vector<16x256xf32>
    %34 = arith.mulf %33, %32 : vector<16x256xf32>
    %cst_17 = arith.constant 1.000000e+00 : f32
    %35 = vector.broadcast %cst_17 : f32 to vector<16x256xf32>
    %36 = arith.addf %35, %34 : vector<16x256xf32>
    %37 = tpu.reciprocal %36 {approx = true} : vector<16x256xf32> -> vector<16x256xf32>
    %cst_18 = arith.constant 1.06140542 : f32
    %38 = vector.broadcast %cst_18 : f32 to vector<16x256xf32>
    %39 = arith.mulf %38, %37 : vector<16x256xf32>
    %cst_19 = arith.constant -1.45315206 : f32
    %40 = vector.broadcast %cst_19 : f32 to vector<16x256xf32>
    %41 = arith.addf %39, %40 : vector<16x256xf32>
    %42 = arith.mulf %41, %37 : vector<16x256xf32>
    %cst_20 = arith.constant 1.42141378 : f32
    %43 = vector.broadcast %cst_20 : f32 to vector<16x256xf32>
    %44 = arith.addf %42, %43 : vector<16x256xf32>
    %45 = arith.mulf %44, %37 : vector<16x256xf32>
    %cst_21 = arith.constant -0.284496725 : f32
    %46 = vector.broadcast %cst_21 : f32 to vector<16x256xf32>
    %47 = arith.addf %45, %46 : vector<16x256xf32>
    %48 = arith.mulf %47, %37 : vector<16x256xf32>
    %cst_22 = arith.constant 0.254829586 : f32
    %49 = vector.broadcast %cst_22 : f32 to vector<16x256xf32>
    %50 = arith.addf %48, %49 : vector<16x256xf32>
    %51 = arith.mulf %50, %37 : vector<16x256xf32>
    %cst_23 = arith.constant 0.000000e+00 : f32
    %52 = vector.broadcast %cst_23 : f32 to vector<16x256xf32>
    %53 = arith.subf %52, %32 : vector<16x256xf32>
    %54 = arith.mulf %53, %32 : vector<16x256xf32>
    %55 = math.exp %54 : vector<16x256xf32>
    %56 = arith.mulf %51, %55 : vector<16x256xf32>
    %cst_24 = arith.constant 1.000000e+00 : f32
    %57 = vector.broadcast %cst_24 : f32 to vector<16x256xf32>
    %58 = arith.subf %57, %56 : vector<16x256xf32>
    %cst_25 = arith.constant 0.000000e+00 : f32
    %59 = vector.broadcast %cst_25 : f32 to vector<16x256xf32>
    %60 = arith.cmpf oge, %31, %59 : vector<16x256xf32>
    %cst_26 = arith.constant 0.000000e+00 : f32
    %61 = vector.broadcast %cst_26 : f32 to vector<16x256xf32>
    %62 = arith.subf %61, %58 : vector<16x256xf32>
    %63 = arith.select %60, %58, %62 : vector<16x256xi1>, vector<16x256xf32>
    %cst_27 = arith.constant 1.000000e+00 : f32
    %64 = vector.broadcast %cst_27 : f32 to vector<16x256xf32>
    %65 = arith.addf %64, %63 : vector<16x256xf32>
    %66 = arith.mulf %29, %65 : vector<16x256xf32>
    %c0_28 = arith.constant 0 : index
    %c0_29 = arith.constant 0 : index
    %67 = vector.load %arg8[%c0_28, %c0_29] : memref<16x256xf32, #tpu.memory_space<vmem>>, vector<16x256xf32>
    tpu.vector_store %arg8[%c0_28, %c0_29], %66 {strides = array<i32>} : memref<16x256xf32, #tpu.memory_space<vmem>>, vector<16x256xf32>,
    return
  }
  func.func @transform_0(%arg0: i32, %arg1: i32, %arg2: i32) -> (i32, i32) {
    %c0_i32 = arith.constant 0 : i32
    return %arg0, %arg2 : i32, i32
  }
  func.func @transform_1(%arg0: i32, %arg1: i32, %arg2: i32) -> (i32, i32) {
    %c0_i32 = arith.constant 0 : i32
    return %arg2, %arg1 : i32, i32
  }
  func.func @transform_2(%arg0: i32, %arg1: i32, %arg2: i32) -> (i32, i32) {
    %c0_i32 = arith.constant 0 : i32
    %c0_i32_0 = arith.constant 0 : i32
    return %c0_i32, %arg1 : i32, i32
  }
  func.func @transform_3(%arg0: i32, %arg1: i32, %arg2: i32) -> (i32, i32) {
    %c0_i32 = arith.constant 0 : i32
    %c0_i32_0 = arith.constant 0 : i32
    %c0_i32_1 = arith.constant 0 : i32
    return %c0_i32, %c0_i32_0 : i32, i32
  }
  func.func @transform_4(%arg0: i32, %arg1: i32, %arg2: i32) -> (i32, i32) {
    %c0_i32 = arith.constant 0 : i32
    %c0_i32_0 = arith.constant 0 : i32
    %c0_i32_1 = arith.constant 0 : i32
    return %c0_i32, %c0_i32_0 : i32, i32
  }
  func.func @transform_5(%arg0: i32, %arg1: i32, %arg2: i32) -> (i32, i32) {
    %c0_i32 = arith.constant 0 : i32
    return %arg0, %arg1 : i32, i32
  }
}

module attributes {stable_mosaic.version = 11 : i64} {
  func.func @kernel(%arg0: i32, %arg1: i32, %arg2: i32, %arg3: memref<16x512xf32, #tpu.memory_space<vmem>>, %arg4: memref<512x256xf32, #tpu.memory_space<vmem>>, %arg5: memref<1x256xf32, #tpu.memory_space<vmem>>, %arg6: memref<16x256xf32, #tpu.memory_space<vmem>>, %arg7: memref<16x256xf32, #tpu.memory_space<vmem>>) attributes {dimension_semantics = [#tpu.dimension_semantics<parallel>, #tpu.dimension_semantics<parallel>, #tpu.dimension_semantics<arbitrary>], iteration_bounds = array<i64: 1, 1, 1>, scalar_prefetch = 0 : i64, scratch_operands = 0 : i64, tpu.core_type = #tpu.core_type<tc>, window_params = [{transform_indices = @transform_0, window_bounds = array<i64: 16, 512>}, {transform_indices = @transform_1, window_bounds = array<i64: 512, 256>}, {transform_indices = @transform_2, window_bounds = array<i64: 1, 256>}, {transform_indices = @transform_3, window_bounds = array<i64: 16, 256>}, {transform_indices = @transform_4, window_bounds = array<i64: 16, 256>}]} {
    %c0 = arith.constant 0 : index
    %c0_0 = arith.constant 0 : index
    %0 = vector.load %arg3[%c0, %c0_0] : memref<16x512xf32, #tpu.memory_space<vmem>>, vector<16x512xf32>
    %c0_1 = arith.constant 0 : index
    %c0_2 = arith.constant 0 : index
    %1 = vector.load %arg4[%c0_1, %c0_2] : memref<512x256xf32, #tpu.memory_space<vmem>>, vector<512x256xf32>
    %cst = arith.constant dense<0.000000e+00> : vector<16x256xf32>
    %2 = tpu.matmul %0, %1, %cst {dimension_numbers = #tpu.dot_dimension_numbers<[1], [0], [0], [1], [0, 0, 1, 1], [], []>} : vector<16x512xf32>, vector<512x256xf32>, vector<16x256xf32> -> vector<16x256xf32>
    %c0_3 = arith.constant 0 : index
    %c0_4 = arith.constant 0 : index
    %3 = vector.load %arg5[%c0_3, %c0_4] : memref<1x256xf32, #tpu.memory_space<vmem>>, vector<1x256xf32>
    %4 = vector.broadcast %3 : vector<1x256xf32> to vector<16x256xf32>
    %5 = arith.addf %2, %4 : vector<16x256xf32>
    %c0_5 = arith.constant 0 : index
    %c0_6 = arith.constant 0 : index
    %6 = vector.load %arg6[%c0_5, %c0_6] : memref<16x256xf32, #tpu.memory_space<vmem>>, vector<16x256xf32>
    %7 = arith.addf %5, %6 : vector<16x256xf32>
    %c0_7 = arith.constant 0 : index
    %c0_8 = arith.constant 0 : index
    %8 = vector.load %arg7[%c0_7, %c0_8] : memref<16x256xf32, #tpu.memory_space<vmem>>, vector<16x256xf32>
    tpu.vector_store %arg7[%c0_7, %c0_8], %7 {strides = array<i32>} : memref<16x256xf32, #tpu.memory_space<vmem>>, vector<16x256xf32>,
    return
  }
  func.func @transform_0(%arg0: i32, %arg1: i32, %arg2: i32) -> (i32, i32) {
    %c0_i32 = arith.constant 0 : i32
    return %arg0, %arg2 : i32, i32
  }
  func.func @transform_1(%arg0: i32, %arg1: i32, %arg2: i32) -> (i32, i32) {
    %c0_i32 = arith.constant 0 : i32
    return %arg2, %arg1 : i32, i32
  }
  func.func @transform_2(%arg0: i32, %arg1: i32, %arg2: i32) -> (i32, i32) {
    %c0_i32 = arith.constant 0 : i32
    %c0_i32_0 = arith.constant 0 : i32
    return %c0_i32, %arg1 : i32, i32
  }
  func.func @transform_3(%arg0: i32, %arg1: i32, %arg2: i32) -> (i32, i32) {
    %c0_i32 = arith.constant 0 : i32
    return %arg0, %arg1 : i32, i32
  }
  func.func @transform_4(%arg0: i32, %arg1: i32, %arg2: i32) -> (i32, i32) {
    %c0_i32 = arith.constant 0 : i32
    return %arg0, %arg1 : i32, i32
  }
}

</mosaic_0001>

<bundles_post_ra>
// kernel: transformer_block.5
= control target key start
LH: loop header
LB: loop body
LE: loop exit
PB: predicated region body
PF: predicated region fallthrough
CT: control target
= control target key end

     0   :  { %10 = vsyncpa [#allocation3], 0  ;;  %s1253_s0 = inlined_call_operand.vmem [shape: f32[16,256], index: 0, kind: input, shape index: {}]   ;;  %s1254_s1 = inlined_call_operand.hbm [shape: f32[256,768], index: 1, kind: input, shape index: {}]   ;;  %s1255_s2 = inlined_call_operand.vmem [shape: f32[1,768], index: 2, kind: input, shape index: {}]   ;;  %s1256_s3 = inlined_call_operand.vmem [shape: f32[1,256], index: 3, kind: input, shape index: {}]   ;;  %s1257_s4 = inlined_call_operand.vmem [shape: f32[1,256], index: 4, kind: input, shape index: {}]   ;;  %s1258_s5 = inlined_call_operand.vmem [shape: f32[16,768], index: 5, kind: output, shape index: {}]  }
   0x1   :  { %12 = vsyncpa [#allocation3 + $0x1], 0  ;;  %s993_s18 = smov 0   ;;  %s995_s19 = smov 0  }
   0x2   :  { %s997_s20 = smov 0   ;;  %s999_s21 = smov 0  }
   0x3   :  { %s1001_s22 = smov 0   ;;  %s1003_s23 = smov 0  }
   0x4 LB: > { %s700_s24 = sadd.s32 4294967295, %s957_s23   ;;  %s33_s25 = sadd.s32 1, %s953_s22  ;;  %s957_s23 = sphi %s1003_s23, %s18_s23   ;;  %s953_s22 = sphi %s1001_s22, %s1269_s22   ;;  %s949_s21 = sphi %s999_s21, %s1268_s21   ;;  %s945_s20 = sphi %s997_s20, %s1267_s20   ;;  %s941_s19 = sphi %s995_s19, %s1266_s19   ;;  %s937_s18 = sphi %s993_s18, %s1265_s18  }
   0x5   : > { %p35_p0 = scmp.ge.s32.totalorder %s33_s25, 3  ;;  %s74_s26 = sadd.s32 1, %s945_s20 }
   0x6   : > { %p81_p1 = scmp.ne.s32.totalorder %s945_s20, %s941_s19  ;;  %p82_p2 = scmp.eq.s32.totalorder %s957_s23, 0 }
   0x7   : > { %s1271_s25 = smov (%p35_p0, %s33_s25), 0  ;;  %p87_p4 = scmp.ne.s32.totalorder %s941_s19, %s937_s18 }
   0x8   : > { %p1029_p3 = por %p82_p2, %p81_p1  ;;  %s70_s28 = ssub.s32 %s953_s22, %s1271_s25 }
   0x9   : > { %p88_p5 = scmp.eq.s32.totalorder %s700_s24, 0  ;;  %p72_p6 = scmp.eq.s32.totalorder %s70_s28, 0 }
   0xa   : > { %p181_p7 = scmp.eq.s32.totalorder %s700_s24, 2  ;;  %p821_p10 = scmp.lt.s32.totalorder %s957_s23, 3 }
   0xb   : > { %p1036_p8 = por %p88_p5, %p87_p4  ;;  %s228_s7 = sand.u32 1, %s945_s20  }
   0xc   : > { %s1041_s30 = scalar_select %p72_p6, %s945_s20, %s74_s26  }
   0xd   : > { %p1043_p9 = por %p181_p7, %p81_p1  ;;  %s717_s8 = sshll.u32 %s953_s22, 8 }
   0xe   : > { %s705_s9 = sshll.u32 %s228_s7, 9  ;;  %s1053_s12 = scalar_lea.hbm %s1254_s1, %s717_s8 }
   0xf   : > { %s1261_s6 = scalar_select %p1043_p9, 1, 0 }
  0x10   : > { %s232_s13 = scalar_lea.vmem [#allocation2], %s705_s9  ;;  %p1057_p11 = pnand %p821_p10, %p1029_p3 }
  0x11   : > { %s242_s14 = sshll.u32 %s232_s13, 4  ;;  %s1064_s16 = scalar_lea.sflag [#allocation3], %s228_s7  ;;  %s1061_s14 = int_to_ptr.vmem [resolvable:$true] %s242_s14 }
  0x12   : > { %s877_s17 = scalar_lea.hbm %s1053_s12, 8192  ;;  %p879_p0 = pneg %p1057_p11 }
  0x13   : > { %p878_p13 = scmp.ne.s32.totalorder %s1053_s12, %s877_s17  ;;  %s882_s26 = scalar_lea.hbm %s1254_s1, 24576 }
  0x14   : > { %p883_p3 = scmp.lt.u32.totalorder %s1053_s12, %s1254_s1  ;;  %p884_p4 = scmp.lt.u32.totalorder %s882_s26, %s877_s17 }
  0x15   : > { %p880_p1 = pnand %p879_p0, %p878_p13  ;;  %p886_p6 = scmp.lt.u32.totalorder %s877_s17, %s1053_s12 }
  0x16   : > { %p885_p5 = por %p884_p4, %p883_p3 }
  0x17   : > { %p881_p2 = pneg %p880_p1 }
  0x18   : > { %p887_p7 = por %p886_p6, %p885_p5 }
  0x1a   : > { %p888_p10 = pnand %p887_p7, %p881_p2 }
  0x1c   : > { %891 = shalt.err (!%p888_p10)
}
  0x1d   : > { %s892_s7 = scalar_lea.vmem %s1061_s14, 8192  ;;  %s959_s8 = smov [#allocation2]  }
  0x1e   : > { %p893_p13 = scmp.ne.s32.totalorder %s1061_s14, %s892_s7  ;;  %s897_s9 = sshll.u32 %s959_s8, 4  ;;  %s898_s9 = int_to_ptr.vmem [resolvable:$false] %s897_s9 }
  0x1f   : > { %s899_s10 = scalar_lea.vmem %s898_s9, 16384  ;;  %p900_p9 = scmp.lt.s32.totalorder %s1061_s14, %s898_s9 }
  0x20   : > { %p895_p1 = pnand %p893_p13, %p879_p0  ;;  %p901_p3 = scmp.lt.s32.totalorder %s899_s10, %s892_s7 }
  0x22   : > { %p896_p12 = pneg %p895_p1  ;;  %p902_p4 = por %p901_p3, %p900_p9 }
  0x24   : > { %p903_p5 = pnand %p902_p4, %p896_p12 }
  0x26   : > { %906 = shalt.err (!%p903_p5)
}
  0x27   : > { %s960_s11 = smov 768   ;;  %s961_s13 = smov 256  }
  0x28   : > { %s962_s17 = smov 16   ;;  %p258_p0 = scmp.lt.s32.totalorder %s957_s23, 4 }
  0x29   : > { %820 = dma.hbm_to_vmem [thread:$0]  (!%p1057_p11), %s1053_s12, 8192, %s1061_s14, %s1064_s16, %s960_s11, %s961_s13, %s962_s17  }
  0x2a   : > { %p1263_p2 = scmp.ge.s32.totalorder %s957_s23, 1 }
  0x2c   : > { %p259_p6 = pnand %p1263_p2, %p258_p0 }
  0x2d   : > { %s1096_s18 = sand.u32 (!%p259_p6), 1, %s941_s19  }
  0x2e   : > { %262 = sbr.rel (%p259_p6) target bundleno = 599 (0x257), region = 40  ;;  %s709_s24 = sshll.u32 (!%p259_p6), %s1096_s18, 9 }
  0x2f   : > { %s265_s26 = scalar_lea.sflag (!%p259_p6), [#allocation3], %s1096_s18  ;;  %s1100_s27 = scalar_lea.vmem (!%p259_p6), [#allocation2], %s709_s24 }
  0x35   : > { %932 = dma.done.wait (%p1036_p8), %s265_s26, 8192  }
  0x36   : > { %934 = vsyncadd (%p1036_p8), %s265_s26, 4294959104  ;;  %v1109_v0 = vld [vmem:[%s1253_s0] sm:$0xff]  ;;  %v1114_v1 = vld [vmem:[%s1253_s0 + $0x8] sm:$0xff]  ;;  %s711_s17 = sshll.u32 %s949_s21, 1  ;;  %s710_s12 = sshll.u32 %s1096_s18, 5 }
  0x37   : > { %v1119_v2 = vld [vmem:[%s1253_s0 + $0x10] sm:$0xff]  ;;  %v333_v3 = vadd.f32 %v1114_v1, %v1109_v0  ;;  %v1126_v4 = vld [vmem:[%s1253_s0 + $0x18] sm:$0xff]  ;;  %v399_v6 = vld [vmem:[%s1100_s27 + $0x8] sm:$0xff]  ;;  %p323_p8 = scmp.lt.s32.totalorder %s711_s17, 5  ;;  %s307_s14 = scalar_lea.vmem [#allocation4], %s710_s12 }
  0x38   : > { %v336_v5 = vadd.f32 %v1126_v4, %v1119_v2  ;;  %v401_v7 = vld [vmem:[%s1100_s27 + $0x18] sm:$0xff]  ;;  %v398_v8 = vld [vmem:[%s1100_s27] sm:$0xff]  ;;  %v400_v10 = vld [vmem:[%s1100_s27 + $0x10] sm:$0xff]  ;;  %p1264_p9 = scmp.ne.s32.totalorder %s1261_s6, 0 }
  0x39   : > { %334 = vadd.xlane.f32.xlu0 %v333_v3  ;;  %v719_v9 = vpack.c.bf16 %v401_v7, %v399_v6  ;;  %v403_v11 = vld [vmem:[%s1100_s27 + $0x28] sm:$0xff]  ;;  %v405_v12 = vld [vmem:[%s1100_s27 + $0x38] sm:$0xff]  ;;  %v721_v13 = vpack.c.bf16 %v400_v10, %v398_v8  ;;  %v402_v15 = vld [vmem:[%s1100_s27 + $0x20] sm:$0xff]  ;;  %s1273_s17 = smov (!%p323_p8, %s711_s17), 5  ;;  %s718_s18 = sshll.u32 (%p1264_p9), %s949_s21, 4 }
  0x3a   : > { %v723_v14 = vpack.c.bf16 %v405_v12, %v403_v11  ;;  %v404_v16 = vld [vmem:[%s1100_s27 + $0x30] sm:$0xff]  ;;  %v407_v17 = vld [vmem:[%s1100_s27 + $0x48] sm:$0xff]  ;;  %v409_v18 = vld [vmem:[%s1100_s27 + $0x58] sm:$0xff]  ;;  %s567_s28 = scalar_lea.vmem (%p1264_p9), %s1258_s5, %s718_s18 }
  0x3b   : > { %720 = vmatprep.subr.bf16.mxu0 %v719_v9  ;;  %783 = vmatprep.subr.bf16.mxu1 %v719_v9  ;;  %v725_v19 = vpack.c.bf16 %v404_v16, %v402_v15  ;;  %v727_v20 = vpack.c.bf16 %v409_v18, %v407_v17  ;;  %v406_v21 = vld [vmem:[%s1100_s27 + $0x40] sm:$0xff]  ;;  %v408_v22 = vld [vmem:[%s1100_s27 + $0x50] sm:$0xff]  ;;  %v411_v23 = vld [vmem:[%s1100_s27 + $0x68] sm:$0xff] }
  0x3c   : > { %722 = vmatpush1.bf16.msra.mxu0 %v721_v13  ;;  %799 = vmatpush1.bf16.msra.mxu1 %v721_v13  ;;  %v413_v24 = vld [vmem:[%s1100_s27 + $0x78] sm:$0xff]  ;;  %v729_v25 = vpack.c.bf16 %v408_v22, %v406_v21  ;;  %v410_v27 = vld [vmem:[%s1100_s27 + $0x60] sm:$0xff]  ;;  %v412_v28 = vld [vmem:[%s1100_s27 + $0x70] sm:$0xff] }
  0x3d   : > { %337 = vadd.xlane.f32.xlu0 %v336_v5  ;;  %724 = vmatprep.subr.bf16.mxu0 %v723_v14  ;;  %v731_v26 = vpack.c.bf16 %v413_v24, %v411_v23  ;;  %v415_v29 = vld [vmem:[%s1100_s27 + $0x88] sm:$0xff]  ;;  %v417_v30 = vld [vmem:[%s1100_s27 + $0x98] sm:$0xff]  ;;  %v733_v31 = vpack.c.bf16 %v412_v28, %v410_v27  ;;  %v414_v33 = vld [vmem:[%s1100_s27 + $0x80] sm:$0xff] }
  0x3e   : > { %784 = vmatprep.subr.bf16.mxu1 %v723_v14  ;;  %v735_v32 = vpack.c.bf16 %v417_v30, %v415_v29  ;;  %v416_v34 = vld [vmem:[%s1100_s27 + $0x90] sm:$0xff]  ;;  %v419_v35 = vld [vmem:[%s1100_s27 + $0xa8] sm:$0xff]  ;;  %v421_v36 = vld [vmem:[%s1100_s27 + $0xb8] sm:$0xff] }
  0x3f   : > { %v737_v37 = vpack.c.bf16 %v416_v34, %v414_v33  ;;  %v739_v38 = vpack.c.bf16 %v421_v36, %v419_v35  ;;  %v418_v39 = vld [vmem:[%s1100_s27 + $0xa0] sm:$0xff]  ;;  %v420_v40 = vld [vmem:[%s1100_s27 + $0xb0] sm:$0xff]  ;;  %v423_v41 = vld [vmem:[%s1100_s27 + $0xc8] sm:$0xff] }
  0x40   : > { %726 = vmatpush1.bf16.msra.mxu0 %v725_v19  ;;  %800 = vmatpush1.bf16.msra.mxu1 %v725_v19  ;;  %v425_v42 = vld [vmem:[%s1100_s27 + $0xd8] sm:$0xff]  ;;  %v741_v43 = vpack.c.bf16 %v420_v40, %v418_v39  ;;  %v422_v45 = vld [vmem:[%s1100_s27 + $0xc0] sm:$0xff]  ;;  %v424_v46 = vld [vmem:[%s1100_s27 + $0xd0] sm:$0xff] }
  0x41   : > { %728 = vmatprep.subr.bf16.mxu0 %v727_v20  ;;  %785 = vmatprep.subr.bf16.mxu1 %v727_v20  ;;  %v743_v44 = vpack.c.bf16 %v425_v42, %v423_v41  ;;  %v427_v47 = vld [vmem:[%s1100_s27 + $0xe8] sm:$0xff]  ;;  %v429_v48 = vld [vmem:[%s1100_s27 + $0xf8] sm:$0xff]  ;;  %v745_v49 = vpack.c.bf16 %v424_v46, %v422_v45  ;;  %v426_v51 = vld [vmem:[%s1100_s27 + $0xe0] sm:$0xff] }
  0x42   : > { %v747_v50 = vpack.c.bf16 %v429_v48, %v427_v47  ;;  %v428_v52 = vld [vmem:[%s1100_s27 + $0xf0] sm:$0xff]  ;;  %v431_v53 = vld [vmem:[%s1100_s27 + $0x108] sm:$0xff]  ;;  %v433_v54 = vld [vmem:[%s1100_s27 + $0x118] sm:$0xff] }
  0x43   : > { %v749_v55 = vpack.c.bf16 %v428_v52, %v426_v51  ;;  %v751_v56 = vpack.c.bf16 %v433_v54, %v431_v53  ;;  %v430_v57 = vld [vmem:[%s1100_s27 + $0x100] sm:$0xff]  ;;  %v432_v58 = vld [vmem:[%s1100_s27 + $0x110] sm:$0xff]  ;;  %v435_v59 = vld [vmem:[%s1100_s27 + $0x128] sm:$0xff]  ;;  %v368_v54 = vlaneseq }
  0x44   : > { %730 = vmatpush1.bf16.msra.mxu0 %v729_v25  ;;  %801 = vmatpush1.bf16.msra.mxu1 %v729_v25  ;;  %v437_v60 = vld [vmem:[%s1100_s27 + $0x138] sm:$0xff]  ;;  %v753_v61 = vpack.c.bf16 %v432_v58, %v430_v57  ;;  %v434_v63 = vld [vmem:[%s1100_s27 + $0x120] sm:$0xff]  ;;  %v436_v3 = vld [vmem:[%s1100_s27 + $0x130] sm:$0xff] }
  0x45   : > { %732 = vmatprep.subr.bf16.mxu0 %v731_v26  ;;  %786 = vmatprep.subr.bf16.mxu1 %v731_v26  ;;  %v755_v62 = vpack.c.bf16 %v437_v60, %v435_v59  ;;  %v439_v5 = vld [vmem:[%s1100_s27 + $0x148] sm:$0xff]  ;;  %v441_v6 = vld [vmem:[%s1100_s27 + $0x158] sm:$0xff]  ;;  %v757_v7 = vpack.c.bf16 %v436_v3, %v434_v63  ;;  %v438_v9 = vld [vmem:[%s1100_s27 + $0x140] sm:$0xff]  ;;  %v369_v58 = vshrl.u32 %v368_v54, 7 }
  0x46   : > { %v759_v8 = vpack.c.bf16 %v441_v6, %v439_v5  ;;  %v440_v10 = vld [vmem:[%s1100_s27 + $0x150] sm:$0xff]  ;;  %v443_v24 = vld [vmem:[%s1100_s27 + $0x168] sm:$0xff]  ;;  %v442_v26 = vld [vmem:[%s1100_s27 + $0x160] sm:$0xff] }
  0x47   : > { %v761_v11 = vpack.c.bf16 %v440_v10, %v438_v9  ;;  %v447_v28 = vld [vmem:[%s1100_s27 + $0x188] sm:$0xff]  ;;  %v449_v29 = vld [vmem:[%s1100_s27 + $0x198] sm:$0xff]  ;;  %v454_v42 = vld [vmem:[%s1100_s27 + $0x1c0] sm:$0xff]  ;;  %v370_v60 = vsub.s32 0, %v369_v58 }
  0x48   : > { %734 = vmatpush1.bf16.msra.mxu0 %v733_v31  ;;  %802 = vmatpush1.bf16.msra.mxu1 %v733_v31  ;;  %v767_v30 = vpack.c.bf16 %v449_v29, %v447_v28  ;;  %v446_v31 = vld [vmem:[%s1100_s27 + $0x180] sm:$0xff]  ;;  %v451_v34 = vld [vmem:[%s1100_s27 + $0x1a8] sm:$0xff]  ;;  %v453_v35 = vld [vmem:[%s1100_s27 + $0x1b8] sm:$0xff] }
  0x49   : > { %736 = vmatprep.subr.bf16.mxu0 %v735_v32  ;;  %787 = vmatprep.subr.bf16.mxu1 %v735_v32  ;;  %v448_v32 = vld [vmem:[%s1100_s27 + $0x190] sm:$0xff]  ;;  %v771_v36 = vpack.c.bf16 %v453_v35, %v451_v34  ;;  %v455_v39 = vld [vmem:[%s1100_s27 + $0x1c8] sm:$0xff]  ;;  %v457_v41 = vld [vmem:[%s1100_s27 + $0x1d8] sm:$0xff] }
  0x4a   : > { %v769_v33 = vpack.c.bf16 %v448_v32, %v446_v31  ;;  %v459_v45 = vld [vmem:[%s1100_s27 + $0x1e8] sm:$0xff]  ;;  %v461_v46 = vld [vmem:[%s1100_s27 + $0x1f8] sm:$0xff]  ;;  %v382_v63 = vld [vmem:[%s1257_s4] sm:$0x3] }
  0x4b   : > { %v779_v48 = vpack.c.bf16 %v461_v46, %v459_v45 }
  0x4c   : > { %738 = vmatpush1.bf16.msra.mxu0 %v737_v37  ;;  %803 = vmatpush1.bf16.msra.mxu1 %v737_v37  ;;  %v450_v37 = vld [vmem:[%s1100_s27 + $0x1a0] sm:$0xff] }
  0x4d   : > { %740 = vmatprep.subr.bf16.mxu0 %v739_v38  ;;  %788 = vmatprep.subr.bf16.mxu1 %v739_v38  ;;  %v452_v38 = vld [vmem:[%s1100_s27 + $0x1b0] sm:$0xff] }
  0x4e   : > { %v773_v40 = vpack.c.bf16 %v452_v38, %v450_v37 }
  0x50   : > { %742 = vmatpush1.bf16.msra.mxu0 %v741_v43  ;;  %804 = vmatpush1.bf16.msra.mxu1 %v741_v43  ;;  %v456_v43 = vld [vmem:[%s1100_s27 + $0x1d0] sm:$0xff] }
  0x51   : > { %744 = vmatprep.subr.bf16.mxu0 %v743_v44  ;;  %789 = vmatprep.subr.bf16.mxu1 %v743_v44  ;;  %v775_v44 = vpack.c.bf16 %v457_v41, %v455_v39  ;;  %v777_v47 = vpack.c.bf16 %v456_v43, %v454_v42 }
  0x54   : > { %746 = vmatpush1.bf16.msra.mxu0 %v745_v49  ;;  %805 = vmatpush1.bf16.msra.mxu1 %v745_v49  ;;  %v458_v49 = vld [vmem:[%s1100_s27 + $0x1e0] sm:$0xff] }
  0x55   : > { %748 = vmatprep.subr.bf16.mxu0 %v747_v50  ;;  %790 = vmatprep.subr.bf16.mxu1 %v747_v50  ;;  %v460_v50 = vld [vmem:[%s1100_s27 + $0x1f0] sm:$0xff] }
  0x56   : > { %v781_v51 = vpack.c.bf16 %v460_v50, %v458_v49 }
  0x58   : > { %750 = vmatpush1.bf16.msra.mxu0 %v749_v55  ;;  %806 = vmatpush1.bf16.msra.mxu1 %v749_v55 }
  0x59   : > { %752 = vmatprep.subr.bf16.mxu0 %v751_v56  ;;  %791 = vmatprep.subr.bf16.mxu1 %v751_v56 }
  0x5c   : > { %754 = vmatpush1.bf16.msra.mxu0 %v753_v61  ;;  %807 = vmatpush1.bf16.msra.mxu1 %v753_v61  ;;  %v374_v61 = vsub.s32 1, %v369_v58 }
  0x5d   : > { %756 = vmatprep.subr.bf16.mxu0 %v755_v62  ;;  %792 = vmatprep.subr.bf16.mxu1 %v755_v62  ;;  %v366_v62 = vld [vmem:[%s1256_s3] sm:$0x3] }
  0x5e   : > { %v371_v3 = vrot.slane %v366_v62, %v370_v60  ;;  %v375_v5 = vrot.slane %v366_v62, %v374_v61  ;;  %v391_v9 = vrot.slane %v382_v63, %v374_v61 }
  0x60   : > { %758 = vmatpush1.bf16.msra.mxu0 %v757_v7  ;;  %808 = vmatpush1.bf16.msra.mxu1 %v757_v7 }
  0x61   : > { %760 = vmatprep.subr.bf16.mxu0 %v759_v8  ;;  %793 = vmatprep.subr.bf16.mxu1 %v759_v8  ;;  %v387_v8 = vrot.slane %v382_v63, %v370_v60 }
  0x64   : > { %762 = vmatpush1.bf16.msra.mxu0 %v761_v11  ;;  %809 = vmatpush1.bf16.msra.mxu1 %v761_v11 }
  0xc6   : > { %v335_v12 = vpop.xlane.xlu0 %334 }
  0xc7   : > { %v340_v13 = vmul.f32 0.00390625, %v335_v12 }
  0xc9   : > { %v1175_v14 = vsub.f32 %v1109_v0, %v340_v13  ;;  %v1178_v15 = vsub.f32 %v1114_v1, %v340_v13 }
  0xca   : > { %v338_v16 = vpop.xlane.xlu0 %337 }
  0xcb   : > { %v341_v17 = vmul.f32 0.00390625, %v338_v16  ;;  %v346_v18 = vmul.f32 %v1175_v14, %v1175_v14  ;;  %v347_v19 = vmul.f32 %v1178_v15, %v1178_v15 }
  0xcd   : > { %v1185_v20 = vsub.f32 %v1119_v2, %v341_v17  ;;  %v1188_v21 = vsub.f32 %v1126_v4, %v341_v17  ;;  %v350_v0 = vadd.f32 %v347_v19, %v346_v18  ;;  %v445_v2 = vld [vmem:[%s1100_s27 + $0x178] sm:$0xff]  ;;  %v444_v4 = vld [vmem:[%s1100_s27 + $0x170] sm:$0xff]  ;;  %s325_s27 = scalar_lea.vmem %s1255_s2, %s1273_s17 }
  0xce   : > { %v763_v25 = vpack.c.bf16 %v445_v2, %v443_v24  ;;  %v765_v27 = vpack.c.bf16 %v444_v4, %v442_v26 }
  0xcf   : > { %351 = vadd.xlane.f32.xlu1 %v350_v0  ;;  %v348_v1 = vmul.f32 %v1185_v20, %v1185_v20  ;;  %v349_v22 = vmul.f32 %v1188_v21, %v1188_v21 }
  0xd0   : > { %764 = vmatprep.subr.bf16.mxu0 %v763_v25  ;;  %794 = vmatprep.subr.bf16.mxu1 %v763_v25 }
  0xd1   : > { %v353_v23 = vadd.f32 %v349_v22, %v348_v1  ;;  %766 = vmatpush1.bf16.msra.mxu0 %v765_v27  ;;  %810 = vmatpush1.bf16.msra.mxu1 %v765_v27 }
  0xd2   : > { %768 = vmatprep.subr.bf16.mxu0 %v767_v30  ;;  %795 = vmatprep.subr.bf16.mxu1 %v767_v30 }
  0xd3   : > { %354 = vadd.xlane.f32.xlu1 %v353_v23 }
  0xd5   : > { %770 = vmatpush1.bf16.msra.mxu0 %v769_v33  ;;  %811 = vmatpush1.bf16.msra.mxu1 %v769_v33 }
  0xd6   : > { %772 = vmatprep.subr.bf16.mxu0 %v771_v36  ;;  %796 = vmatprep.subr.bf16.mxu1 %v771_v36 }
  0xd9   : > { %774 = vmatpush1.bf16.msra.mxu0 %v773_v40  ;;  %812 = vmatpush1.bf16.msra.mxu1 %v773_v40 }
  0xda   : > { %776 = vmatprep.subr.bf16.mxu0 %v775_v44  ;;  %797 = vmatprep.subr.bf16.mxu1 %v775_v44 }
  0xdd   : > { %778 = vmatpush1.bf16.msra.mxu0 %v777_v47  ;;  %813 = vmatpush1.bf16.msra.mxu1 %v777_v47 }
  0xde   : > { %780 = vmatprep.subr.bf16.mxu0 %v779_v48  ;;  %798 = vmatprep.subr.bf16.mxu1 %v779_v48 }
  0xe1   : > { %782 = vmatpush1.bf16.msra.mxu0 %v781_v51  ;;  %814 = vmatpush1.bf16.msra.mxu1 %v781_v51 }
 0x15c   : > { %v352_v52 = vpop.xlane.xlu1 %351 }
 0x15d   : > { %v356_v53 = vmul.f32 0.00390625, %v352_v52 }
 0x15f   : > { %v358_v55 = vadd.f32 1e-05, %v356_v53 }
 0x160   : > { %v355_v56 = vpop.xlane.xlu1 %354 }
 0x161   : > { %873 = vrsqrt.f32 %v358_v55  ;;  %v357_v57 = vmul.f32 0.00390625, %v355_v56 }
 0x163   : > { %v359_v59 = vadd.f32 1e-05, %v357_v57 }
 0x165   : > { %875 = vrsqrt.f32 %v359_v59 }
 0x16b   : > { %v874_v6 = vpop.eup %873 }
 0x16c   : > { %v363_v7 = vmul.f32 %v874_v6, %v1178_v15  ;;  %v362_v10 = vmul.f32 %v874_v6, %v1175_v14  ;;  %v462_v14 = vld [vmem:[%s325_s27] sm:$0x3] }
 0x16d   : > { %v471_v23 = vrot.slane %v462_v14, %v374_v61 }
 0x16e   : > { %v379_v11 = vmul.f32 %v375_v5, %v363_v7  ;;  %v378_v12 = vmul.f32 %v371_v3, %v362_v10 }
 0x16f   : > { %v876_v13 = vpop.eup %875 }
 0x170   : > { %v395_v16 = vadd.f32 %v391_v9, %v379_v11  ;;  %v394_v17 = vadd.f32 %v387_v8, %v378_v12  ;;  %v365_v18 = vmul.f32 %v876_v13, %v1188_v21  ;;  %v364_v19 = vmul.f32 %v876_v13, %v1185_v20 }
 0x171   : > { %v467_v21 = vrot.slane %v462_v14, %v370_v60 }
 0x172   : > { %538 = vmatprep.mubr.f32.mxu0 %v395_v16  ;;  %v381_v0 = vmul.f32 %v375_v5, %v365_v18  ;;  %v380_v1 = vmul.f32 %v371_v3, %v364_v19 }
 0x173   : > { %539 = vmatmul.mubr.f32.vlgmr.msra.gmra.mrb[0].mxu0 %v394_v17 }
 0x174   : > { %v397_v15 = vadd.f32 %v391_v9, %v381_v0  ;;  %v396_v22 = vadd.f32 %v387_v8, %v380_v1 }
 0x176   : > { %544 = vmatprep.mubr.f32.mxu1 %v397_v15 }
 0x177   : > { %545 = vmatmul.mubr.f32.vlgmr.msra.gmra.mrb[0].mxu1 %v396_v22 }
 0x246   : > { %v540_v20 = vpop.f32.mrb[0].mxu0 }
 0x247   : > { %v541_v24 = vadd.f32 %v540_v20, %v467_v21  ;;  %v542_v2 = vpop.f32.mrb[1].mxu0 }
 0x248   : > { %v543_v25 = vadd.f32 %v542_v2, %v471_v23  ;;  %561 = sbr.rel (!%p1264_p9) target bundleno = 599 (0x257), region = 48 }
 0x249   : > { %551 = vst [vmem:[%s307_s14] sm:$0xff] %v541_v24 }
 0x24a   : > { %552 = vst [vmem:[%s307_s14 + $0x8] sm:$0xff] %v543_v25  ;;  %v546_v26 = vpop.f32.mrb[0].mxu1 }
 0x24b   : > { %v547_v4 = vadd.f32 %v546_v26, %v467_v21  ;;  %v548_v27 = vpop.f32.mrb[1].mxu1 }
 0x24c   : > { %v549_v28 = vadd.f32 %v548_v27, %v471_v23 }
 0x24d   : > { %553 = vst [vmem:[%s307_s14 + $0x10] sm:$0xff] %v547_v4 }
 0x24e   : > { %554 = vst [vmem:[%s307_s14 + $0x18] sm:$0xff] %v549_v28 }
 0x250   : > { %v580_v29 = vld [vmem:[%s307_s14] sm:$0xff] }
 0x251   : > { %v582_v30 = vld [vmem:[%s307_s14 + $0x8] sm:$0xff]  ;;  %581 = vst [vmem:[%s567_s28] sm:$0xff] %v580_v29 }
 0x252   : > { %583 = vst [vmem:[%s567_s28 + $0x8] sm:$0xff] %v582_v30 }
 0x254   : > { %v584_v31 = vld [vmem:[%s307_s14 + $0x10] sm:$0xff] }
 0x255   : > { %v586_v32 = vld [vmem:[%s307_s14 + $0x18] sm:$0xff]  ;;  %585 = vst [vmem:[%s567_s28 + $0x30] sm:$0xff] %v584_v31 }
 0x256   : > { %587 = vst [vmem:[%s567_s28 + $0x38] sm:$0xff] %v586_v32 }
 0x257 PF: > { %s18_s23 = sadd.s32 1, %s957_s23   ;;  %s1265_s18 = smov %s941_s19 }
 0x258   : > { %p15_p11 = scmp.ge.s32.totalorder %s18_s23, 5   ;;  %s1266_s19 = smov %s945_s20 }
 0x259   : > { %s1267_s20 = smov %s1041_s30  ;;  %s1268_s21 = smov %s953_s22 }
 0x25a   : > { %s1269_s22 = smov %s1271_s25  ;;  %17 = sbr.rel (!%p15_p11) target bundleno = 4 (0x4), region = 109 }
 0x261   :  { %603 = vsyncpa [#allocation3], 1 }
 0x262   :  { %605 = vsyncpa [#allocation3 + $0x1], 1 }

// kernel: transformer_block.7
= control target key start
LH: loop header
LB: loop body
LE: loop exit
PB: predicated region body
PF: predicated region fallthrough
CT: control target
= control target key end

     0   :  { %s542_s1 = inlined_call_operand.vmem [shape: f32[256,256], index: 1, kind: input, shape index: {}]   ;;  %s543_s0 = inlined_call_operand.vmem [shape: f32[16,256], index: 0, kind: input, shape index: {}]   ;;  %s544_s2 = inlined_call_operand.vmem [shape: f32[1,256], index: 2, kind: input, shape index: {}]   ;;  %s545_s3 = inlined_call_operand.vmem [shape: f32[16,256], index: 3, kind: input, shape index: {}]   ;;  %s546_s4 = inlined_call_operand.vmem [shape: f32[16,256], index: 4, kind: output, shape index: {}]  }
   0x1   :  { %v22_v0 = vld [vmem:[%s542_s1 + $0x8] sm:$0xff]  ;;  %v24_v1 = vld [vmem:[%s542_s1 + $0x18] sm:$0xff]  ;;  %v21_v2 = vld [vmem:[%s542_s1] sm:$0xff] }
   0x2   :  { %v190_v3 = vpack.c.bf16 %v24_v1, %v22_v0  ;;  %v23_v4 = vld [vmem:[%s542_s1 + $0x10] sm:$0xff]  ;;  %v26_v5 = vld [vmem:[%s542_s1 + $0x28] sm:$0xff]  ;;  %v28_v6 = vld [vmem:[%s542_s1 + $0x38] sm:$0xff] }
   0x3   :  { %v192_v7 = vpack.c.bf16 %v23_v4, %v21_v2  ;;  %v194_v8 = vpack.c.bf16 %v28_v6, %v26_v5  ;;  %v25_v9 = vld [vmem:[%s542_s1 + $0x20] sm:$0xff]  ;;  %v27_v10 = vld [vmem:[%s542_s1 + $0x30] sm:$0xff]  ;;  %v30_v11 = vld [vmem:[%s542_s1 + $0x48] sm:$0xff] }
   0x4   :  { %191 = vmatprep.subr.bf16.mxu0 %v190_v3  ;;  %254 = vmatprep.subr.bf16.mxu1 %v190_v3  ;;  %v32_v12 = vld [vmem:[%s542_s1 + $0x58] sm:$0xff]  ;;  %v196_v13 = vpack.c.bf16 %v27_v10, %v25_v9  ;;  %v29_v15 = vld [vmem:[%s542_s1 + $0x40] sm:$0xff]  ;;  %v31_v16 = vld [vmem:[%s542_s1 + $0x50] sm:$0xff] }
   0x5   :  { %193 = vmatpush1.bf16.msra.mxu0 %v192_v7  ;;  %270 = vmatpush1.bf16.msra.mxu1 %v192_v7  ;;  %v198_v14 = vpack.c.bf16 %v32_v12, %v30_v11  ;;  %v34_v17 = vld [vmem:[%s542_s1 + $0x68] sm:$0xff]  ;;  %v36_v18 = vld [vmem:[%s542_s1 + $0x78] sm:$0xff]  ;;  %v200_v19 = vpack.c.bf16 %v31_v16, %v29_v15  ;;  %v33_v21 = vld [vmem:[%s542_s1 + $0x60] sm:$0xff] }
   0x6   :  { %195 = vmatprep.subr.bf16.mxu0 %v194_v8  ;;  %255 = vmatprep.subr.bf16.mxu1 %v194_v8  ;;  %v202_v20 = vpack.c.bf16 %v36_v18, %v34_v17  ;;  %v35_v22 = vld [vmem:[%s542_s1 + $0x70] sm:$0xff]  ;;  %v38_v23 = vld [vmem:[%s542_s1 + $0x88] sm:$0xff]  ;;  %v40_v24 = vld [vmem:[%s542_s1 + $0x98] sm:$0xff] }
   0x7   :  { %v204_v25 = vpack.c.bf16 %v35_v22, %v33_v21  ;;  %v206_v26 = vpack.c.bf16 %v40_v24, %v38_v23  ;;  %v37_v27 = vld [vmem:[%s542_s1 + $0x80] sm:$0xff]  ;;  %v39_v28 = vld [vmem:[%s542_s1 + $0x90] sm:$0xff]  ;;  %v42_v29 = vld [vmem:[%s542_s1 + $0xa8] sm:$0xff] }
   0x8   :  { %v44_v30 = vld [vmem:[%s542_s1 + $0xb8] sm:$0xff]  ;;  %v208_v31 = vpack.c.bf16 %v39_v28, %v37_v27  ;;  %v41_v33 = vld [vmem:[%s542_s1 + $0xa0] sm:$0xff]  ;;  %v43_v34 = vld [vmem:[%s542_s1 + $0xb0] sm:$0xff] }
   0x9   :  { %197 = vmatpush1.bf16.msra.mxu0 %v196_v13  ;;  %271 = vmatpush1.bf16.msra.mxu1 %v196_v13  ;;  %v210_v32 = vpack.c.bf16 %v44_v30, %v42_v29  ;;  %v46_v35 = vld [vmem:[%s542_s1 + $0xc8] sm:$0xff]  ;;  %v48_v36 = vld [vmem:[%s542_s1 + $0xd8] sm:$0xff]  ;;  %v212_v37 = vpack.c.bf16 %v43_v34, %v41_v33  ;;  %v45_v38 = vld [vmem:[%s542_s1 + $0xc0] sm:$0xff] }
   0xa   :  { %199 = vmatprep.subr.bf16.mxu0 %v198_v14  ;;  %256 = vmatprep.subr.bf16.mxu1 %v198_v14  ;;  %v214_v39 = vpack.c.bf16 %v48_v36, %v46_v35  ;;  %v47_v40 = vld [vmem:[%s542_s1 + $0xd0] sm:$0xff]  ;;  %v18_v41 = vld [vmem:[%s543_s0 + $0x8] sm:$0xff]  ;;  %v20_v42 = vld [vmem:[%s543_s0 + $0x18] sm:$0xff]  ;;  %v87_v36 = vlaneseq }
   0xb   :  { %v50_v43 = vld [vmem:[%s542_s1 + $0xe8] sm:$0xff]  ;;  %v52_v44 = vld [vmem:[%s542_s1 + $0xf8] sm:$0xff]  ;;  %161 = vmatprep.mubr.f32.mxu0 %v18_v41  ;;  %167 = vmatprep.mubr.f32.mxu1 %v20_v42  ;;  %v216_v45 = vpack.c.bf16 %v47_v40, %v45_v38  ;;  %v49_v47 = vld [vmem:[%s542_s1 + $0xe0] sm:$0xff] }
   0xc   :  { %v218_v46 = vpack.c.bf16 %v52_v44, %v50_v43  ;;  %v51_v48 = vld [vmem:[%s542_s1 + $0xf0] sm:$0xff]  ;;  %v54_v49 = vld [vmem:[%s542_s1 + $0x108] sm:$0xff]  ;;  %v56_v50 = vld [vmem:[%s542_s1 + $0x118] sm:$0xff] }
   0xd   :  { %201 = vmatpush1.bf16.msra.mxu0 %v200_v19  ;;  %272 = vmatpush1.bf16.msra.mxu1 %v200_v19  ;;  %v220_v51 = vpack.c.bf16 %v51_v48, %v49_v47  ;;  %v222_v52 = vpack.c.bf16 %v56_v50, %v54_v49  ;;  %v53_v53 = vld [vmem:[%s542_s1 + $0x100] sm:$0xff]  ;;  %v55_v54 = vld [vmem:[%s542_s1 + $0x110] sm:$0xff]  ;;  %v58_v55 = vld [vmem:[%s542_s1 + $0x128] sm:$0xff] }
   0xe   :  { %203 = vmatprep.subr.bf16.mxu0 %v202_v20  ;;  %257 = vmatprep.subr.bf16.mxu1 %v202_v20  ;;  %v60_v56 = vld [vmem:[%s542_s1 + $0x138] sm:$0xff]  ;;  %v224_v57 = vpack.c.bf16 %v55_v54, %v53_v53  ;;  %v57_v59 = vld [vmem:[%s542_s1 + $0x120] sm:$0xff]  ;;  %v59_v60 = vld [vmem:[%s542_s1 + $0x130] sm:$0xff] }
   0xf   :  { %v226_v58 = vpack.c.bf16 %v60_v56, %v58_v55  ;;  %v62_v61 = vld [vmem:[%s542_s1 + $0x148] sm:$0xff]  ;;  %v64_v62 = vld [vmem:[%s542_s1 + $0x158] sm:$0xff]  ;;  %v228_v63 = vpack.c.bf16 %v59_v60, %v57_v59  ;;  %v61_v1 = vld [vmem:[%s542_s1 + $0x140] sm:$0xff] }
  0x10   :  { %v230_v0 = vpack.c.bf16 %v64_v62, %v62_v61  ;;  %v63_v2 = vld [vmem:[%s542_s1 + $0x150] sm:$0xff]  ;;  %v66_v3 = vld [vmem:[%s542_s1 + $0x168] sm:$0xff]  ;;  %v68_v4 = vld [vmem:[%s542_s1 + $0x178] sm:$0xff] }
  0x11   :  { %205 = vmatpush1.bf16.msra.mxu0 %v204_v25  ;;  %273 = vmatpush1.bf16.msra.mxu1 %v204_v25  ;;  %v232_v5 = vpack.c.bf16 %v63_v2, %v61_v1  ;;  %v234_v6 = vpack.c.bf16 %v68_v4, %v66_v3  ;;  %v65_v7 = vld [vmem:[%s542_s1 + $0x160] sm:$0xff]  ;;  %v67_v8 = vld [vmem:[%s542_s1 + $0x170] sm:$0xff]  ;;  %v70_v9 = vld [vmem:[%s542_s1 + $0x188] sm:$0xff] }
  0x12   :  { %207 = vmatprep.subr.bf16.mxu0 %v206_v26  ;;  %258 = vmatprep.subr.bf16.mxu1 %v206_v26  ;;  %v72_v10 = vld [vmem:[%s542_s1 + $0x198] sm:$0xff]  ;;  %v236_v11 = vpack.c.bf16 %v67_v8, %v65_v7  ;;  %v69_v13 = vld [vmem:[%s542_s1 + $0x180] sm:$0xff]  ;;  %v71_v14 = vld [vmem:[%s542_s1 + $0x190] sm:$0xff] }
  0x13   :  { %v238_v12 = vpack.c.bf16 %v72_v10, %v70_v9  ;;  %v74_v15 = vld [vmem:[%s542_s1 + $0x1a8] sm:$0xff]  ;;  %v76_v16 = vld [vmem:[%s542_s1 + $0x1b8] sm:$0xff]  ;;  %v240_v17 = vpack.c.bf16 %v71_v14, %v69_v13  ;;  %v73_v19 = vld [vmem:[%s542_s1 + $0x1a0] sm:$0xff] }
  0x14   :  { %v242_v18 = vpack.c.bf16 %v76_v16, %v74_v15  ;;  %v75_v20 = vld [vmem:[%s542_s1 + $0x1b0] sm:$0xff]  ;;  %v78_v21 = vld [vmem:[%s542_s1 + $0x1c8] sm:$0xff]  ;;  %v80_v22 = vld [vmem:[%s542_s1 + $0x1d8] sm:$0xff] }
  0x15   :  { %209 = vmatpush1.bf16.msra.mxu0 %v208_v31  ;;  %274 = vmatpush1.bf16.msra.mxu1 %v208_v31  ;;  %v244_v23 = vpack.c.bf16 %v75_v20, %v73_v19  ;;  %v246_v24 = vpack.c.bf16 %v80_v22, %v78_v21  ;;  %v77_v25 = vld [vmem:[%s542_s1 + $0x1c0] sm:$0xff]  ;;  %v79_v26 = vld [vmem:[%s542_s1 + $0x1d0] sm:$0xff]  ;;  %v82_v27 = vld [vmem:[%s542_s1 + $0x1e8] sm:$0xff] }
  0x16   :  { %211 = vmatprep.subr.bf16.mxu0 %v210_v32  ;;  %259 = vmatprep.subr.bf16.mxu1 %v210_v32  ;;  %v84_v28 = vld [vmem:[%s542_s1 + $0x1f8] sm:$0xff]  ;;  %v248_v29 = vpack.c.bf16 %v79_v26, %v77_v25  ;;  %v81_v31 = vld [vmem:[%s542_s1 + $0x1e0] sm:$0xff]  ;;  %v83_v32 = vld [vmem:[%s542_s1 + $0x1f0] sm:$0xff] }
  0x17   :  { %v250_v30 = vpack.c.bf16 %v84_v28, %v82_v27  ;;  %v252_v33 = vpack.c.bf16 %v83_v32, %v81_v31  ;;  %v17_v34 = vld [vmem:[%s543_s0] sm:$0xff]  ;;  %v19_v35 = vld [vmem:[%s543_s0 + $0x10] sm:$0xff]  ;;  %v175_v50 = vld [vmem:[%s545_s3 + $0x8] sm:$0xff] }
  0x18   :  { %v174_v44 = vld [vmem:[%s545_s3] sm:$0xff] }
  0x19   :  { %213 = vmatpush1.bf16.msra.mxu0 %v212_v37  ;;  %275 = vmatpush1.bf16.msra.mxu1 %v212_v37  ;;  %v88_v37 = vshrl.u32 %v87_v36, 7 }
  0x1a   :  { %215 = vmatprep.subr.bf16.mxu0 %v214_v39  ;;  %260 = vmatprep.subr.bf16.mxu1 %v214_v39  ;;  %v85_v39 = vld [vmem:[%s544_s2] sm:$0x3] }
  0x1b   :  { %v89_v38 = vsub.s32 0, %v88_v37  ;;  %v93_v40 = vsub.s32 1, %v88_v37 }
  0x1d   :  { %217 = vmatpush1.bf16.msra.mxu0 %v216_v45  ;;  %276 = vmatpush1.bf16.msra.mxu1 %v216_v45  ;;  %v90_v41 = vrot.slane %v85_v39, %v89_v38  ;;  %v94_v42 = vrot.slane %v85_v39, %v93_v40 }
  0x1e   :  { %219 = vmatprep.subr.bf16.mxu0 %v218_v46  ;;  %261 = vmatprep.subr.bf16.mxu1 %v218_v46  ;;  %v176_v46 = vld [vmem:[%s545_s3 + $0x10] sm:$0xff] }
  0x21   :  { %221 = vmatpush1.bf16.msra.mxu0 %v220_v51  ;;  %277 = vmatpush1.bf16.msra.mxu1 %v220_v51 }
  0x22   :  { %223 = vmatprep.subr.bf16.mxu0 %v222_v52  ;;  %262 = vmatprep.subr.bf16.mxu1 %v222_v52  ;;  %v177_v52 = vld [vmem:[%s545_s3 + $0x18] sm:$0xff] }
  0x25   :  { %225 = vmatpush1.bf16.msra.mxu0 %v224_v57  ;;  %278 = vmatpush1.bf16.msra.mxu1 %v224_v57 }
  0x26   :  { %227 = vmatprep.subr.bf16.mxu0 %v226_v58  ;;  %263 = vmatprep.subr.bf16.mxu1 %v226_v58 }
  0x29   :  { %229 = vmatpush1.bf16.msra.mxu0 %v228_v63  ;;  %279 = vmatpush1.bf16.msra.mxu1 %v228_v63 }
  0x2a   :  { %231 = vmatprep.subr.bf16.mxu0 %v230_v0  ;;  %264 = vmatprep.subr.bf16.mxu1 %v230_v0 }
  0x2d   :  { %233 = vmatpush1.bf16.msra.mxu0 %v232_v5  ;;  %280 = vmatpush1.bf16.msra.mxu1 %v232_v5 }
  0x2e   :  { %235 = vmatprep.subr.bf16.mxu0 %v234_v6  ;;  %265 = vmatprep.subr.bf16.mxu1 %v234_v6 }
  0x31   :  { %237 = vmatpush1.bf16.msra.mxu0 %v236_v11  ;;  %281 = vmatpush1.bf16.msra.mxu1 %v236_v11 }
  0x32   :  { %239 = vmatprep.subr.bf16.mxu0 %v238_v12  ;;  %266 = vmatprep.subr.bf16.mxu1 %v238_v12 }
  0x35   :  { %241 = vmatpush1.bf16.msra.mxu0 %v240_v17  ;;  %282 = vmatpush1.bf16.msra.mxu1 %v240_v17 }
  0x36   :  { %243 = vmatprep.subr.bf16.mxu0 %v242_v18  ;;  %267 = vmatprep.subr.bf16.mxu1 %v242_v18 }
  0x39   :  { %245 = vmatpush1.bf16.msra.mxu0 %v244_v23  ;;  %283 = vmatpush1.bf16.msra.mxu1 %v244_v23 }
  0x3a   :  { %247 = vmatprep.subr.bf16.mxu0 %v246_v24  ;;  %268 = vmatprep.subr.bf16.mxu1 %v246_v24 }
  0x3d   :  { %249 = vmatpush1.bf16.msra.mxu0 %v248_v29  ;;  %284 = vmatpush1.bf16.msra.mxu1 %v248_v29 }
  0x3e   :  { %251 = vmatprep.subr.bf16.mxu0 %v250_v30  ;;  %269 = vmatprep.subr.bf16.mxu1 %v250_v30 }
  0x41   :  { %253 = vmatpush1.bf16.msra.mxu0 %v252_v33  ;;  %285 = vmatpush1.bf16.msra.mxu1 %v252_v33 }
  0x44   :  { %162 = vmatmul.mubr.f32.vlgmr.msra.gmra.mrb[0].mxu0 %v17_v34  ;;  %168 = vmatmul.mubr.f32.vlgmr.msra.gmra.mrb[0].mxu1 %v19_v35 }
 0x117   :  { %v163_v43 = vpop.f32.mrb[0].mxu0  ;;  %v169_v45 = vpop.f32.mrb[0].mxu1 }
 0x118   :  { %v164_v47 = vadd.f32 %v163_v43, %v90_v41  ;;  %v170_v48 = vadd.f32 %v169_v45, %v90_v41  ;;  %v165_v49 = vpop.f32.mrb[1].mxu0  ;;  %v171_v51 = vpop.f32.mrb[1].mxu1 }
 0x119   :  { %v166_v53 = vadd.f32 %v165_v49, %v94_v42  ;;  %v172_v54 = vadd.f32 %v171_v51, %v94_v42 }
 0x11a   :  { %v178_v55 = vadd.f32 %v174_v44, %v164_v47  ;;  %v180_v56 = vadd.f32 %v176_v46, %v170_v48 }
 0x11b   :  { %v179_v57 = vadd.f32 %v175_v50, %v166_v53  ;;  %v181_v58 = vadd.f32 %v177_v52, %v172_v54 }
 0x11c   :  { %182 = vst [vmem:[%s546_s4] sm:$0xff] %v178_v55  ;;  %184 = vst [vmem:[%s546_s4 + $0x10] sm:$0xff] %v180_v56 }
 0x11d   :  { %183 = vst [vmem:[%s546_s4 + $0x8] sm:$0xff] %v179_v57  ;;  %185 = vst [vmem:[%s546_s4 + $0x18] sm:$0xff] %v181_v58 }

// kernel: transformer_block.8
= control target key start
LH: loop header
LB: loop body
LE: loop exit
PB: predicated region body
PF: predicated region fallthrough
CT: control target
= control target key end

     0   :  { %s1170_s18 = smov 0   ;;  %s1172_s19 = smov 0   ;;  %s1534_s0 = inlined_call_operand.vmem [shape: f32[16,256], index: 0, kind: input, shape index: {}]   ;;  %s1535_s1 = inlined_call_operand.vmem [shape: f32[256,512], index: 1, kind: input, shape index: {}]   ;;  %s1536_s2 = inlined_call_operand.vmem [shape: f32[1,512], index: 2, kind: input, shape index: {}]   ;;  %s1537_s3 = inlined_call_operand.vmem [shape: f32[1,256], index: 3, kind: input, shape index: {}]   ;;  %s1538_s4 = inlined_call_operand.vmem [shape: f32[1,256], index: 4, kind: input, shape index: {}]   ;;  %s1539_s5 = inlined_call_operand.vmem [shape: f32[16,512], index: 5, kind: output, shape index: {}]  }
   0x1   :  { %s1174_s20 = smov 0   ;;  %s1176_s21 = smov 0  }
   0x2   :  { %s1178_s22 = smov 0  }
   0x3 LB: > { %s30_s23 = sadd.s32 1, %s1134_s21  ;;  %s925_s24 = sadd.s32 4294967295, %s1138_s22   ;;  %s1138_s22 = sphi %s1178_s22, %s15_s22   ;;  %s1134_s21 = sphi %s1176_s21, %s1544_s21   ;;  %s1130_s20 = sphi %s1174_s20, %s1543_s20   ;;  %s1126_s19 = sphi %s1172_s19, %s1542_s19   ;;  %s1122_s18 = sphi %s1170_s18, %s1541_s18  }
   0x4   : > { %p32_p0 = scmp.ge.s32.totalorder %s30_s23, 2  ;;  %p78_p1 = scmp.ne.s32.totalorder %s1126_s19, %s1122_s18 }
   0x5   : > { %p79_p2 = scmp.eq.s32.totalorder %s1138_s22, 0  ;;  %p178_p4 = scmp.eq.s32.totalorder %s925_s24, 1 }
   0x6   : > { %s1546_s23 = smov (%p32_p0, %s30_s23), 0  ;;  %s71_s26 = sadd.s32 1, %s1126_s19 }
   0x7   : > { %p80_p3 = por %p79_p2, %p78_p1  ;;  %s67_s25 = ssub.s32 %s1134_s21, %s1546_s23 }
   0x8   : > { %p69_p5 = scmp.eq.s32.totalorder %s67_s25, 0  ;;  %p1205_p6 = por %p178_p4, %p78_p1 }
   0x9   : > { %p929_p7 = scmp.ge.s32.totalorder %s1138_s22, 2 }
   0xa   : > { %s1210_s28 = scalar_select %p69_p5, %s1126_s19, %s71_s26  }
   0xb   : > { %221 = sbr.rel (%p929_p7) target bundleno = 54 (0x36), region = 28 }
  0x12   : > { %224 = sbr.rel (!%p80_p3) target bundleno = 54 (0x36), region = 32  ;;  %s226_s29 = sand.u32 (%p80_p3), 1, %s1126_s19  }
  0x13   : > { %s942_s30 = sshll.u32 (%p80_p3), %s1134_s21, 4  ;;  %s930_s6 = sshll.u32 (%p80_p3), %s226_s29, 9 }
  0x14   : > { %s1218_s9 = scalar_lea.vmem (%p80_p3), %s1535_s1, %s942_s30  ;;  %s1223_s10 = scalar_lea.vmem (%p80_p3), [#allocation2], %s930_s6 }
  0x15   : > { %v247_v0 = vld [vmem:[%s1218_s9] sm:$0xff] (%p80_p3)  ;;  %v249_v1 = vld [vmem:[%s1218_s9 + $0x8] sm:$0xff] (%p80_p3) }
  0x16   : > { %v251_v2 = vld [vmem:[%s1218_s9 + $0x20] sm:$0xff] (%p80_p3)  ;;  %248 = vst [vmem:[%s1223_s10] sm:$0xff] (%p80_p3), %v247_v0  ;;  %250 = vst [vmem:[%s1223_s10 + $0x8] sm:$0xff] (%p80_p3), %v249_v1  ;;  %v253_v3 = vld [vmem:[%s1218_s9 + $0x28] sm:$0xff] (%p80_p3) }
  0x17   : > { %252 = vst [vmem:[%s1223_s10 + $0x10] sm:$0xff] (%p80_p3), %v251_v2  ;;  %v255_v4 = vld [vmem:[%s1218_s9 + $0x40] sm:$0xff] (%p80_p3)  ;;  %v257_v5 = vld [vmem:[%s1218_s9 + $0x48] sm:$0xff] (%p80_p3)  ;;  %254 = vst [vmem:[%s1223_s10 + $0x18] sm:$0xff] (%p80_p3), %v253_v3 }
  0x18   : > { %256 = vst [vmem:[%s1223_s10 + $0x20] sm:$0xff] (%p80_p3), %v255_v4  ;;  %258 = vst [vmem:[%s1223_s10 + $0x28] sm:$0xff] (%p80_p3), %v257_v5  ;;  %v259_v6 = vld [vmem:[%s1218_s9 + $0x60] sm:$0xff] (%p80_p3)  ;;  %v261_v7 = vld [vmem:[%s1218_s9 + $0x68] sm:$0xff] (%p80_p3) }
  0x19   : > { %v263_v8 = vld [vmem:[%s1218_s9 + $0x80] sm:$0xff]  ;;  %260 = vst [vmem:[%s1223_s10 + $0x30] sm:$0xff] %v259_v6  ;;  %262 = vst [vmem:[%s1223_s10 + $0x38] sm:$0xff] %v261_v7  ;;  %v265_v9 = vld [vmem:[%s1218_s9 + $0x88] sm:$0xff] }
  0x1a   : > { %264 = vst [vmem:[%s1223_s10 + $0x40] sm:$0xff] %v263_v8  ;;  %v267_v10 = vld [vmem:[%s1218_s9 + $0xa0] sm:$0xff]  ;;  %v269_v11 = vld [vmem:[%s1218_s9 + $0xa8] sm:$0xff]  ;;  %266 = vst [vmem:[%s1223_s10 + $0x48] sm:$0xff] %v265_v9 }
  0x1b   : > { %268 = vst [vmem:[%s1223_s10 + $0x50] sm:$0xff] %v267_v10  ;;  %270 = vst [vmem:[%s1223_s10 + $0x58] sm:$0xff] %v269_v11  ;;  %v271_v12 = vld [vmem:[%s1218_s9 + $0xc0] sm:$0xff]  ;;  %v273_v13 = vld [vmem:[%s1218_s9 + $0xc8] sm:$0xff] }
  0x1c   : > { %v275_v14 = vld [vmem:[%s1218_s9 + $0xe0] sm:$0xff]  ;;  %272 = vst [vmem:[%s1223_s10 + $0x60] sm:$0xff] %v271_v12  ;;  %274 = vst [vmem:[%s1223_s10 + $0x68] sm:$0xff] %v273_v13  ;;  %v277_v15 = vld [vmem:[%s1218_s9 + $0xe8] sm:$0xff] }
  0x1d   : > { %276 = vst [vmem:[%s1223_s10 + $0x70] sm:$0xff] %v275_v14  ;;  %v279_v16 = vld [vmem:[%s1218_s9 + $0x100] sm:$0xff]  ;;  %v281_v17 = vld [vmem:[%s1218_s9 + $0x108] sm:$0xff]  ;;  %278 = vst [vmem:[%s1223_s10 + $0x78] sm:$0xff] %v277_v15 }
  0x1e   : > { %280 = vst [vmem:[%s1223_s10 + $0x80] sm:$0xff] %v279_v16  ;;  %282 = vst [vmem:[%s1223_s10 + $0x88] sm:$0xff] %v281_v17  ;;  %v283_v18 = vld [vmem:[%s1218_s9 + $0x120] sm:$0xff]  ;;  %v285_v19 = vld [vmem:[%s1218_s9 + $0x128] sm:$0xff] }
  0x1f   : > { %v287_v20 = vld [vmem:[%s1218_s9 + $0x140] sm:$0xff]  ;;  %284 = vst [vmem:[%s1223_s10 + $0x90] sm:$0xff] %v283_v18  ;;  %286 = vst [vmem:[%s1223_s10 + $0x98] sm:$0xff] %v285_v19  ;;  %v289_v21 = vld [vmem:[%s1218_s9 + $0x148] sm:$0xff] }
  0x20   : > { %288 = vst [vmem:[%s1223_s10 + $0xa0] sm:$0xff] %v287_v20  ;;  %v291_v22 = vld [vmem:[%s1218_s9 + $0x160] sm:$0xff]  ;;  %v293_v23 = vld [vmem:[%s1218_s9 + $0x168] sm:$0xff]  ;;  %290 = vst [vmem:[%s1223_s10 + $0xa8] sm:$0xff] %v289_v21 }
  0x21   : > { %292 = vst [vmem:[%s1223_s10 + $0xb0] sm:$0xff] %v291_v22  ;;  %294 = vst [vmem:[%s1223_s10 + $0xb8] sm:$0xff] %v293_v23  ;;  %v295_v24 = vld [vmem:[%s1218_s9 + $0x180] sm:$0xff]  ;;  %v297_v25 = vld [vmem:[%s1218_s9 + $0x188] sm:$0xff] }
  0x22   : > { %v299_v26 = vld [vmem:[%s1218_s9 + $0x1a0] sm:$0xff]  ;;  %296 = vst [vmem:[%s1223_s10 + $0xc0] sm:$0xff] %v295_v24  ;;  %298 = vst [vmem:[%s1223_s10 + $0xc8] sm:$0xff] %v297_v25  ;;  %v301_v27 = vld [vmem:[%s1218_s9 + $0x1a8] sm:$0xff] }
  0x23   : > { %300 = vst [vmem:[%s1223_s10 + $0xd0] sm:$0xff] %v299_v26  ;;  %v303_v28 = vld [vmem:[%s1218_s9 + $0x1c0] sm:$0xff]  ;;  %v305_v29 = vld [vmem:[%s1218_s9 + $0x1c8] sm:$0xff]  ;;  %302 = vst [vmem:[%s1223_s10 + $0xd8] sm:$0xff] %v301_v27 }
  0x24   : > { %304 = vst [vmem:[%s1223_s10 + $0xe0] sm:$0xff] %v303_v28  ;;  %306 = vst [vmem:[%s1223_s10 + $0xe8] sm:$0xff] %v305_v29  ;;  %v307_v30 = vld [vmem:[%s1218_s9 + $0x1e0] sm:$0xff]  ;;  %v309_v31 = vld [vmem:[%s1218_s9 + $0x1e8] sm:$0xff] }
  0x25   : > { %v311_v32 = vld [vmem:[%s1218_s9 + $0x200] sm:$0xff]  ;;  %308 = vst [vmem:[%s1223_s10 + $0xf0] sm:$0xff] %v307_v30  ;;  %310 = vst [vmem:[%s1223_s10 + $0xf8] sm:$0xff] %v309_v31  ;;  %v313_v33 = vld [vmem:[%s1218_s9 + $0x208] sm:$0xff] }
  0x26   : > { %312 = vst [vmem:[%s1223_s10 + $0x100] sm:$0xff] %v311_v32  ;;  %v315_v34 = vld [vmem:[%s1218_s9 + $0x220] sm:$0xff]  ;;  %v317_v35 = vld [vmem:[%s1218_s9 + $0x228] sm:$0xff]  ;;  %314 = vst [vmem:[%s1223_s10 + $0x108] sm:$0xff] %v313_v33 }
  0x27   : > { %316 = vst [vmem:[%s1223_s10 + $0x110] sm:$0xff] %v315_v34  ;;  %318 = vst [vmem:[%s1223_s10 + $0x118] sm:$0xff] %v317_v35  ;;  %v319_v36 = vld [vmem:[%s1218_s9 + $0x240] sm:$0xff]  ;;  %v321_v37 = vld [vmem:[%s1218_s9 + $0x248] sm:$0xff] }
  0x28   : > { %v323_v38 = vld [vmem:[%s1218_s9 + $0x260] sm:$0xff]  ;;  %320 = vst [vmem:[%s1223_s10 + $0x120] sm:$0xff] %v319_v36  ;;  %322 = vst [vmem:[%s1223_s10 + $0x128] sm:$0xff] %v321_v37  ;;  %v325_v39 = vld [vmem:[%s1218_s9 + $0x268] sm:$0xff] }
  0x29   : > { %324 = vst [vmem:[%s1223_s10 + $0x130] sm:$0xff] %v323_v38  ;;  %v327_v40 = vld [vmem:[%s1218_s9 + $0x280] sm:$0xff]  ;;  %v329_v41 = vld [vmem:[%s1218_s9 + $0x288] sm:$0xff]  ;;  %326 = vst [vmem:[%s1223_s10 + $0x138] sm:$0xff] %v325_v39 }
  0x2a   : > { %328 = vst [vmem:[%s1223_s10 + $0x140] sm:$0xff] %v327_v40  ;;  %330 = vst [vmem:[%s1223_s10 + $0x148] sm:$0xff] %v329_v41  ;;  %v331_v42 = vld [vmem:[%s1218_s9 + $0x2a0] sm:$0xff]  ;;  %v333_v43 = vld [vmem:[%s1218_s9 + $0x2a8] sm:$0xff] }
  0x2b   : > { %v335_v44 = vld [vmem:[%s1218_s9 + $0x2c0] sm:$0xff]  ;;  %332 = vst [vmem:[%s1223_s10 + $0x150] sm:$0xff] %v331_v42  ;;  %334 = vst [vmem:[%s1223_s10 + $0x158] sm:$0xff] %v333_v43  ;;  %v337_v45 = vld [vmem:[%s1218_s9 + $0x2c8] sm:$0xff] }
  0x2c   : > { %336 = vst [vmem:[%s1223_s10 + $0x160] sm:$0xff] %v335_v44  ;;  %v339_v46 = vld [vmem:[%s1218_s9 + $0x2e0] sm:$0xff]  ;;  %v341_v47 = vld [vmem:[%s1218_s9 + $0x2e8] sm:$0xff]  ;;  %338 = vst [vmem:[%s1223_s10 + $0x168] sm:$0xff] %v337_v45 }
  0x2d   : > { %340 = vst [vmem:[%s1223_s10 + $0x170] sm:$0xff] %v339_v46  ;;  %342 = vst [vmem:[%s1223_s10 + $0x178] sm:$0xff] %v341_v47  ;;  %v343_v48 = vld [vmem:[%s1218_s9 + $0x300] sm:$0xff]  ;;  %v345_v49 = vld [vmem:[%s1218_s9 + $0x308] sm:$0xff] }
  0x2e   : > { %v347_v50 = vld [vmem:[%s1218_s9 + $0x320] sm:$0xff]  ;;  %344 = vst [vmem:[%s1223_s10 + $0x180] sm:$0xff] %v343_v48  ;;  %346 = vst [vmem:[%s1223_s10 + $0x188] sm:$0xff] %v345_v49  ;;  %v349_v51 = vld [vmem:[%s1218_s9 + $0x328] sm:$0xff] }
  0x2f   : > { %348 = vst [vmem:[%s1223_s10 + $0x190] sm:$0xff] %v347_v50  ;;  %v351_v52 = vld [vmem:[%s1218_s9 + $0x340] sm:$0xff]  ;;  %v353_v53 = vld [vmem:[%s1218_s9 + $0x348] sm:$0xff]  ;;  %350 = vst [vmem:[%s1223_s10 + $0x198] sm:$0xff] %v349_v51 }
  0x30   : > { %352 = vst [vmem:[%s1223_s10 + $0x1a0] sm:$0xff] %v351_v52  ;;  %354 = vst [vmem:[%s1223_s10 + $0x1a8] sm:$0xff] %v353_v53  ;;  %v355_v54 = vld [vmem:[%s1218_s9 + $0x360] sm:$0xff]  ;;  %v357_v55 = vld [vmem:[%s1218_s9 + $0x368] sm:$0xff] }
  0x31   : > { %v359_v56 = vld [vmem:[%s1218_s9 + $0x380] sm:$0xff]  ;;  %356 = vst [vmem:[%s1223_s10 + $0x1b0] sm:$0xff] %v355_v54  ;;  %358 = vst [vmem:[%s1223_s10 + $0x1b8] sm:$0xff] %v357_v55  ;;  %v361_v57 = vld [vmem:[%s1218_s9 + $0x388] sm:$0xff] }
  0x32   : > { %360 = vst [vmem:[%s1223_s10 + $0x1c0] sm:$0xff] %v359_v56  ;;  %v363_v58 = vld [vmem:[%s1218_s9 + $0x3a0] sm:$0xff]  ;;  %v365_v59 = vld [vmem:[%s1218_s9 + $0x3a8] sm:$0xff]  ;;  %362 = vst [vmem:[%s1223_s10 + $0x1c8] sm:$0xff] %v361_v57 }
  0x33   : > { %364 = vst [vmem:[%s1223_s10 + $0x1d0] sm:$0xff] %v363_v58  ;;  %366 = vst [vmem:[%s1223_s10 + $0x1d8] sm:$0xff] %v365_v59  ;;  %v367_v60 = vld [vmem:[%s1218_s9 + $0x3c0] sm:$0xff]  ;;  %v369_v61 = vld [vmem:[%s1218_s9 + $0x3c8] sm:$0xff] }
  0x34   : > { %v371_v62 = vld [vmem:[%s1218_s9 + $0x3e0] sm:$0xff]  ;;  %368 = vst [vmem:[%s1223_s10 + $0x1e0] sm:$0xff] %v367_v60  ;;  %370 = vst [vmem:[%s1223_s10 + $0x1e8] sm:$0xff] %v369_v61  ;;  %v373_v63 = vld [vmem:[%s1218_s9 + $0x3e8] sm:$0xff] }
  0x35   : > { %372 = vst [vmem:[%s1223_s10 + $0x1f0] sm:$0xff] %v371_v62  ;;  %374 = vst [vmem:[%s1223_s10 + $0x1f8] sm:$0xff] %v373_v63 }
  0x36 PF: > { %p933_p8 = scmp.ge.s32.totalorder %s1138_s22, 1  ;;  %p387_p9 = scmp.lt.s32.totalorder %s1138_s22, 3 }
  0x38   : > { %p388_p10 = pnand %p933_p8, %p387_p9 }
  0x39   : > { %v1355_v0 = vld [vmem:[%s1534_s0] sm:$0xff] (!%p388_p10)  ;;  %v1360_v1 = vld [vmem:[%s1534_s0 + $0x8] sm:$0xff] (!%p388_p10)  ;;  %v1365_v2 = vld [vmem:[%s1534_s0 + $0x10] sm:$0xff] (!%p388_p10)  ;;  %s394_s25 = sand.u32 (!%p388_p10), 1, %s1122_s18   ;;  %s936_s9 = sshll.u32 (!%p388_p10), %s1130_s20, 1 }
  0x3a   : > { %391 = sbr.rel (%p388_p10) target bundleno = 650 (0x28a), region = 59  ;;  %v459_v3 = vadd.f32 (!%p388_p10), %v1360_v1, %v1355_v0  ;;  %v1372_v4 = vld [vmem:[%s1534_s0 + $0x18] sm:$0xff] (!%p388_p10)  ;;  %s934_s26 = sshll.u32 (!%p388_p10), %s394_s25, 9 }
  0x3b   : > { %v462_v5 = vadd.f32 (!%p388_p10), %v1372_v4, %v1365_v2  ;;  %s1379_s29 = scalar_lea.vmem (!%p388_p10), [#allocation2], %s934_s26  ;;  %p449_p11 = scmp.lt.s32.totalorder (!%p388_p10), %s936_s9, 3 }
  0x3c   : > { %460 = vadd.xlane.f32.xlu0 (!%p388_p10), %v459_v3  ;;  %v525_v6 = vld [vmem:[%s1379_s29 + $0x8] sm:$0xff] (!%p388_p10)  ;;  %v527_v7 = vld [vmem:[%s1379_s29 + $0x18] sm:$0xff] (!%p388_p10)  ;;  %v524_v8 = vld [vmem:[%s1379_s29] sm:$0xff] (!%p388_p10)  ;;  %s935_s13 = sshll.u32 (!%p388_p10), %s394_s25, 5 }
  0x3d   : > { %v944_v9 = vpack.c.bf16 (!%p388_p10), %v527_v7, %v525_v6  ;;  %v526_v10 = vld [vmem:[%s1379_s29 + $0x10] sm:$0xff] (!%p388_p10)  ;;  %v529_v11 = vld [vmem:[%s1379_s29 + $0x28] sm:$0xff] (!%p388_p10)  ;;  %v531_v12 = vld [vmem:[%s1379_s29 + $0x38] sm:$0xff] (!%p388_p10)  ;;  %s433_s18 = scalar_lea.vmem (!%p388_p10), [#allocation3], %s935_s13 }
  0x3e   : > { %v946_v13 = vpack.c.bf16 (!%p388_p10), %v526_v10, %v524_v8  ;;  %v948_v14 = vpack.c.bf16 (!%p388_p10), %v531_v12, %v529_v11  ;;  %v528_v15 = vld [vmem:[%s1379_s29 + $0x20] sm:$0xff] (!%p388_p10)  ;;  %v530_v16 = vld [vmem:[%s1379_s29 + $0x30] sm:$0xff] (!%p388_p10)  ;;  %v533_v17 = vld [vmem:[%s1379_s29 + $0x48] sm:$0xff] (!%p388_p10) }
  0x3f   : > { %945 = vmatprep.subr.bf16.mxu0 (!%p388_p10), %v944_v9  ;;  %1008 = vmatprep.subr.bf16.mxu1 (!%p388_p10), %v944_v9  ;;  %v535_v18 = vld [vmem:[%s1379_s29 + $0x58] sm:$0xff] (!%p388_p10)  ;;  %v950_v19 = vpack.c.bf16 (!%p388_p10), %v530_v16, %v528_v15  ;;  %v532_v21 = vld [vmem:[%s1379_s29 + $0x40] sm:$0xff] (!%p388_p10)  ;;  %v534_v22 = vld [vmem:[%s1379_s29 + $0x50] sm:$0xff] (!%p388_p10) }
  0x40   : > { %463 = vadd.xlane.f32.xlu0 (!%p388_p10), %v462_v5  ;;  %947 = vmatpush1.bf16.msra.mxu0 (!%p388_p10), %v946_v13  ;;  %v952_v20 = vpack.c.bf16 (!%p388_p10), %v535_v18, %v533_v17  ;;  %v537_v23 = vld [vmem:[%s1379_s29 + $0x68] sm:$0xff] (!%p388_p10)  ;;  %v539_v24 = vld [vmem:[%s1379_s29 + $0x78] sm:$0xff] (!%p388_p10)  ;;  %v954_v25 = vpack.c.bf16 (!%p388_p10), %v534_v22, %v532_v21  ;;  %v536_v27 = vld [vmem:[%s1379_s29 + $0x60] sm:$0xff] (!%p388_p10) }
  0x41   : > { %1024 = vmatpush1.bf16.msra.mxu1 %v946_v13  ;;  %949 = vmatprep.subr.bf16.mxu0 %v948_v14  ;;  %v956_v26 = vpack.c.bf16 %v539_v24, %v537_v23  ;;  %v538_v28 = vld [vmem:[%s1379_s29 + $0x70] sm:$0xff]  ;;  %v541_v29 = vld [vmem:[%s1379_s29 + $0x88] sm:$0xff]  ;;  %v543_v30 = vld [vmem:[%s1379_s29 + $0x98] sm:$0xff]  ;;  %s1548_s9 = smov (!%p449_p11, %s936_s9), 3  ;;  %s943_s14 = sshll.u32 (%p1205_p6), %s1130_s20, 4 }
  0x42   : > { %1009 = vmatprep.subr.bf16.mxu1 %v948_v14  ;;  %v958_v31 = vpack.c.bf16 %v538_v28, %v536_v27  ;;  %v960_v32 = vpack.c.bf16 %v543_v30, %v541_v29  ;;  %v540_v33 = vld [vmem:[%s1379_s29 + $0x80] sm:$0xff]  ;;  %v542_v34 = vld [vmem:[%s1379_s29 + $0x90] sm:$0xff]  ;;  %v545_v35 = vld [vmem:[%s1379_s29 + $0xa8] sm:$0xff]  ;;  %s451_s12 = scalar_lea.vmem %s1536_s2, %s1548_s9  ;;  %s797_s17 = scalar_lea.vmem (%p1205_p6), %s1539_s5, %s943_s14 }
  0x43   : > { %v547_v36 = vld [vmem:[%s1379_s29 + $0xb8] sm:$0xff]  ;;  %v962_v37 = vpack.c.bf16 %v542_v34, %v540_v33  ;;  %v544_v39 = vld [vmem:[%s1379_s29 + $0xa0] sm:$0xff]  ;;  %v546_v40 = vld [vmem:[%s1379_s29 + $0xb0] sm:$0xff] }
  0x44   : > { %951 = vmatpush1.bf16.msra.mxu0 %v950_v19  ;;  %v964_v38 = vpack.c.bf16 %v547_v36, %v545_v35  ;;  %v549_v41 = vld [vmem:[%s1379_s29 + $0xc8] sm:$0xff]  ;;  %v551_v42 = vld [vmem:[%s1379_s29 + $0xd8] sm:$0xff]  ;;  %v966_v43 = vpack.c.bf16 %v546_v40, %v544_v39  ;;  %v548_v45 = vld [vmem:[%s1379_s29 + $0xc0] sm:$0xff] }
  0x45   : > { %1025 = vmatpush1.bf16.msra.mxu1 %v950_v19  ;;  %953 = vmatprep.subr.bf16.mxu0 %v952_v20  ;;  %v968_v44 = vpack.c.bf16 %v551_v42, %v549_v41  ;;  %v550_v46 = vld [vmem:[%s1379_s29 + $0xd0] sm:$0xff]  ;;  %v553_v47 = vld [vmem:[%s1379_s29 + $0xe8] sm:$0xff]  ;;  %v555_v48 = vld [vmem:[%s1379_s29 + $0xf8] sm:$0xff] }
  0x46   : > { %1010 = vmatprep.subr.bf16.mxu1 %v952_v20  ;;  %v970_v49 = vpack.c.bf16 %v550_v46, %v548_v45  ;;  %v972_v50 = vpack.c.bf16 %v555_v48, %v553_v47  ;;  %v552_v51 = vld [vmem:[%s1379_s29 + $0xe0] sm:$0xff]  ;;  %v554_v52 = vld [vmem:[%s1379_s29 + $0xf0] sm:$0xff]  ;;  %v557_v53 = vld [vmem:[%s1379_s29 + $0x108] sm:$0xff] }
  0x47   : > { %v559_v54 = vld [vmem:[%s1379_s29 + $0x118] sm:$0xff]  ;;  %v974_v55 = vpack.c.bf16 %v554_v52, %v552_v51  ;;  %v556_v57 = vld [vmem:[%s1379_s29 + $0x100] sm:$0xff]  ;;  %v558_v58 = vld [vmem:[%s1379_s29 + $0x110] sm:$0xff] }
  0x48   : > { %955 = vmatpush1.bf16.msra.mxu0 %v954_v25  ;;  %v976_v56 = vpack.c.bf16 %v559_v54, %v557_v53  ;;  %v561_v59 = vld [vmem:[%s1379_s29 + $0x128] sm:$0xff]  ;;  %v563_v60 = vld [vmem:[%s1379_s29 + $0x138] sm:$0xff]  ;;  %v978_v61 = vpack.c.bf16 %v558_v58, %v556_v57  ;;  %v560_v63 = vld [vmem:[%s1379_s29 + $0x120] sm:$0xff]  ;;  %v494_v54 = vlaneseq }
  0x49   : > { %1026 = vmatpush1.bf16.msra.mxu1 %v954_v25  ;;  %957 = vmatprep.subr.bf16.mxu0 %v956_v26  ;;  %v980_v62 = vpack.c.bf16 %v563_v60, %v561_v59  ;;  %v562_v3 = vld [vmem:[%s1379_s29 + $0x130] sm:$0xff]  ;;  %v565_v5 = vld [vmem:[%s1379_s29 + $0x148] sm:$0xff]  ;;  %v567_v6 = vld [vmem:[%s1379_s29 + $0x158] sm:$0xff] }
  0x4a   : > { %1011 = vmatprep.subr.bf16.mxu1 %v956_v26  ;;  %v982_v7 = vpack.c.bf16 %v562_v3, %v560_v63  ;;  %v984_v8 = vpack.c.bf16 %v567_v6, %v565_v5  ;;  %v564_v21 = vld [vmem:[%s1379_s29 + $0x140] sm:$0xff]  ;;  %v571_v23 = vld [vmem:[%s1379_s29 + $0x178] sm:$0xff]  ;;  %v570_v26 = vld [vmem:[%s1379_s29 + $0x170] sm:$0xff]  ;;  %v495_v58 = vshrl.u32 %v494_v54, 7 }
  0x4b   : > { %v568_v25 = vld [vmem:[%s1379_s29 + $0x160] sm:$0xff]  ;;  %v573_v28 = vld [vmem:[%s1379_s29 + $0x188] sm:$0xff]  ;;  %v575_v29 = vld [vmem:[%s1379_s29 + $0x198] sm:$0xff] }
  0x4c   : > { %959 = vmatpush1.bf16.msra.mxu0 %v958_v31  ;;  %v990_v27 = vpack.c.bf16 %v570_v26, %v568_v25  ;;  %v992_v30 = vpack.c.bf16 %v575_v29, %v573_v28  ;;  %v577_v34 = vld [vmem:[%s1379_s29 + $0x1a8] sm:$0xff]  ;;  %v579_v35 = vld [vmem:[%s1379_s29 + $0x1b8] sm:$0xff]  ;;  %v580_v42 = vld [vmem:[%s1379_s29 + $0x1c0] sm:$0xff]  ;;  %v496_v60 = vsub.s32 0, %v495_v58 }
  0x4d   : > { %1027 = vmatpush1.bf16.msra.mxu1 %v958_v31  ;;  %961 = vmatprep.subr.bf16.mxu0 %v960_v32  ;;  %v572_v31 = vld [vmem:[%s1379_s29 + $0x180] sm:$0xff]  ;;  %v996_v36 = vpack.c.bf16 %v579_v35, %v577_v34  ;;  %v581_v39 = vld [vmem:[%s1379_s29 + $0x1c8] sm:$0xff]  ;;  %v583_v41 = vld [vmem:[%s1379_s29 + $0x1d8] sm:$0xff] }
  0x4e   : > { %1012 = vmatprep.subr.bf16.mxu1 %v960_v32  ;;  %v574_v32 = vld [vmem:[%s1379_s29 + $0x190] sm:$0xff]  ;;  %v585_v45 = vld [vmem:[%s1379_s29 + $0x1e8] sm:$0xff]  ;;  %v587_v46 = vld [vmem:[%s1379_s29 + $0x1f8] sm:$0xff] }
  0x4f   : > { %v994_v33 = vpack.c.bf16 %v574_v32, %v572_v31  ;;  %v1004_v48 = vpack.c.bf16 %v587_v46, %v585_v45  ;;  %v508_v63 = vld [vmem:[%s1538_s4] sm:$0x3] }
  0x50   : > { %963 = vmatpush1.bf16.msra.mxu0 %v962_v37 }
  0x51   : > { %1028 = vmatpush1.bf16.msra.mxu1 %v962_v37  ;;  %965 = vmatprep.subr.bf16.mxu0 %v964_v38  ;;  %v576_v37 = vld [vmem:[%s1379_s29 + $0x1a0] sm:$0xff] }
  0x52   : > { %1013 = vmatprep.subr.bf16.mxu1 %v964_v38  ;;  %v578_v38 = vld [vmem:[%s1379_s29 + $0x1b0] sm:$0xff] }
  0x53   : > { %v998_v40 = vpack.c.bf16 %v578_v38, %v576_v37 }
  0x54   : > { %967 = vmatpush1.bf16.msra.mxu0 %v966_v43 }
  0x55   : > { %1029 = vmatpush1.bf16.msra.mxu1 %v966_v43  ;;  %969 = vmatprep.subr.bf16.mxu0 %v968_v44  ;;  %v582_v43 = vld [vmem:[%s1379_s29 + $0x1d0] sm:$0xff] }
  0x56   : > { %1014 = vmatprep.subr.bf16.mxu1 %v968_v44  ;;  %v1000_v44 = vpack.c.bf16 %v583_v41, %v581_v39  ;;  %v1002_v47 = vpack.c.bf16 %v582_v43, %v580_v42 }
  0x58   : > { %971 = vmatpush1.bf16.msra.mxu0 %v970_v49 }
  0x59   : > { %1030 = vmatpush1.bf16.msra.mxu1 %v970_v49  ;;  %973 = vmatprep.subr.bf16.mxu0 %v972_v50  ;;  %v584_v49 = vld [vmem:[%s1379_s29 + $0x1e0] sm:$0xff] }
  0x5a   : > { %1015 = vmatprep.subr.bf16.mxu1 %v972_v50  ;;  %v586_v50 = vld [vmem:[%s1379_s29 + $0x1f0] sm:$0xff] }
  0x5b   : > { %v1006_v51 = vpack.c.bf16 %v586_v50, %v584_v49 }
  0x5c   : > { %975 = vmatpush1.bf16.msra.mxu0 %v974_v55 }
  0x5d   : > { %1031 = vmatpush1.bf16.msra.mxu1 %v974_v55  ;;  %977 = vmatprep.subr.bf16.mxu0 %v976_v56 }
  0x5e   : > { %1016 = vmatprep.subr.bf16.mxu1 %v976_v56 }
  0x60   : > { %979 = vmatpush1.bf16.msra.mxu0 %v978_v61 }
  0x61   : > { %1032 = vmatpush1.bf16.msra.mxu1 %v978_v61  ;;  %981 = vmatprep.subr.bf16.mxu0 %v980_v62  ;;  %v500_v61 = vsub.s32 1, %v495_v58 }
  0x62   : > { %1017 = vmatprep.subr.bf16.mxu1 %v980_v62  ;;  %v492_v62 = vld [vmem:[%s1537_s3] sm:$0x3] }
  0x63   : > { %v497_v3 = vrot.slane %v492_v62, %v496_v60  ;;  %v501_v5 = vrot.slane %v492_v62, %v500_v61 }
  0x64   : > { %983 = vmatpush1.bf16.msra.mxu0 %v982_v7 }
  0x65   : > { %1033 = vmatpush1.bf16.msra.mxu1 %v982_v7  ;;  %985 = vmatprep.subr.bf16.mxu0 %v984_v8 }
  0x66   : > { %1018 = vmatprep.subr.bf16.mxu1 %v984_v8  ;;  %v513_v8 = vrot.slane %v508_v63, %v496_v60 }
  0xc9   : > { %v461_v9 = vpop.xlane.xlu0 %460 }
  0xca   : > { %v466_v10 = vmul.f32 0.00390625, %v461_v9  ;;  %v517_v9 = vrot.slane %v508_v63, %v500_v61 }
  0xcc   : > { %v1424_v11 = vsub.f32 %v1355_v0, %v466_v10  ;;  %v1427_v12 = vsub.f32 %v1360_v1, %v466_v10 }
  0xcd   : > { %v464_v13 = vpop.xlane.xlu0 %463 }
  0xce   : > { %v467_v14 = vmul.f32 0.00390625, %v464_v13  ;;  %v472_v15 = vmul.f32 %v1424_v11, %v1424_v11  ;;  %v473_v16 = vmul.f32 %v1427_v12, %v1427_v12 }
  0xd0   : > { %v1434_v17 = vsub.f32 %v1365_v2, %v467_v14  ;;  %v1437_v0 = vsub.f32 %v1372_v4, %v467_v14  ;;  %v476_v1 = vadd.f32 %v473_v16, %v472_v15  ;;  %v566_v2 = vld [vmem:[%s1379_s29 + $0x150] sm:$0xff]  ;;  %v569_v4 = vld [vmem:[%s1379_s29 + $0x168] sm:$0xff] }
  0xd1   : > { %v986_v22 = vpack.c.bf16 %v566_v2, %v564_v21  ;;  %v988_v24 = vpack.c.bf16 %v571_v23, %v569_v4 }
  0xd2   : > { %477 = vadd.xlane.f32.xlu1 %v476_v1  ;;  %v474_v18 = vmul.f32 %v1434_v17, %v1434_v17  ;;  %v475_v19 = vmul.f32 %v1437_v0, %v1437_v0 }
  0xd3   : > { %987 = vmatpush1.bf16.msra.mxu0 %v986_v22  ;;  %1034 = vmatpush1.bf16.msra.mxu1 %v986_v22 }
  0xd4   : > { %v479_v20 = vadd.f32 %v475_v19, %v474_v18  ;;  %989 = vmatprep.subr.bf16.mxu0 %v988_v24  ;;  %1019 = vmatprep.subr.bf16.mxu1 %v988_v24 }
  0xd6   : > { %480 = vadd.xlane.f32.xlu1 %v479_v20 }
  0xd7   : > { %991 = vmatpush1.bf16.msra.mxu0 %v990_v27  ;;  %1035 = vmatpush1.bf16.msra.mxu1 %v990_v27 }
  0xd8   : > { %993 = vmatprep.subr.bf16.mxu0 %v992_v30  ;;  %1020 = vmatprep.subr.bf16.mxu1 %v992_v30 }
  0xdb   : > { %995 = vmatpush1.bf16.msra.mxu0 %v994_v33  ;;  %1036 = vmatpush1.bf16.msra.mxu1 %v994_v33 }
  0xdc   : > { %997 = vmatprep.subr.bf16.mxu0 %v996_v36  ;;  %1021 = vmatprep.subr.bf16.mxu1 %v996_v36 }
  0xdf   : > { %999 = vmatpush1.bf16.msra.mxu0 %v998_v40  ;;  %1037 = vmatpush1.bf16.msra.mxu1 %v998_v40 }
  0xe0   : > { %1001 = vmatprep.subr.bf16.mxu0 %v1000_v44  ;;  %1022 = vmatprep.subr.bf16.mxu1 %v1000_v44 }
  0xe3   : > { %1003 = vmatpush1.bf16.msra.mxu0 %v1002_v47  ;;  %1038 = vmatpush1.bf16.msra.mxu1 %v1002_v47 }
  0xe4   : > { %1005 = vmatprep.subr.bf16.mxu0 %v1004_v48  ;;  %1023 = vmatprep.subr.bf16.mxu1 %v1004_v48 }
  0xe7   : > { %1007 = vmatpush1.bf16.msra.mxu0 %v1006_v51  ;;  %1039 = vmatpush1.bf16.msra.mxu1 %v1006_v51 }
 0x15f   : > { %v478_v52 = vpop.xlane.xlu1 %477 }
 0x160   : > { %v482_v53 = vmul.f32 0.00390625, %v478_v52 }
 0x162   : > { %v484_v55 = vadd.f32 1e-05, %v482_v53 }
 0x163   : > { %v481_v56 = vpop.xlane.xlu1 %480 }
 0x164   : > { %1080 = vrsqrt.f32 %v484_v55  ;;  %v483_v57 = vmul.f32 0.00390625, %v481_v56 }
 0x166   : > { %v485_v59 = vadd.f32 1e-05, %v483_v57 }
 0x168   : > { %1082 = vrsqrt.f32 %v485_v59 }
 0x16e   : > { %v1081_v6 = vpop.eup %1080 }
 0x16f   : > { %v489_v7 = vmul.f32 %v1081_v6, %v1427_v12  ;;  %v488_v10 = vmul.f32 %v1081_v6, %v1424_v11  ;;  %v588_v11 = vld [vmem:[%s451_s12] sm:$0x3] }
 0x170   : > { %v593_v22 = vrot.slane %v588_v11, %v496_v60 }
 0x171   : > { %v505_v13 = vmul.f32 %v501_v5, %v489_v7  ;;  %v504_v14 = vmul.f32 %v497_v3, %v488_v10 }
 0x172   : > { %v1083_v15 = vpop.eup %1082 }
 0x173   : > { %v521_v16 = vadd.f32 %v517_v9, %v505_v13  ;;  %v520_v1 = vadd.f32 %v513_v8, %v504_v14  ;;  %v491_v18 = vmul.f32 %v1083_v15, %v1437_v0  ;;  %v490_v19 = vmul.f32 %v1083_v15, %v1434_v17 }
 0x174   : > { %v597_v0 = vrot.slane %v588_v11, %v500_v61 }
 0x175   : > { %664 = vmatprep.mubr.f32.mxu0 %v521_v16  ;;  %v507_v20 = vmul.f32 %v501_v5, %v491_v18  ;;  %v506_v21 = vmul.f32 %v497_v3, %v490_v19 }
 0x176   : > { %665 = vmatmul.mubr.f32.vlgmr.msra.gmra.mrb[0].mxu0 %v520_v1 }
 0x177   : > { %v523_v2 = vadd.f32 %v517_v9, %v507_v20  ;;  %v522_v12 = vadd.f32 %v513_v8, %v506_v21 }
 0x179   : > { %670 = vmatprep.mubr.f32.mxu1 %v523_v2 }
 0x17a   : > { %671 = vmatmul.mubr.f32.vlgmr.msra.gmra.mrb[0].mxu1 %v522_v12 }
 0x249   : > { %v666_v4 = vpop.f32.mrb[0].mxu0 }
 0x24a   : > { %v1479_v17 = vadd.f32 %v666_v4, %v593_v22  ;;  %v668_v23 = vpop.f32.mrb[1].mxu0 }
 0x24b   : > { %v1481_v24 = vadd.f32 %v668_v23, %v597_v0 }
 0x24c   : > { %v1484_v25 = vmul.f32 0.70710677, %v1479_v17 }
 0x24d   : > { %v1487_v26 = vmul.f32 0.70710677, %v1481_v24  ;;  %v672_v27 = vpop.f32.mrb[0].mxu1 }
 0x24e   : > { %v685_v28 = vand.u32 2147483647, %v1484_v25  ;;  %v1490_v29 = vadd.f32 %v672_v27, %v593_v22  ;;  %v674_v30 = vpop.f32.mrb[1].mxu1  ;;  %vm761_vm0 = vcmp.ge.f32.partialorder %v1484_v25, 0.0 }
 0x24f   : > { %v686_v31 = vand.u32 2147483647, %v1487_v26  ;;  %v1493_v32 = vadd.f32 %v674_v30, %v597_v0  ;;  %vm762_vm1 = vcmp.ge.f32.partialorder %v1487_v26, 0.0 }
 0x250   : > { %v689_v33 = vmul.f32 0.3275911, %v685_v28  ;;  %v1496_v34 = vmul.f32 0.70710677, %v1490_v29  ;;  %v737_v45 = vsub.f32 0.0, %v685_v28  ;;  %v679_v26 = vmul.f32 0.5, %v1490_v29 }
 0x251   : > { %v690_v35 = vmul.f32 0.3275911, %v686_v31  ;;  %v1499_v36 = vmul.f32 0.70710677, %v1493_v32  ;;  %v738_v46 = vsub.f32 0.0, %v686_v31 }
 0x252   : > { %v693_v37 = vadd.f32 1.0, %v689_v33  ;;  %v687_v38 = vand.u32 2147483647, %v1496_v34  ;;  %v741_v48 = vmul.f32 %v737_v45, %v685_v28  ;;  %vm763_vm2 = vcmp.ge.f32.partialorder %v1496_v34, 0.0 }
 0x253   : > { %v694_v39 = vadd.f32 1.0, %v690_v35  ;;  %v688_v40 = vand.u32 2147483647, %v1499_v36  ;;  %v742_v52 = vmul.f32 %v738_v46, %v686_v31  ;;  %vm764_vm3 = vcmp.ge.f32.partialorder %v1499_v36, 0.0 }
 0x254   : > { %1084 = vrcp.f32 %v693_v37  ;;  %v691_v41 = vmul.f32 0.3275911, %v687_v38  ;;  %v739_v49 = vsub.f32 0.0, %v687_v38  ;;  %v745_v57 = vmul.f32 1.442695, %v741_v48 }
 0x255   : > { %1086 = vrcp.f32 %v694_v39  ;;  %v692_v42 = vmul.f32 0.3275911, %v688_v40  ;;  %v740_v53 = vsub.f32 0.0, %v688_v40  ;;  %v747_v62 = vmul.f32 1.442695, %v742_v52 }
 0x256   : > { %v695_v43 = vadd.f32 1.0, %v691_v41  ;;  %v743_v59 = vmul.f32 %v739_v49, %v687_v38 }
 0x257   : > { %v696_v44 = vadd.f32 1.0, %v692_v42  ;;  %v744_v3 = vmul.f32 %v740_v53, %v688_v40 }
 0x258   : > { %1088 = vrcp.f32 %v695_v43  ;;  %v749_v10 = vmul.f32 1.442695, %v743_v59  ;;  %v678_v59 = vmul.f32 0.5, %v1481_v24 }
 0x259   : > { %1090 = vrcp.f32 %v696_v44  ;;  %v751_v16 = vmul.f32 1.442695, %v744_v3 }
 0x25a   : > { %1092 = vpow2.f32 %v745_v57 }
 0x25b   : > { %1094 = vpow2.f32 %v747_v62 }
 0x25c   : > { %1096 = vpow2.f32 %v749_v10 }
 0x25d   : > { %1098 = vpow2.f32 %v751_v16 }
 0x25e   : > { %v1085_v47 = vpop.eup %1084 }
 0x25f   : > { %v1087_v50 = vpop.eup %1086  ;;  %v701_v51 = vmul.f32 1.0614054, %v1085_v47 }
 0x260   : > { %v702_v54 = vmul.f32 1.0614054, %v1087_v50 }
 0x261   : > { %v705_v55 = vadd.f32 -1.4531521, %v701_v51 }
 0x262   : > { %v1089_v56 = vpop.eup %1088  ;;  %v706_v58 = vadd.f32 -1.4531521, %v702_v54 }
 0x263   : > { %v1091_v60 = vpop.eup %1090  ;;  %v709_v61 = vmul.f32 %v1085_v47, %v705_v55  ;;  %v703_v63 = vmul.f32 1.0614054, %v1089_v56  ;;  %v677_v55 = vmul.f32 0.5, %v1479_v17 }
 0x264   : > { %v710_v5 = vmul.f32 %v1087_v50, %v706_v58  ;;  %v704_v6 = vmul.f32 1.0614054, %v1091_v60  ;;  %v1093_v33 = vpop.eup %1092 }
 0x265   : > { %v713_v7 = vadd.f32 1.4214138, %v709_v61  ;;  %v707_v8 = vadd.f32 -1.4531521, %v703_v63  ;;  %v1095_v38 = vpop.eup %1094 }
 0x266   : > { %v714_v9 = vadd.f32 1.4214138, %v710_v5  ;;  %v708_v13 = vadd.f32 -1.4531521, %v704_v6  ;;  %v1097_v45 = vpop.eup %1096  ;;  %v680_v6 = vmul.f32 0.5, %v1493_v32 }
 0x267   : > { %v717_v14 = vmul.f32 %v1085_v47, %v713_v7  ;;  %v711_v15 = vmul.f32 %v1089_v56, %v707_v8  ;;  %v1099_v49 = vpop.eup %1098 }
 0x268   : > { %v718_v1 = vmul.f32 %v1087_v50, %v714_v9  ;;  %v712_v18 = vmul.f32 %v1091_v60, %v708_v13 }
 0x269   : > { %v721_v19 = vadd.f32 -0.28449672, %v717_v14  ;;  %v715_v20 = vadd.f32 1.4214138, %v711_v15 }
 0x26a   : > { %v722_v21 = vadd.f32 -0.28449672, %v718_v1  ;;  %v716_v2 = vadd.f32 1.4214138, %v712_v18 }
 0x26b   : > { %v725_v12 = vmul.f32 %v1085_v47, %v721_v19  ;;  %v719_v11 = vmul.f32 %v1089_v56, %v715_v20 }
 0x26c   : > { %v726_v22 = vmul.f32 %v1087_v50, %v722_v21  ;;  %v720_v0 = vmul.f32 %v1091_v60, %v716_v2 }
 0x26d   : > { %v729_v4 = vadd.f32 0.2548296, %v725_v12  ;;  %v723_v23 = vadd.f32 -0.28449672, %v719_v11 }
 0x26e   : > { %v730_v27 = vadd.f32 0.2548296, %v726_v22  ;;  %v724_v28 = vadd.f32 -0.28449672, %v720_v0 }
 0x26f   : > { %v733_v30 = vmul.f32 %v1085_v47, %v729_v4  ;;  %v727_v31 = vmul.f32 %v1089_v56, %v723_v23 }
 0x270   : > { %v734_v35 = vmul.f32 %v1087_v50, %v730_v27  ;;  %v728_v37 = vmul.f32 %v1091_v60, %v724_v28 }
 0x271   : > { %v753_v39 = vmul.f32 %v1093_v33, %v733_v30  ;;  %v731_v40 = vadd.f32 0.2548296, %v727_v31 }
 0x272   : > { %v754_v41 = vmul.f32 %v1095_v38, %v734_v35  ;;  %v732_v42 = vadd.f32 0.2548296, %v728_v37 }
 0x273   : > { %v757_v43 = vsub.f32 1.0, %v753_v39  ;;  %v735_v44 = vmul.f32 %v1089_v56, %v731_v40 }
 0x274   : > { %v758_v46 = vsub.f32 1.0, %v754_v41  ;;  %v736_v48 = vmul.f32 %v1091_v60, %v732_v42 }
 0x275   : > { %v765_v51 = vsub.f32 0.0, %v757_v43  ;;  %v755_v52 = vmul.f32 %v1097_v45, %v735_v44 }
 0x276   : > { %v766_v47 = vsub.f32 0.0, %v758_v46  ;;  %v756_v50 = vmul.f32 %v1099_v49, %v736_v48 }
 0x277   : > { %v769_v53 = vsel %vm761_vm0, %v757_v43, %v765_v51  ;;  %v759_v54 = vsub.f32 1.0, %v755_v52 }
 0x278   : > { %v773_v57 = vadd.f32 1.0, %v769_v53  ;;  %v770_v56 = vsel %vm762_vm1, %v758_v46, %v766_v47  ;;  %v760_v58 = vsub.f32 1.0, %v756_v50 }
 0x279   : > { %v774_v60 = vadd.f32 1.0, %v770_v56  ;;  %v767_v61 = vsub.f32 0.0, %v759_v54 }
 0x27a   : > { %v777_v62 = vmul.f32 %v773_v57, %v677_v55  ;;  %v768_v63 = vsub.f32 0.0, %v760_v58 }
 0x27b   : > { %v778_v25 = vmul.f32 %v774_v60, %v678_v59  ;;  %v771_v3 = vsel %vm763_vm2, %v759_v54, %v767_v61  ;;  %791 = sbr.rel (!%p1205_p6) target bundleno = 650 (0x28a), region = 67 }
 0x27c   : > { %781 = vst [vmem:[%s433_s18] sm:$0xff] %v777_v62  ;;  %v775_v17 = vadd.f32 1.0, %v771_v3  ;;  %v772_v5 = vsel %vm764_vm3, %v760_v58, %v768_v63 }
 0x27d   : > { %782 = vst [vmem:[%s433_s18 + $0x8] sm:$0xff] %v778_v25  ;;  %v776_v24 = vadd.f32 1.0, %v772_v5 }
 0x27e   : > { %v779_v7 = vmul.f32 %v775_v17, %v679_v26 }
 0x27f   : > { %v780_v8 = vmul.f32 %v776_v24, %v680_v6 }
 0x280   : > { %783 = vst [vmem:[%s433_s18 + $0x10] sm:$0xff] %v779_v7 }
 0x281   : > { %784 = vst [vmem:[%s433_s18 + $0x18] sm:$0xff] %v780_v8 }
 0x283   : > { %v810_v34 = vld [vmem:[%s433_s18] sm:$0xff] }
 0x284   : > { %v812_v36 = vld [vmem:[%s433_s18 + $0x8] sm:$0xff]  ;;  %811 = vst [vmem:[%s797_s17] sm:$0xff] %v810_v34 }
 0x285   : > { %813 = vst [vmem:[%s797_s17 + $0x8] sm:$0xff] %v812_v36 }
 0x287   : > { %v814_v9 = vld [vmem:[%s433_s18 + $0x10] sm:$0xff] }
 0x288   : > { %v816_v29 = vld [vmem:[%s433_s18 + $0x18] sm:$0xff]  ;;  %815 = vst [vmem:[%s797_s17 + $0x20] sm:$0xff] %v814_v9 }
 0x289   : > { %817 = vst [vmem:[%s797_s17 + $0x28] sm:$0xff] %v816_v29 }
 0x28a PF: > { %s15_s22 = sadd.s32 1, %s1138_s22   ;;  %s1541_s18 = smov %s1126_s19 }
 0x28b   : > { %p12_p12 = scmp.ge.s32.totalorder %s15_s22, 4   ;;  %s1542_s19 = smov %s1210_s28 }
 0x28c   : > { %s1543_s20 = smov %s1134_s21  ;;  %s1544_s21 = smov %s1546_s23 }
 0x28d   :  { %14 = sbr.rel (!%p12_p12) target bundleno = 3 (0x3), region = 127 }

// kernel: transformer_block.6
= control target key start
LH: loop header
LB: loop body
LE: loop exit
PB: predicated region body
PF: predicated region fallthrough
CT: control target
= control target key end

     0   :  { %s2289_s12 = smov 0   ;;  %s2291_s13 = smov 0   ;;  %s2581_s0 = inlined_call_operand.vmem [shape: f32[2,8,768], index: 0, kind: input, shape index: {}, may-alias: {0,1,2}]   ;;  %s2582_s1 = inlined_call_operand.vmem [shape: f32[2,8,768], index: 1, kind: input, shape index: {}, may-alias: {0,1,2}]   ;;  %s2583_s2 = inlined_call_operand.vmem [shape: f32[2,8,768], index: 2, kind: input, shape index: {}, may-alias: {0,1,2}]   ;;  %s2584_s3 = inlined_call_operand.vmem [shape: f32[2,8,256], index: 3, kind: output, shape index: {}]  }
   0x1   :  { %s2293_s14 = smov 0  }
   0x2 LB: > { %s32_s15 = sadd.s32 1, %s2254_s13  ;;  %p1996_p0 = scmp.ge.s32.totalorder %s2258_s14, 1  ;;  %s2258_s14 = sphi %s2293_s14, %s13_s14   ;;  %s2254_s13 = sphi %s2291_s13, %s2586_s13   ;;  %s2250_s12 = sphi %s2289_s12, %s2585_s12  }
   0x3   : > { %p34_p1 = scmp.ge.s32.totalorder %s32_s15, 2  ;;  %p198_p2 = scmp.lt.s32.totalorder %s2258_s14, 3 }
   0x5   : > { %s2588_s15 = smov (%p34_p1, %s32_s15), 0  ;;  %p199_p3 = pnand %p1996_p0, %p198_p2 }
   0x6   : > { %p250_p4 = scmp.lt.s32.totalorder (!%p199_p3), %s2250_s12, 1  ;;  %v2260_v0 = vmov (!%p199_p3), 0.0   ;;  %vm2261_vm0 = vmmov (!%p199_p3), 0   ;;  %vm308_vm1 = vcmask (!%p199_p3), 261120   ;;  %s2262_s23 = smov (!%p199_p3), 96   ;;  %v2263_v3 = vmov (!%p199_p3), 0  }
   0x7   : > { %202 = sbr.rel (%p199_p3) target bundleno = 1518 (0x5ee), region = 32  ;;  %2065 = vmatprep.subr.mxu0 (!%p199_p3), %v2260_v0  ;;  %2067 = vmatprep.mubr.msk.f32.mxu0 (!%p199_p3), %vm2261_vm0, %v2260_v0  ;;  %s2264_s24 = smov (!%p199_p3), 64   ;;  %vm385_vm2 = vcmask (!%p199_p3), 64512   ;;  %v2266_v35 = vmov (!%p199_p3), 32   ;;  %v2267_v54 = vmov (!%p199_p3), 64   ;;  %vm1775_vm3 = vcmask (!%p199_p3), 523264  }
   0x8   : > { %2070 = vmatprep.subr.mxu1 (!%p199_p3), %v2260_v0  ;;  %2072 = vmatprep.mubr.msk.f32.mxu1 (!%p199_p3), %vm2261_vm0, %v2260_v0  ;;  %s2265_s25 = smov (!%p199_p3), 32   ;;  %vm1777_vm4 = vcmask (!%p199_p3), 785408  }
   0x9   : > { %2179 = vset.pattern.permute.xlu0 (!%p199_p3), %v2263_v3  ;;  %2180 = vset.pattern.permute.xlu1 (!%p199_p3), %v2263_v3 }
   0xe   : > { %s2590_s12 = smov (!%p250_p4, %s2250_s12), 1 }
   0xf   : > { %s2316_s16 = smul.u32 48, %s2590_s12  ;;  %s2032_s29 = sshll.u32 %s2590_s12, 4 }
  0x10   : > { %s287_s5 = scalar_lea.vmem %s2584_s3, %s2032_s29 }
  0x11   : > { %s1926_s19 = scalar_lea.vmem %s2582_s1, %s2316_s16  ;;  %s258_s22 = scalar_lea.vmem %s2581_s0, %s2316_s16 }
  0x12   : > { %v2002_v1 = vld [vmem:[%s1926_s19 + $0x10] sm:$0xff]  ;;  %v298_v2 = vld [vmem:[%s258_s22] sm:$0xff]  ;;  %v2003_v4 = vld [vmem:[%s1926_s19 + $0x18] sm:$0xff]  ;;  %s2350_s28 = scalar_lea.vmem %s2583_s2, %s2316_s16 }
  0x13   : > { %2066 = vmatpush3.xpose.msk.msra.mxu0 %vm308_vm1, %v2002_v1  ;;  %491 = vrot.lane.b32.xlu1 %v2002_v1, %s2262_s23  ;;  %v299_v5 = vld [vmem:[%s258_s22 + $0x8] sm:$0xff]  ;;  %v2353_v9 = vld [vmem:[%s2350_s28 + $0x20] sm:$0xff] }
  0x14   : > { %2080 = vmatprep.subr.mxu0 %v2260_v0  ;;  %2071 = vmatpush3.msra.mxu1 %v2353_v9 }
  0x15   : > { %2075 = vmatprep.subr.mxu1 %v2260_v0 }
  0x16   : > { %2068 = vmatmul.mubr.msk.f32.vlgmr.msra.gmra.mrb[0].mxu0 %vm308_vm1, %v298_v2 }
  0x17   : > { %2082 = vmatprep.mubr.msk.f32.mxu0 %vm2261_vm0, %v2260_v0  ;;  %489 = vrot.lane.b32.xlu1 %v298_v2, %s2262_s23 }
  0x1b   : > { %676 = vrot.lane.b32.xlu1 %v2002_v1, %s2264_s24 }
  0x1f   : > { %674 = vrot.lane.b32.xlu1 %v298_v2, %s2264_s24 }
  0x23   : > { %860 = vrot.lane.b32.xlu1 %v2002_v1, %s2265_s25 }
  0x27   : > { %858 = vrot.lane.b32.xlu1 %v298_v2, %s2265_s25 }
  0x2b   : > { %1223 = vrot.lane.b32.xlu1 %v2003_v4, %s2262_s23 }
  0x2f   : > { %1221 = vrot.lane.b32.xlu1 %v299_v5, %s2262_s23 }
  0x33   : > { %1408 = vrot.lane.b32.xlu1 %v2003_v4, %s2264_s24 }
  0x37   : > { %1406 = vrot.lane.b32.xlu1 %v299_v5, %s2264_s24 }
  0x3b   : > { %1592 = vrot.lane.b32.xlu1 %v2003_v4, %s2265_s25 }
  0x3f   : > { %1590 = vrot.lane.b32.xlu1 %v299_v5, %s2265_s25 }
  0x43   : > { %588 = vrot.lane.b32.xlu1 %v2353_v9, %s2262_s23 }
  0x85   : > { %v492_v10 = vpop.permute.xlu1 %491 }
  0x89   : > { %v490_v11 = vpop.permute.xlu1 %489 }
  0x8d   : > { %v677_v12 = vpop.permute.xlu1 %676 }
  0x91   : > { %v675_v13 = vpop.permute.xlu1 %674 }
  0x95   : > { %v861_v14 = vpop.permute.xlu1 %860 }
  0x99   : > { %v859_v15 = vpop.permute.xlu1 %858 }
  0x9d   : > { %v1224_v16 = vpop.permute.xlu1 %1223 }
  0xa1   : > { %v1222_v17 = vpop.permute.xlu1 %1221 }
  0xa5   : > { %v1409_v18 = vpop.permute.xlu1 %1408 }
  0xa9   : > { %v1407_v19 = vpop.permute.xlu1 %1406 }
  0xad   : > { %v1593_v23 = vpop.permute.xlu1 %1592 }
  0xb1   : > { %v1591_v24 = vpop.permute.xlu1 %1590 }
  0xb5   : > { %v589_v25 = vpop.permute.xlu1 %588 }
  0xb6   : > { %2081 = vmatpush3.msra.mxu0 %v589_v25 }
  0xb7   : > { %2090 = vmatprep.subr.mxu0 %v2260_v0 }
  0xe9   : > { %v381_v6 = vpop.f32.mrb[0].mxu0 }
  0xea   : > { %v2069_v7 = vpop.f32.mrb[1].mxu0  ;;  %v386_v8 = vsel %vm385_vm2, %v381_v6, -inf }
  0xeb   : > { %387 = vmax.xlane.f32.xlu0 %v386_v8 }
 0x178   : > { %v388_v20 = vpop.xlane.xlu0 %387 }
 0x179   : > { %v390_v21 = vsub.f32 -inf, %v388_v20  ;;  %395 = vperm.xlu0 %2179, %v388_v20  }
 0x17b   : > { %v391_v22 = vmul.f32 1.442695, %v390_v21 }
 0x17d   : > { %2200 = vpow2.f32 %v391_v22  ;;  %2181 = vset.pattern.permute.xlu0 %v2266_v35 }
 0x187   : > { %v2201_v26 = vpop.eup %2200 }
 0x188   : > { %486 = vperm.xlu1 %2180, %v2201_v26   ;;  %v401_v32 = vmul.f32 0.0, %v2201_v26 }
 0x1f8   : > { %v396_v27 = vpop.permute.xlu0 %395 }
 0x1f9   : > { %v398_v28 = vsub.f32 %v381_v6, %v396_v27 }
 0x1fb   : > { %v399_v29 = vmul.f32 1.442695, %v398_v28 }
 0x1fd   : > { %2202 = vpow2.f32 %v399_v29 }
 0x207   : > { %v2203_v30 = vpop.eup %2202  ;;  %v2430_v60 = vpop.permute.xlu1 %486 }
 0x208   : > { %2073 = vmatmul.mubr.msk.f32.vlgmr.msra.gmra.mrb[0].mxu1 %vm385_vm2, %v2203_v30  ;;  %v402_v31 = vsel %vm385_vm2, %v2203_v30, 0.0 }
 0x209   : > { %2076 = vmatpush3.xpose.msk.msra.mxu1 %vm308_vm1, %v492_v10  ;;  %403 = vadd.xlane.f32.xlu0 %v402_v31 }
 0x20a   : > { %2077 = vmatprep.mubr.msk.f32.mxu1 %vm2261_vm0, %v2260_v0  ;;  %2085 = vmatprep.subr.mxu1 %v2260_v0 }
 0x20c   : > { %2078 = vmatmul.mubr.msk.f32.vlgmr.msra.gmra.mrb[2].mxu1 %vm308_vm1, %v490_v11 }
 0x20d   : > { %2086 = vmatpush3.xpose.msk.msra.mxu1 %vm308_vm1, %v677_v12  ;;  %2087 = vmatprep.mubr.msk.f32.mxu1 %vm2261_vm0, %v2260_v0 }
 0x20e   : > { %2095 = vmatprep.subr.mxu1 %v2260_v0 }
 0x210   : > { %2088 = vmatmul.mubr.msk.f32.vlgmr.msra.gmra.mrb[4].mxu1 %vm308_vm1, %v675_v13 }
 0x211   : > { %2096 = vmatpush3.xpose.msk.msra.mxu1 %vm308_vm1, %v861_v14  ;;  %2097 = vmatprep.mubr.msk.f32.mxu1 %vm2261_vm0, %v2260_v0  ;;  %v2456_v14 = vld [vmem:[%s2350_s28 + $0x28] sm:$0xff] }
 0x212   : > { %2105 = vmatprep.subr.mxu1 %v2260_v0 }
 0x214   : > { %2098 = vmatmul.mubr.msk.f32.vlgmr.msra.gmra.mrb[6].mxu1 %vm308_vm1, %v859_v15 }
 0x215   : > { %2106 = vmatpush3.xpose.msk.msra.mxu1 %vm308_vm1, %v2003_v4  ;;  %2107 = vmatprep.mubr.msk.f32.mxu1 %vm2261_vm0, %v2260_v0 }
 0x216   : > { %2115 = vmatprep.subr.mxu1 %v2260_v0 }
 0x218   : > { %2108 = vmatmul.mubr.msk.f32.vlgmr.msra.gmra.mrb[8].mxu1 %vm308_vm1, %v299_v5  ;;  %v2268_v5 = vmov 96  }
 0x219   : > { %2116 = vmatpush3.xpose.msk.msra.mxu1 %vm308_vm1, %v1224_v16  ;;  %2117 = vmatprep.mubr.msk.f32.mxu1 %vm2261_vm0, %v2260_v0 }
 0x21a   : > { %2125 = vmatprep.subr.mxu1 %v2260_v0 }
 0x21c   : > { %2118 = vmatmul.mubr.msk.f32.vlgmr.msra.gmra.mrb[10].mxu1 %vm308_vm1, %v1222_v17 }
 0x21d   : > { %2126 = vmatpush3.xpose.msk.msra.mxu1 %vm308_vm1, %v1409_v18  ;;  %2127 = vmatprep.mubr.msk.f32.mxu1 %vm2261_vm0, %v2260_v0 }
 0x21e   : > { %2135 = vmatprep.subr.mxu1 %v2260_v0 }
 0x220   : > { %2128 = vmatmul.mubr.msk.f32.vlgmr.msra.gmra.mrb[12].mxu1 %vm308_vm1, %v1407_v19 }
 0x221   : > { %2136 = vmatpush3.xpose.msk.msra.mxu1 %vm308_vm1, %v1593_v23  ;;  %2137 = vmatprep.mubr.msk.f32.mxu1 %vm2261_vm0, %v2260_v0 }
 0x224   : > { %2138 = vmatmul.mubr.msk.f32.vlgmr.msra.gmra.mrb[14].mxu1 %vm308_vm1, %v1591_v24 }
 0x296   : > { %v404_v33 = vpop.xlane.xlu0 %403 }
 0x297   : > { %v405_v34 = vadd.f32 %v404_v33, %v401_v32 }
 0x299   : > { %481 = vperm.xlu1 %2180, %v405_v34  }
 0x29d   : > { %2182 = vset.pattern.permute.xlu1 %v2267_v54 }
 0x2db   : > { %v2397_v36 = vpop.f32.mrb[0].mxu1 }
 0x2dc   : > { %v2074_v37 = vpop.f32.mrb[1].mxu1 }
 0x2df   : > { %v2399_v38 = vpop.f32.mrb[2].mxu1 }
 0x2e0   : > { %v2079_v39 = vpop.f32.mrb[3].mxu1  ;;  %v567_v40 = vsel %vm385_vm2, %v2399_v38, -inf }
 0x2e1   : > { %568 = vmax.xlane.f32.xlu1 %v567_v40 }
 0x2e3   : > { %v2403_v41 = vpop.f32.mrb[4].mxu1 }
 0x2e4   : > { %v2089_v42 = vpop.f32.mrb[5].mxu1  ;;  %v752_v43 = vsel %vm385_vm2, %v2403_v41, -inf }
 0x2e5   : > { %753 = vmax.xlane.f32.xlu1 %v752_v43 }
 0x2e7   : > { %v2407_v44 = vpop.f32.mrb[6].mxu1 }
 0x2e8   : > { %v2099_v45 = vpop.f32.mrb[7].mxu1  ;;  %v936_v46 = vsel %vm385_vm2, %v2407_v44, -inf }
 0x2e9   : > { %937 = vmax.xlane.f32.xlu0 %v936_v46 }
 0x2eb   : > { %v2411_v47 = vpop.f32.mrb[8].mxu1 }
 0x2ec   : > { %v2109_v48 = vpop.f32.mrb[9].mxu1  ;;  %v1118_v49 = vsel %vm385_vm2, %v2411_v47, -inf }
 0x2ed   : > { %1119 = vmax.xlane.f32.xlu0 %v1118_v49 }
 0x2ef   : > { %v2415_v50 = vpop.f32.mrb[10].mxu1 }
 0x2f0   : > { %v2119_v51 = vpop.f32.mrb[11].mxu1  ;;  %v1299_v52 = vsel %vm385_vm2, %v2415_v50, -inf }
 0x2f1   : > { %1300 = vmax.xlane.f32.xlu0 %v1299_v52 }
 0x2f3   : > { %v2419_v53 = vpop.f32.mrb[12].mxu1 }
 0x2f4   : > { %v2129_v55 = vpop.f32.mrb[13].mxu1  ;;  %v1484_v56 = vsel %vm385_vm2, %v2419_v53, -inf }
 0x2f5   : > { %1485 = vmax.xlane.f32.xlu0 %v1484_v56 }
 0x2f7   : > { %v2424_v57 = vpop.f32.mrb[14].mxu1 }
 0x2f8   : > { %v1668_v58 = vsel %vm385_vm2, %v2424_v57, -inf  ;;  %v2139_v59 = vpop.f32.mrb[15].mxu1 }
 0x2f9   : > { %1669 = vmax.xlane.f32.xlu0 %v1668_v58 }
 0x30f   : > { %772 = vrot.lane.b32.xlu0 %v2353_v9, %s2264_s24 }
 0x318   : > { %v2432_v61 = vpop.permute.xlu1 %481 }
 0x36e   : > { %v569_v62 = vpop.xlane.xlu1 %568 }
 0x36f   : > { %v571_v63 = vsub.f32 -inf, %v569_v62  ;;  %576 = vperm.xlu0 %2181, %v569_v62  }
 0x371   : > { %v572_v1 = vmul.f32 1.442695, %v571_v63 }
 0x372   : > { %v2434_v2 = vpop.xlane.xlu1 %753 }
 0x373   : > { %2204 = vpow2.f32 %v572_v1  ;;  %761 = vperm.xlu1 %2182, %v2434_v2   ;;  %2184 = vset.pattern.permute.xlu0 %v2263_v3  ;;  %v756_v62 = vsub.f32 -inf, %v2434_v2 }
 0x376   : > { %v938_v4 = vpop.xlane.xlu0 %937 }
 0x377   : > { %2183 = vset.pattern.permute.xlu1 %v2268_v5  ;;  %v940_v11 = vsub.f32 -inf, %v938_v4 }
 0x378   : > { %945 = vperm.xlu1 %2183, %v938_v4   ;;  %v757_v4 = vmul.f32 1.442695, %v756_v62 }
 0x379   : > { %v941_v13 = vmul.f32 1.442695, %v940_v11 }
 0x37a   : > { %v1120_v6 = vpop.xlane.xlu0 %1119 }
 0x37b   : > { %1127 = vperm.xlu0 %2184, %v1120_v6   ;;  %v1122_v15 = vsub.f32 -inf, %v1120_v6  ;;  %2206 = vpow2.f32 %v941_v13 }
 0x37c   : > { %2185 = vset.pattern.permute.xlu1 %v2266_v35 }
 0x37d   : > { %v2440_v7 = vpop.eup %2204 }
 0x37e   : > { %671 = vperm.xlu1 %2185, %v2440_v7   ;;  %v1301_v8 = vpop.xlane.xlu0 %1300 }
 0x37f   : > { %2186 = vset.pattern.permute.xlu0 %v2266_v35  ;;  %v1303_v16 = vsub.f32 -inf, %v1301_v8 }
 0x380   : > { %1308 = vperm.xlu0 %2186, %v1301_v8  }
 0x381   : > { %v1304_v17 = vmul.f32 1.442695, %v1303_v16 }
 0x382   : > { %v2444_v10 = vpop.xlane.xlu0 %1485  ;;  %956 = vrot.lane.b32.xlu1 %v2353_v9, %s2265_s25  ;;  %v1123_v9 = vmul.f32 1.442695, %v1122_v15 }
 0x383   : > { %2191 = vset.pattern.permute.xlu1 %v2267_v54  ;;  %v1488_v6 = vsub.f32 -inf, %v2444_v10 }
 0x384   : > { %2187 = vset.pattern.permute.xlu0 %v2267_v54  ;;  %2208 = vpow2.f32 %v1123_v9 }
 0x385   : > { %1493 = vperm.xlu0 %2187, %v2444_v10   ;;  %v2464_v18 = vpop.eup %2206  ;;  %2210 = vpow2.f32 %v1304_v17  ;;  %v1489_v2 = vmul.f32 1.442695, %v1488_v6 }
 0x386   : > { %v2451_v12 = vpop.xlane.xlu0 %1669 }
 0x389   : > { %2188 = vset.pattern.permute.xlu0 %v2268_v5 }
 0x38a   : > { %1677 = vperm.xlu0 %2188, %v2451_v12   ;;  %v773_v21 = vpop.permute.xlu0 %772 }
 0x38e   : > { %1320 = vrot.lane.b32.xlu0 %v2456_v14, %s2262_s23  ;;  %v2467_v19 = vpop.eup %2208 }
 0x38f   : > { %v2471_v20 = vpop.eup %2210 }
 0x392   : > { %1504 = vrot.lane.b32.xlu0 %v2456_v14, %s2264_s24 }
 0x396   : > { %1688 = vrot.lane.b32.xlu0 %v2456_v14, %s2265_s25 }
 0x39a   : > { %1039 = vperm.xlu0 %2188, %v2464_v18  }
 0x39e   : > { %2189 = vset.pattern.permute.xlu0 %v2263_v3 }
 0x39f   : > { %1218 = vperm.xlu0 %2189, %v2467_v19  }
 0x3a3   : > { %2190 = vset.pattern.permute.xlu0 %v2266_v35 }
 0x3a4   : > { %1403 = vperm.xlu0 %2190, %v2471_v20  }
 0x3a8   : > { %2195 = vset.pattern.permute.xlu0 %v2263_v3 }
 0x3ee   : > { %v577_v22 = vpop.permute.xlu0 %576 }
 0x3ef   : > { %v579_v23 = vsub.f32 %v2399_v38, %v577_v22 }
 0x3f1   : > { %v580_v24 = vmul.f32 1.442695, %v579_v23  ;;  %v1672_v23 = vsub.f32 -inf, %v2451_v12 }
 0x3f2   : > { %v762_v25 = vpop.permute.xlu1 %761 }
 0x3f3   : > { %2212 = vpow2.f32 %v580_v24  ;;  %v764_v26 = vsub.f32 %v2403_v41, %v762_v25  ;;  %v951_v24 = vmul.f32 0.0, %v2464_v18 }
 0x3f5   : > { %v765_v27 = vmul.f32 1.442695, %v764_v26  ;;  %v1673_v26 = vmul.f32 1.442695, %v1672_v23 }
 0x3f7   : > { %2214 = vpow2.f32 %v765_v27  ;;  %v946_v28 = vpop.permute.xlu1 %945 }
 0x3f8   : > { %v948_v29 = vsub.f32 %v2407_v44, %v946_v28 }
 0x3fa   : > { %v949_v30 = vmul.f32 1.442695, %v948_v29  ;;  %v1128_v31 = vpop.permute.xlu0 %1127 }
 0x3fb   : > { %v1130_v32 = vsub.f32 %v2411_v47, %v1128_v31 }
 0x3fc   : > { %2216 = vpow2.f32 %v949_v30  ;;  %v1314_v30 = vmul.f32 0.0, %v2471_v20 }
 0x3fd   : > { %v2213_v3 = vpop.eup %2212  ;;  %v1131_v33 = vmul.f32 1.442695, %v1130_v32  ;;  %v2480_v34 = vpop.permute.xlu1 %671 }
 0x3fe   : > { %2083 = vmatmul.mubr.msk.f32.vlgmr.msra.gmra.mrb[2].mxu0 %vm385_vm2, %v2213_v3  ;;  %v583_v37 = vsel %vm385_vm2, %v2213_v3, 0.0 }
 0x3ff   : > { %2218 = vpow2.f32 %v1131_v33  ;;  %2091 = vmatpush3.msra.mxu0 %v773_v21  ;;  %584 = vadd.xlane.f32.xlu1 %v583_v37  ;;  %v1309_v38 = vpop.permute.xlu0 %1308 }
 0x400   : > { %v1311_v39 = vsub.f32 %v2415_v50, %v1309_v38  ;;  %2092 = vmatprep.mubr.msk.f32.mxu0 %vm2261_vm0, %v2260_v0  ;;  %2100 = vmatprep.subr.mxu0 %v2260_v0 }
 0x401   : > { %v2215_v40 = vpop.eup %2214  ;;  %v957_v41 = vpop.permute.xlu1 %956 }
 0x402   : > { %v1312_v42 = vmul.f32 1.442695, %v1311_v39  ;;  %2093 = vmatmul.mubr.msk.f32.vlgmr.msra.gmra.mrb[4].mxu0 %vm385_vm2, %v2215_v40  ;;  %v768_v43 = vsel %vm385_vm2, %v2215_v40, 0.0 }
 0x403   : > { %769 = vadd.xlane.f32.xlu0 %v768_v43  ;;  %2101 = vmatpush3.msra.mxu0 %v957_v41 }
 0x404   : > { %2220 = vpow2.f32 %v1312_v42  ;;  %v1494_v44 = vpop.permute.xlu0 %1493  ;;  %2102 = vmatprep.mubr.msk.f32.mxu0 %vm2261_vm0, %v2260_v0  ;;  %2110 = vmatprep.subr.mxu0 %v2260_v0 }
 0x405   : > { %v1496_v45 = vsub.f32 %v2419_v53, %v1494_v44 }
 0x406   : > { %v2217_v46 = vpop.eup %2216 }
 0x407   : > { %v1497_v47 = vmul.f32 1.442695, %v1496_v45  ;;  %2103 = vmatmul.mubr.msk.f32.vlgmr.msra.gmra.mrb[6].mxu0 %vm385_vm2, %v2217_v46  ;;  %v952_v48 = vsel %vm385_vm2, %v2217_v46, 0.0 }
 0x408   : > { %953 = vadd.xlane.f32.xlu1 %v952_v48  ;;  %2111 = vmatpush3.msra.mxu0 %v2456_v14 }
 0x409   : > { %v2219_v49 = vpop.eup %2218  ;;  %2222 = vpow2.f32 %v1497_v47  ;;  %v1678_v50 = vpop.permute.xlu0 %1677  ;;  %2112 = vmatprep.mubr.msk.f32.mxu0 %vm2261_vm0, %v2260_v0  ;;  %2120 = vmatprep.subr.mxu0 %v2260_v0 }
 0x40a   : > { %v1680_v51 = vsub.f32 %v2424_v57, %v1678_v50  ;;  %v1134_v52 = vsel %vm385_vm2, %v2219_v49, 0.0 }
 0x40b   : > { %2113 = vmatmul.mubr.msk.f32.vlgmr.msra.gmra.mrb[8].mxu0 %vm385_vm2, %v2219_v49 }
 0x40c   : > { %v1681_v53 = vmul.f32 1.442695, %v1680_v51  ;;  %1135 = vadd.xlane.f32.xlu1 %v1134_v52  ;;  %2122 = vmatprep.mubr.msk.f32.mxu0 %vm2261_vm0, %v2260_v0 }
 0x40d   : > { %v1321_v55 = vpop.permute.xlu0 %1320 }
 0x40e   : > { %v2221_v56 = vpop.eup %2220  ;;  %2224 = vpow2.f32 %v1681_v53  ;;  %2121 = vmatpush3.msra.mxu0 %v1321_v55 }
 0x40f   : > { %2123 = vmatmul.mubr.msk.f32.vlgmr.msra.gmra.mrb[10].mxu0 %vm385_vm2, %v2221_v56  ;;  %v1315_v58 = vsel %vm385_vm2, %v2221_v56, 0.0  ;;  %2130 = vmatprep.subr.mxu0 %v2260_v0  ;;  %2226 = vpow2.f32 %v757_v4 }
 0x410   : > { %1316 = vadd.xlane.f32.xlu0 %v1315_v58  ;;  %2132 = vmatprep.mubr.msk.f32.mxu0 %vm2261_vm0, %v2260_v0  ;;  %2228 = vpow2.f32 %v1489_v2 }
 0x411   : > { %v1505_v57 = vpop.permute.xlu0 %1504  ;;  %2230 = vpow2.f32 %v1673_v26 }
 0x412   : > { %2131 = vmatpush3.msra.mxu0 %v1505_v57 }
 0x413   : > { %v2223_v59 = vpop.eup %2222  ;;  %2140 = vmatprep.subr.mxu0 %v2260_v0 }
 0x414   : > { %2133 = vmatmul.mubr.msk.f32.vlgmr.msra.gmra.mrb[12].mxu0 %vm385_vm2, %v2223_v59  ;;  %v1500_v63 = vsel %vm385_vm2, %v2223_v59, 0.0 }
 0x415   : > { %1501 = vadd.xlane.f32.xlu1 %v1500_v63  ;;  %v1689_v1 = vpop.permute.xlu0 %1688  ;;  %2142 = vmatprep.mubr.msk.f32.mxu0 %vm2261_vm0, %v2260_v0  ;;  %v582_v0 = vmul.f32 0.0, %v2440_v7  ;;  %v1133_v7 = vmul.f32 0.0, %v2467_v19 }
 0x416   : > { %2141 = vmatpush3.msra.mxu0 %v1689_v1 }
 0x418   : > { %v2225_v8 = vpop.eup %2224 }
 0x419   : > { %2143 = vmatmul.mubr.msk.f32.vlgmr.msra.gmra.mrb[14].mxu0 %vm385_vm2, %v2225_v8  ;;  %v2227_v11 = vpop.eup %2226  ;;  %v2519_v14 = vpop.permute.xlu0 %1039  ;;  %v1684_v19 = vsel %vm385_vm2, %v2225_v8, 0.0 }
 0x41a   : > { %v2229_v13 = vpop.eup %2228  ;;  %v767_v17 = vmul.f32 0.0, %v2227_v11 }
 0x41b   : > { %v1499_v18 = vmul.f32 0.0, %v2229_v13  ;;  %v2231_v33 = vpop.eup %2230 }
 0x41c   : > { %v1683_v57 = vmul.f32 0.0, %v2231_v33 }
 0x41e   : > { %v2521_v15 = vpop.permute.xlu0 %1218 }
 0x423   : > { %v2524_v9 = vpop.permute.xlu0 %1403 }
 0x426   : > { %855 = vperm.xlu1 %2191, %v2227_v11   ;;  %v1792_v11 = vsel %vm308_vm1, %v2430_v60, %v2480_v34 }
 0x42a   : > { %1587 = vperm.xlu1 %2191, %v2229_v13  }
 0x42e   : > { %2192 = vset.pattern.permute.xlu1 %v2266_v35 }
 0x48c   : > { %v585_v10 = vpop.xlane.xlu1 %584 }
 0x48d   : > { %v586_v16 = vadd.f32 %v585_v10, %v582_v0 }
 0x48f   : > { %666 = vperm.xlu1 %2192, %v586_v16  }
 0x490   : > { %v770_v21 = vpop.xlane.xlu0 %769 }
 0x491   : > { %v771_v22 = vadd.f32 %v770_v21, %v767_v17 }
 0x493   : > { %2193 = vset.pattern.permute.xlu1 %v2267_v54 }
 0x494   : > { %850 = vperm.xlu1 %2193, %v771_v22  }
 0x495   : > { %v954_v25 = vpop.xlane.xlu1 %953 }
 0x496   : > { %v955_v27 = vadd.f32 %v954_v25, %v951_v24  ;;  %v1795_v24 = vsel %vm308_vm1, %v2521_v15, %v2524_v9 }
 0x498   : > { %2194 = vset.pattern.permute.xlu1 %v2268_v5 }
 0x499   : > { %v1136_v28 = vpop.xlane.xlu1 %1135  ;;  %1034 = vperm.xlu1 %2194, %v955_v27  }
 0x49a   : > { %v1137_v29 = vadd.f32 %v1136_v28, %v1133_v7 }
 0x49c   : > { %1213 = vperm.xlu0 %2195, %v1137_v29  }
 0x49d   : > { %v1317_v12 = vpop.xlane.xlu0 %1316  ;;  %2196 = vset.pattern.permute.xlu1 %v2266_v35 }
 0x49e   : > { %v1318_v31 = vadd.f32 %v1317_v12, %v1314_v30 }
 0x4a0   : > { %1398 = vperm.xlu1 %2196, %v1318_v31   ;;  %2197 = vset.pattern.permute.xlu0 %v2267_v54 }
 0x4a2   : > { %v1502_v32 = vpop.xlane.xlu1 %1501 }
 0x4a3   : > { %v1503_v3 = vadd.f32 %v1502_v32, %v1499_v18 }
 0x4a4   : > { %2198 = vset.pattern.permute.xlu1 %v2268_v5 }
 0x4a5   : > { %1582 = vperm.xlu0 %2197, %v1503_v3   ;;  %1771 = vperm.xlu1 %2198, %v2231_v33  }
 0x4a9   : > { %2199 = vset.pattern.permute.xlu0 %v2268_v5  ;;  %v856_v5 = vpop.permute.xlu1 %855 }
 0x4aa   : > { %v1793_v13 = vsel %vm1775_vm3, %v1792_v11, %v856_v5 }
 0x4ab   : > { %v1794_v10 = vsel %vm1777_vm4, %v1793_v13, %v2519_v14 }
 0x4ac   : > { %v1800_v17 = vmul.f32 0.0, %v1794_v10 }
 0x4ad   : > { %v1588_v48 = vpop.permute.xlu1 %1587 }
 0x4c4   : > { %1685 = vadd.xlane.f32.xlu0 %v1684_v19 }
 0x4d1   : > { %v660_v20 = vpop.f32.mrb[2].mxu0 }
 0x4d2   : > { %v2084_v37 = vpop.f32.mrb[3].mxu0 }
 0x4d5   : > { %v844_v35 = vpop.f32.mrb[4].mxu0 }
 0x4d6   : > { %v2094_v38 = vpop.f32.mrb[5].mxu0 }
 0x4da   : > { %v1028_v39 = vpop.f32.mrb[6].mxu0 }
 0x4db   : > { %v2104_v40 = vpop.f32.mrb[7].mxu0 }
 0x4de   : > { %v1207_v54 = vpop.f32.mrb[8].mxu0 }
 0x4df   : > { %v2114_v41 = vpop.f32.mrb[9].mxu0 }
 0x4e2   : > { %v1392_v42 = vpop.f32.mrb[10].mxu0 }
 0x4e3   : > { %v2124_v43 = vpop.f32.mrb[11].mxu0 }
 0x4e7   : > { %v1576_v44 = vpop.f32.mrb[12].mxu0 }
 0x4e8   : > { %1819 = vrot.lane.b32.xlu0 %v1576_v44, %s2264_s24  ;;  %v2134_v45 = vpop.f32.mrb[13].mxu0 }
 0x4ec   : > { %v1760_v46 = vpop.f32.mrb[14].mxu0 }
 0x4ed   : > { %v2144_v47 = vpop.f32.mrb[15].mxu0 }
 0x50e   : > { %v667_v49 = vpop.permute.xlu1 %666 }
 0x50f   : > { %v1784_v1 = vsel %vm308_vm1, %v2432_v61, %v667_v49 }
 0x513   : > { %v851_v50 = vpop.permute.xlu1 %850 }
 0x514   : > { %v1785_v6 = vsel %vm1775_vm3, %v1784_v1, %v851_v50 }
 0x518   : > { %v1035_v51 = vpop.permute.xlu1 %1034 }
 0x519   : > { %v1786_v8 = vsel %vm1777_vm4, %v1785_v6, %v1035_v51 }
 0x51a   : > { %2232 = vrcp.f32 %v1786_v8 }
 0x51b   : > { %v1214_v52 = vpop.permute.xlu0 %1213 }
 0x51f   : > { %v1399_v53 = vpop.permute.xlu1 %1398 }
 0x520   : > { %v1787_v55 = vsel %vm308_vm1, %v1214_v52, %v1399_v53 }
 0x524   : > { %v1583_v56 = vpop.permute.xlu0 %1582  ;;  %v1772_v63 = vpop.permute.xlu1 %1771 }
 0x525   : > { %v1788_v58 = vsel %vm1775_vm3, %v1787_v55, %v1583_v56  ;;  %v2233_v23 = vpop.eup %2232 }
 0x551   : > { %v1686_v59 = vpop.xlane.xlu0 %1685 }
 0x552   : > { %v1687_v62 = vadd.f32 %v1686_v59, %v1683_v57 }
 0x554   : > { %1766 = vperm.xlu1 %2198, %v1687_v62  }
 0x558   : > { %1803 = vrot.lane.b32.xlu1 %v660_v20, %s2265_s25 }
 0x55a   : > { %v1820_v7 = vpop.permute.xlu0 %1819 }
 0x55c   : > { %1807 = vrot.lane.b32.xlu1 %v844_v35, %s2264_s24 }
 0x560   : > { %1811 = vrot.lane.b32.xlu1 %v1028_v39, %s2262_s23 }
 0x564   : > { %1815 = vrot.lane.b32.xlu1 %v1392_v42, %s2265_s25 }
 0x568   : > { %1823 = vrot.lane.b32.xlu1 %v1760_v46, %s2262_s23 }
 0x5d3   : > { %v1767_v4 = vpop.permute.xlu1 %1766 }
 0x5d4   : > { %v1789_v61 = vsel %vm1777_vm4, %v1788_v58, %v1767_v4 }
 0x5d5   : > { %2234 = vrcp.f32 %v1789_v61 }
 0x5d7   : > { %v1804_v2 = vpop.permute.xlu1 %1803 }
 0x5d8   : > { %v1826_v16 = vsel %vm308_vm1, %v2397_v36, %v1804_v2  ;;  %v1796_v36 = vsel %vm1775_vm3, %v1795_v24, %v1588_v48 }
 0x5d9   : > { %v1797_v26 = vsel %vm1777_vm4, %v1796_v36, %v1772_v63 }
 0x5da   : > { %v1801_v28 = vmul.f32 0.0, %v1797_v26 }
 0x5db   : > { %v1808_v0 = vpop.permute.xlu1 %1807 }
 0x5dc   : > { %v1827_v21 = vsel %vm1775_vm3, %v1826_v16, %v1808_v0 }
 0x5df   : > { %v1812_v22 = vpop.permute.xlu1 %1811  ;;  %v2235_v12 = vpop.eup %2234 }
 0x5e0   : > { %v1828_v60 = vsel %vm1777_vm4, %v1827_v21, %v1812_v22 }
 0x5e1   : > { %v1832_v34 = vadd.f32 %v1828_v60, %v1800_v17 }
 0x5e3   : > { %v1845_v14 = vmul.f32 %v2233_v23, %v1832_v34  ;;  %v1816_v25 = vpop.permute.xlu1 %1815 }
 0x5e4   : > { %v1829_v27 = vsel %vm308_vm1, %v1207_v54, %v1816_v25 }
 0x5e5   : > { %1847 = vst [vmem:[%s287_s5] sm:$0xff] %v1845_v14  ;;  %v1830_v29 = vsel %vm1775_vm3, %v1829_v27, %v1820_v7 }
 0x5e7   : > { %v1824_v30 = vpop.permute.xlu1 %1823 }
 0x5e8   : > { %v1831_v15 = vsel %vm1777_vm4, %v1830_v29, %v1824_v30 }
 0x5e9   : > { %v1833_v9 = vadd.f32 %v1831_v15, %v1801_v28 }
 0x5eb   : > { %v1846_v31 = vmul.f32 %v2235_v12, %v1833_v9 }
 0x5ed   : > { %1848 = vst [vmem:[%s287_s5 + $0x8] sm:$0xff] %v1846_v31 }
 0x5ee PF: > { %s13_s14 = sadd.s32 1, %s2258_s14   ;;  %s2585_s12 = smov %s2254_s13 }
 0x5ef   : > { %p10_p5 = scmp.ge.s32.totalorder %s13_s14, 4   ;;  %s2586_s13 = smov %s2588_s15 }
 0x5f1   :  { %12 = sbr.rel (!%p10_p5) target bundleno = 2 (0x2), region = 76 }

// kernel: transformer_block.9
= control target key start
LH: loop header
LB: loop body
LE: loop exit
PB: predicated region body
PF: predicated region fallthrough
CT: control target
= control target key end

     0   :  { %s974_s0 = inlined_call_operand.vmem [shape: f32[16,512], index: 0, kind: input, shape index: {}]   ;;  %s975_s1 = inlined_call_operand.vmem [shape: f32[512,256], index: 1, kind: input, shape index: {}]   ;;  %s976_s2 = inlined_call_operand.vmem [shape: f32[1,256], index: 2, kind: input, shape index: {}]   ;;  %s977_s3 = inlined_call_operand.vmem [shape: f32[16,256], index: 3, kind: input, shape index: {}]   ;;  %s978_s4 = inlined_call_operand.hbm [shape: f32[16,256], index: 4, kind: output, shape index: {}]  }
   0x1   :  { %v27_v0 = vld [vmem:[%s975_s1 + $0x8] sm:$0xff]  ;;  %v29_v1 = vld [vmem:[%s975_s1 + $0x18] sm:$0xff]  ;;  %v26_v2 = vld [vmem:[%s975_s1] sm:$0xff] }
   0x2   :  { %v348_v3 = vpack.c.bf16 %v29_v1, %v27_v0  ;;  %v28_v4 = vld [vmem:[%s975_s1 + $0x10] sm:$0xff]  ;;  %v91_v5 = vld [vmem:[%s975_s1 + $0x208] sm:$0xff]  ;;  %v93_v6 = vld [vmem:[%s975_s1 + $0x218] sm:$0xff] }
   0x3   :  { %v350_v7 = vpack.c.bf16 %v28_v4, %v26_v2  ;;  %v412_v8 = vpack.c.bf16 %v93_v6, %v91_v5  ;;  %v90_v9 = vld [vmem:[%s975_s1 + $0x200] sm:$0xff]  ;;  %v92_v10 = vld [vmem:[%s975_s1 + $0x210] sm:$0xff]  ;;  %v31_v11 = vld [vmem:[%s975_s1 + $0x28] sm:$0xff] }
   0x4   :  { %349 = vmatprep.subr.bf16.mxu1 %v348_v3  ;;  %v414_v12 = vpack.c.bf16 %v92_v10, %v90_v9  ;;  %v33_v13 = vld [vmem:[%s975_s1 + $0x38] sm:$0xff]  ;;  %v30_v14 = vld [vmem:[%s975_s1 + $0x20] sm:$0xff]  ;;  %v32_v15 = vld [vmem:[%s975_s1 + $0x30] sm:$0xff] }
   0x5   :  { %351 = vmatpush1.bf16.msra.mxu1 %v350_v7  ;;  %413 = vmatprep.subr.bf16.mxu0 %v412_v8  ;;  %v352_v16 = vpack.c.bf16 %v33_v13, %v31_v11  ;;  %v354_v17 = vpack.c.bf16 %v32_v15, %v30_v14  ;;  %v95_v18 = vld [vmem:[%s975_s1 + $0x228] sm:$0xff]  ;;  %v97_v19 = vld [vmem:[%s975_s1 + $0x238] sm:$0xff]  ;;  %v94_v20 = vld [vmem:[%s975_s1 + $0x220] sm:$0xff] }
   0x6   :  { %415 = vmatpush1.bf16.msra.mxu0 %v414_v12  ;;  %v416_v21 = vpack.c.bf16 %v97_v19, %v95_v18  ;;  %v96_v22 = vld [vmem:[%s975_s1 + $0x230] sm:$0xff]  ;;  %v35_v23 = vld [vmem:[%s975_s1 + $0x48] sm:$0xff]  ;;  %v37_v24 = vld [vmem:[%s975_s1 + $0x58] sm:$0xff] }
   0x7   :  { %353 = vmatprep.subr.bf16.mxu1 %v352_v16  ;;  %v418_v25 = vpack.c.bf16 %v96_v22, %v94_v20  ;;  %v356_v26 = vpack.c.bf16 %v37_v24, %v35_v23  ;;  %v34_v27 = vld [vmem:[%s975_s1 + $0x40] sm:$0xff]  ;;  %v36_v28 = vld [vmem:[%s975_s1 + $0x50] sm:$0xff]  ;;  %v99_v29 = vld [vmem:[%s975_s1 + $0x248] sm:$0xff] }
   0x8   :  { %417 = vmatprep.subr.bf16.mxu0 %v416_v21  ;;  %v101_v30 = vld [vmem:[%s975_s1 + $0x258] sm:$0xff]  ;;  %v98_v31 = vld [vmem:[%s975_s1 + $0x240] sm:$0xff]  ;;  %v100_v32 = vld [vmem:[%s975_s1 + $0x250] sm:$0xff]  ;;  %v358_v33 = vpack.c.bf16 %v36_v28, %v34_v27 }
   0x9   :  { %355 = vmatpush1.bf16.msra.mxu1 %v354_v17  ;;  %v420_v34 = vpack.c.bf16 %v101_v30, %v99_v29  ;;  %v39_v35 = vld [vmem:[%s975_s1 + $0x68] sm:$0xff]  ;;  %v41_v36 = vld [vmem:[%s975_s1 + $0x78] sm:$0xff]  ;;  %v38_v37 = vld [vmem:[%s975_s1 + $0x60] sm:$0xff]  ;;  %v422_v38 = vpack.c.bf16 %v100_v32, %v98_v31 }
   0xa   :  { %419 = vmatpush1.bf16.msra.mxu0 %v418_v25  ;;  %357 = vmatprep.subr.bf16.mxu1 %v356_v26  ;;  %v360_v39 = vpack.c.bf16 %v41_v36, %v39_v35  ;;  %v40_v40 = vld [vmem:[%s975_s1 + $0x70] sm:$0xff]  ;;  %v103_v41 = vld [vmem:[%s975_s1 + $0x268] sm:$0xff]  ;;  %v105_v42 = vld [vmem:[%s975_s1 + $0x278] sm:$0xff] }
   0xb   :  { %421 = vmatprep.subr.bf16.mxu0 %v420_v34  ;;  %v424_v43 = vpack.c.bf16 %v105_v42, %v103_v41  ;;  %v102_v44 = vld [vmem:[%s975_s1 + $0x260] sm:$0xff]  ;;  %v104_v45 = vld [vmem:[%s975_s1 + $0x270] sm:$0xff]  ;;  %v43_v46 = vld [vmem:[%s975_s1 + $0x88] sm:$0xff]  ;;  %v362_v48 = vpack.c.bf16 %v40_v40, %v38_v37 }
   0xc   :  { %v45_v47 = vld [vmem:[%s975_s1 + $0x98] sm:$0xff]  ;;  %v107_v49 = vld [vmem:[%s975_s1 + $0x288] sm:$0xff]  ;;  %v426_v51 = vpack.c.bf16 %v104_v45, %v102_v44  ;;  %v42_v53 = vld [vmem:[%s975_s1 + $0x80] sm:$0xff] }
   0xd   :  { %359 = vmatpush1.bf16.msra.mxu1 %v358_v33  ;;  %v109_v50 = vld [vmem:[%s975_s1 + $0x298] sm:$0xff]  ;;  %v364_v52 = vpack.c.bf16 %v45_v47, %v43_v46  ;;  %v44_v54 = vld [vmem:[%s975_s1 + $0x90] sm:$0xff]  ;;  %v106_v55 = vld [vmem:[%s975_s1 + $0x280] sm:$0xff] }
   0xe   :  { %423 = vmatpush1.bf16.msra.mxu0 %v422_v38  ;;  %361 = vmatprep.subr.bf16.mxu1 %v360_v39  ;;  %v428_v56 = vpack.c.bf16 %v109_v50, %v107_v49  ;;  %v108_v57 = vld [vmem:[%s975_s1 + $0x290] sm:$0xff]  ;;  %v47_v58 = vld [vmem:[%s975_s1 + $0xa8] sm:$0xff]  ;;  %v49_v59 = vld [vmem:[%s975_s1 + $0xb8] sm:$0xff]  ;;  %v366_v62 = vpack.c.bf16 %v44_v54, %v42_v53 }
   0xf   :  { %425 = vmatprep.subr.bf16.mxu0 %v424_v43  ;;  %v111_v60 = vld [vmem:[%s975_s1 + $0x2a8] sm:$0xff]  ;;  %v113_v61 = vld [vmem:[%s975_s1 + $0x2b8] sm:$0xff]  ;;  %v430_v63 = vpack.c.bf16 %v108_v57, %v106_v55  ;;  %v368_v0 = vpack.c.bf16 %v49_v59, %v47_v58  ;;  %v46_v1 = vld [vmem:[%s975_s1 + $0xa0] sm:$0xff] }
  0x10   :  { %v48_v2 = vld [vmem:[%s975_s1 + $0xb0] sm:$0xff]  ;;  %v110_v3 = vld [vmem:[%s975_s1 + $0x2a0] sm:$0xff]  ;;  %v432_v4 = vpack.c.bf16 %v113_v61, %v111_v60  ;;  %v51_v6 = vld [vmem:[%s975_s1 + $0xc8] sm:$0xff] }
  0x11   :  { %363 = vmatpush1.bf16.msra.mxu1 %v362_v48  ;;  %v112_v5 = vld [vmem:[%s975_s1 + $0x2b0] sm:$0xff]  ;;  %v53_v7 = vld [vmem:[%s975_s1 + $0xd8] sm:$0xff]  ;;  %v115_v8 = vld [vmem:[%s975_s1 + $0x2c8] sm:$0xff]  ;;  %v370_v10 = vpack.c.bf16 %v48_v2, %v46_v1 }
  0x12   :  { %427 = vmatpush1.bf16.msra.mxu0 %v426_v51  ;;  %365 = vmatprep.subr.bf16.mxu1 %v364_v52  ;;  %v117_v9 = vld [vmem:[%s975_s1 + $0x2d8] sm:$0xff]  ;;  %v434_v11 = vpack.c.bf16 %v112_v5, %v110_v3  ;;  %v372_v12 = vpack.c.bf16 %v53_v7, %v51_v6  ;;  %v50_v13 = vld [vmem:[%s975_s1 + $0xc0] sm:$0xff]  ;;  %v52_v14 = vld [vmem:[%s975_s1 + $0xd0] sm:$0xff] }
  0x13   :  { %429 = vmatprep.subr.bf16.mxu0 %v428_v56  ;;  %v114_v15 = vld [vmem:[%s975_s1 + $0x2c0] sm:$0xff]  ;;  %v436_v16 = vpack.c.bf16 %v117_v9, %v115_v8  ;;  %v116_v17 = vld [vmem:[%s975_s1 + $0x2d0] sm:$0xff]  ;;  %v55_v18 = vld [vmem:[%s975_s1 + $0xe8] sm:$0xff]  ;;  %v374_v22 = vpack.c.bf16 %v52_v14, %v50_v13 }
  0x14   :  { %v57_v19 = vld [vmem:[%s975_s1 + $0xf8] sm:$0xff]  ;;  %v119_v20 = vld [vmem:[%s975_s1 + $0x2e8] sm:$0xff]  ;;  %v438_v23 = vpack.c.bf16 %v116_v17, %v114_v15  ;;  %v54_v25 = vld [vmem:[%s975_s1 + $0xe0] sm:$0xff] }
  0x15   :  { %367 = vmatpush1.bf16.msra.mxu1 %v366_v62  ;;  %v121_v21 = vld [vmem:[%s975_s1 + $0x2f8] sm:$0xff]  ;;  %v376_v24 = vpack.c.bf16 %v57_v19, %v55_v18  ;;  %v56_v26 = vld [vmem:[%s975_s1 + $0xf0] sm:$0xff]  ;;  %v118_v27 = vld [vmem:[%s975_s1 + $0x2e0] sm:$0xff] }
  0x16   :  { %431 = vmatpush1.bf16.msra.mxu0 %v430_v63  ;;  %369 = vmatprep.subr.bf16.mxu1 %v368_v0  ;;  %v440_v28 = vpack.c.bf16 %v121_v21, %v119_v20  ;;  %v120_v29 = vld [vmem:[%s975_s1 + $0x2f0] sm:$0xff]  ;;  %v59_v30 = vld [vmem:[%s975_s1 + $0x108] sm:$0xff]  ;;  %v61_v31 = vld [vmem:[%s975_s1 + $0x118] sm:$0xff]  ;;  %v378_v34 = vpack.c.bf16 %v56_v26, %v54_v25 }
  0x17   :  { %433 = vmatprep.subr.bf16.mxu0 %v432_v4  ;;  %v123_v32 = vld [vmem:[%s975_s1 + $0x308] sm:$0xff]  ;;  %v125_v33 = vld [vmem:[%s975_s1 + $0x318] sm:$0xff]  ;;  %v442_v35 = vpack.c.bf16 %v120_v29, %v118_v27  ;;  %v380_v36 = vpack.c.bf16 %v61_v31, %v59_v30  ;;  %v58_v37 = vld [vmem:[%s975_s1 + $0x100] sm:$0xff] }
  0x18   :  { %v60_v38 = vld [vmem:[%s975_s1 + $0x110] sm:$0xff]  ;;  %v122_v39 = vld [vmem:[%s975_s1 + $0x300] sm:$0xff]  ;;  %v444_v40 = vpack.c.bf16 %v125_v33, %v123_v32  ;;  %v63_v42 = vld [vmem:[%s975_s1 + $0x128] sm:$0xff] }
  0x19   :  { %371 = vmatpush1.bf16.msra.mxu1 %v370_v10  ;;  %v124_v41 = vld [vmem:[%s975_s1 + $0x310] sm:$0xff]  ;;  %v65_v43 = vld [vmem:[%s975_s1 + $0x138] sm:$0xff]  ;;  %v127_v44 = vld [vmem:[%s975_s1 + $0x328] sm:$0xff]  ;;  %v382_v46 = vpack.c.bf16 %v60_v38, %v58_v37 }
  0x1a   :  { %435 = vmatpush1.bf16.msra.mxu0 %v434_v11  ;;  %373 = vmatprep.subr.bf16.mxu1 %v372_v12  ;;  %v129_v45 = vld [vmem:[%s975_s1 + $0x338] sm:$0xff]  ;;  %v446_v47 = vpack.c.bf16 %v124_v41, %v122_v39  ;;  %v384_v48 = vpack.c.bf16 %v65_v43, %v63_v42  ;;  %v62_v49 = vld [vmem:[%s975_s1 + $0x120] sm:$0xff]  ;;  %v64_v50 = vld [vmem:[%s975_s1 + $0x130] sm:$0xff] }
  0x1b   :  { %437 = vmatprep.subr.bf16.mxu0 %v436_v16  ;;  %v126_v51 = vld [vmem:[%s975_s1 + $0x320] sm:$0xff]  ;;  %v448_v52 = vpack.c.bf16 %v129_v45, %v127_v44  ;;  %v128_v53 = vld [vmem:[%s975_s1 + $0x330] sm:$0xff]  ;;  %v67_v54 = vld [vmem:[%s975_s1 + $0x148] sm:$0xff]  ;;  %v386_v58 = vpack.c.bf16 %v64_v50, %v62_v49 }
  0x1c   :  { %v69_v55 = vld [vmem:[%s975_s1 + $0x158] sm:$0xff]  ;;  %v131_v56 = vld [vmem:[%s975_s1 + $0x348] sm:$0xff]  ;;  %v450_v59 = vpack.c.bf16 %v128_v53, %v126_v51  ;;  %v66_v61 = vld [vmem:[%s975_s1 + $0x140] sm:$0xff] }
  0x1d   :  { %375 = vmatpush1.bf16.msra.mxu1 %v374_v22  ;;  %v133_v57 = vld [vmem:[%s975_s1 + $0x358] sm:$0xff]  ;;  %v388_v60 = vpack.c.bf16 %v69_v55, %v67_v54  ;;  %v68_v62 = vld [vmem:[%s975_s1 + $0x150] sm:$0xff]  ;;  %v130_v63 = vld [vmem:[%s975_s1 + $0x340] sm:$0xff] }
  0x1e   :  { %439 = vmatpush1.bf16.msra.mxu0 %v438_v23  ;;  %377 = vmatprep.subr.bf16.mxu1 %v376_v24  ;;  %v452_v0 = vpack.c.bf16 %v133_v57, %v131_v56  ;;  %v132_v1 = vld [vmem:[%s975_s1 + $0x350] sm:$0xff]  ;;  %v71_v2 = vld [vmem:[%s975_s1 + $0x168] sm:$0xff]  ;;  %v73_v3 = vld [vmem:[%s975_s1 + $0x178] sm:$0xff]  ;;  %v390_v6 = vpack.c.bf16 %v68_v62, %v66_v61 }
  0x1f   :  { %441 = vmatprep.subr.bf16.mxu0 %v440_v28  ;;  %v135_v4 = vld [vmem:[%s975_s1 + $0x368] sm:$0xff]  ;;  %v137_v5 = vld [vmem:[%s975_s1 + $0x378] sm:$0xff]  ;;  %v70_v7 = vld [vmem:[%s975_s1 + $0x160] sm:$0xff]  ;;  %v454_v8 = vpack.c.bf16 %v132_v1, %v130_v63  ;;  %v392_v9 = vpack.c.bf16 %v73_v3, %v71_v2 }
  0x20   :  { %v72_v10 = vld [vmem:[%s975_s1 + $0x170] sm:$0xff]  ;;  %v134_v11 = vld [vmem:[%s975_s1 + $0x360] sm:$0xff]  ;;  %v456_v13 = vpack.c.bf16 %v137_v5, %v135_v4  ;;  %v75_v14 = vld [vmem:[%s975_s1 + $0x188] sm:$0xff] }
  0x21   :  { %379 = vmatpush1.bf16.msra.mxu1 %v378_v34  ;;  %v136_v12 = vld [vmem:[%s975_s1 + $0x370] sm:$0xff]  ;;  %v77_v15 = vld [vmem:[%s975_s1 + $0x198] sm:$0xff]  ;;  %v19_v16 = vld [vmem:[%s974_s0 + $0x8] sm:$0xff]  ;;  %v394_v20 = vpack.c.bf16 %v72_v10, %v70_v7 }
  0x22   :  { %443 = vmatpush1.bf16.msra.mxu0 %v442_v35  ;;  %381 = vmatprep.subr.bf16.mxu1 %v380_v36  ;;  %v139_v17 = vld [vmem:[%s975_s1 + $0x388] sm:$0xff]  ;;  %v141_v18 = vld [vmem:[%s975_s1 + $0x398] sm:$0xff]  ;;  %v74_v21 = vld [vmem:[%s975_s1 + $0x180] sm:$0xff]  ;;  %v458_v22 = vpack.c.bf16 %v136_v12, %v134_v11  ;;  %v396_v23 = vpack.c.bf16 %v77_v15, %v75_v14 }
  0x23   :  { %445 = vmatprep.subr.bf16.mxu0 %v444_v40  ;;  %230 = vmatprep.mubr.f32.mxu1 %v19_v16  ;;  %v21_v19 = vld [vmem:[%s974_s0 + $0x18] sm:$0xff]  ;;  %v76_v24 = vld [vmem:[%s975_s1 + $0x190] sm:$0xff]  ;;  %v138_v25 = vld [vmem:[%s975_s1 + $0x380] sm:$0xff] }
  0x24   :  { %307 = vmatprep.mubr.f32.mxu0 %v21_v19 }
  0x25   :  { %383 = vmatpush1.bf16.msra.mxu1 %v382_v46 }
  0x26   :  { %447 = vmatpush1.bf16.msra.mxu0 %v446_v47  ;;  %385 = vmatprep.subr.bf16.mxu1 %v384_v48 }
  0x27   :  { %449 = vmatprep.subr.bf16.mxu0 %v448_v52 }
  0x29   :  { %387 = vmatpush1.bf16.msra.mxu1 %v386_v58 }
  0x2a   :  { %451 = vmatpush1.bf16.msra.mxu0 %v450_v59  ;;  %389 = vmatprep.subr.bf16.mxu1 %v388_v60 }
  0x2b   :  { %453 = vmatprep.subr.bf16.mxu0 %v452_v0 }
  0x2d   :  { %391 = vmatpush1.bf16.msra.mxu1 %v390_v6 }
  0x2e   :  { %455 = vmatpush1.bf16.msra.mxu0 %v454_v8  ;;  %393 = vmatprep.subr.bf16.mxu1 %v392_v9 }
  0x2f   :  { %9 = vsyncpa [#allocation3], 0  ;;  %457 = vmatprep.subr.bf16.mxu0 %v456_v13  ;;  %v460_v26 = vpack.c.bf16 %v141_v18, %v139_v17  ;;  %v140_v27 = vld [vmem:[%s975_s1 + $0x390] sm:$0xff]  ;;  %v79_v28 = vld [vmem:[%s975_s1 + $0x1a8] sm:$0xff]  ;;  %v398_v32 = vpack.c.bf16 %v76_v24, %v74_v21  ;;  %v156_v8 = vlaneseq  ;;  %s511_s6 = smov [#allocation2]  }
  0x30   :  { %v81_v29 = vld [vmem:[%s975_s1 + $0x1b8] sm:$0xff]  ;;  %v143_v30 = vld [vmem:[%s975_s1 + $0x3a8] sm:$0xff]  ;;  %v462_v33 = vpack.c.bf16 %v140_v27, %v138_v25  ;;  %v78_v35 = vld [vmem:[%s975_s1 + $0x1a0] sm:$0xff]  ;;  %s337_s7 = sshll.u32 %s511_s6, 4  ;;  %s338_s7 = int_to_ptr.vmem [resolvable:$true] %s337_s7 }
  0x31   :  { %v145_v31 = vld [vmem:[%s975_s1 + $0x3b8] sm:$0xff]  ;;  %395 = vmatpush1.bf16.msra.mxu1 %v394_v20  ;;  %v400_v34 = vpack.c.bf16 %v81_v29, %v79_v28  ;;  %v80_v36 = vld [vmem:[%s975_s1 + $0x1b0] sm:$0xff]  ;;  %v142_v37 = vld [vmem:[%s975_s1 + $0x3a0] sm:$0xff]  ;;  %v157_v9 = vshrl.u32 %v156_v8, 7  ;;  %s487_s10 = scalar_lea.vmem %s338_s7, 512  ;;  %p492_p1 = scmp.lt.s32.totalorder %s338_s7, %s338_s7 }
  0x32   :  { %459 = vmatpush1.bf16.msra.mxu0 %v458_v22  ;;  %397 = vmatprep.subr.bf16.mxu1 %v396_v23  ;;  %v464_v38 = vpack.c.bf16 %v145_v31, %v143_v30  ;;  %v144_v39 = vld [vmem:[%s975_s1 + $0x3b0] sm:$0xff]  ;;  %v83_v40 = vld [vmem:[%s975_s1 + $0x1c8] sm:$0xff]  ;;  %v85_v41 = vld [vmem:[%s975_s1 + $0x1d8] sm:$0xff]  ;;  %v402_v44 = vpack.c.bf16 %v80_v36, %v78_v35  ;;  %p488_p0 = scmp.ne.s32.totalorder %s338_s7, %s487_s10  ;;  %p493_p2 = scmp.lt.s32.totalorder %s487_s10, %s487_s10 }
  0x33   :  { %461 = vmatprep.subr.bf16.mxu0 %v460_v26  ;;  %v147_v42 = vld [vmem:[%s975_s1 + $0x3c8] sm:$0xff]  ;;  %v149_v43 = vld [vmem:[%s975_s1 + $0x3d8] sm:$0xff]  ;;  %v466_v45 = vpack.c.bf16 %v144_v39, %v142_v37  ;;  %v404_v46 = vpack.c.bf16 %v85_v41, %v83_v40  ;;  %v82_v47 = vld [vmem:[%s975_s1 + $0x1c0] sm:$0xff]  ;;  %v158_v10 = vsub.s32 0, %v157_v9  ;;  %v162_v12 = vsub.s32 1, %v157_v9 }
  0x34   :  { %v84_v48 = vld [vmem:[%s975_s1 + $0x1d0] sm:$0xff]  ;;  %v146_v49 = vld [vmem:[%s975_s1 + $0x3c0] sm:$0xff]  ;;  %v468_v50 = vpack.c.bf16 %v149_v43, %v147_v42  ;;  %v87_v52 = vld [vmem:[%s975_s1 + $0x1e8] sm:$0xff]  ;;  %p494_p3 = por %p493_p2, %p492_p1 }
  0x35   :  { %399 = vmatpush1.bf16.msra.mxu1 %v398_v32  ;;  %v148_v51 = vld [vmem:[%s975_s1 + $0x3d0] sm:$0xff]  ;;  %v89_v53 = vld [vmem:[%s975_s1 + $0x1f8] sm:$0xff]  ;;  %v151_v54 = vld [vmem:[%s975_s1 + $0x3e8] sm:$0xff]  ;;  %v406_v56 = vpack.c.bf16 %v84_v48, %v82_v47 }
  0x36   :  { %463 = vmatpush1.bf16.msra.mxu0 %v462_v33  ;;  %401 = vmatprep.subr.bf16.mxu1 %v400_v34  ;;  %v153_v55 = vld [vmem:[%s975_s1 + $0x3f8] sm:$0xff]  ;;  %v470_v57 = vpack.c.bf16 %v148_v51, %v146_v49  ;;  %v408_v58 = vpack.c.bf16 %v89_v53, %v87_v52  ;;  %v86_v59 = vld [vmem:[%s975_s1 + $0x1e0] sm:$0xff]  ;;  %v88_v60 = vld [vmem:[%s975_s1 + $0x1f0] sm:$0xff]  ;;  %p495_p4 = pnand %p494_p3, %p488_p0 }
  0x37   :  { %465 = vmatprep.subr.bf16.mxu0 %v464_v38  ;;  %v472_v61 = vpack.c.bf16 %v153_v55, %v151_v54  ;;  %v150_v62 = vld [vmem:[%s975_s1 + $0x3e0] sm:$0xff]  ;;  %v152_v63 = vld [vmem:[%s975_s1 + $0x3f0] sm:$0xff]  ;;  %v410_v0 = vpack.c.bf16 %v88_v60, %v86_v59  ;;  %v23_v4 = vld [vmem:[%s974_s0 + $0x28] sm:$0xff] }
  0x38   :  { %v474_v1 = vpack.c.bf16 %v152_v63, %v150_v62  ;;  %v18_v2 = vld [vmem:[%s974_s0] sm:$0xff]  ;;  %v20_v3 = vld [vmem:[%s974_s0 + $0x10] sm:$0xff]  ;;  %v25_v5 = vld [vmem:[%s974_s0 + $0x38] sm:$0xff] }
  0x39   :  { %403 = vmatpush1.bf16.msra.mxu1 %v402_v44  ;;  %v22_v6 = vld [vmem:[%s974_s0 + $0x20] sm:$0xff]  ;;  %v24_v7 = vld [vmem:[%s974_s0 + $0x30] sm:$0xff]  ;;  %v321_v23 = vld [vmem:[%s977_s3 + $0x8] sm:$0xff] }
  0x3a   :  { %467 = vmatpush1.bf16.msra.mxu0 %v466_v45  ;;  %405 = vmatprep.subr.bf16.mxu1 %v404_v46  ;;  %v154_v11 = vld [vmem:[%s976_s2] sm:$0x3]  ;;  %v322_v32 = vld [vmem:[%s977_s3 + $0x10] sm:$0xff]  ;;  %v323_v35 = vld [vmem:[%s977_s3 + $0x18] sm:$0xff] }
  0x3b   :  { %469 = vmatprep.subr.bf16.mxu0 %v468_v50  ;;  %v159_v13 = vrot.slane %v154_v11, %v158_v10  ;;  %v163_v14 = vrot.slane %v154_v11, %v162_v12  ;;  %v320_v20 = vld [vmem:[%s977_s3] sm:$0xff] }
  0x3d   :  { %407 = vmatpush1.bf16.msra.mxu1 %v406_v56 }
  0x3e   :  { %471 = vmatpush1.bf16.msra.mxu0 %v470_v57  ;;  %409 = vmatprep.subr.bf16.mxu1 %v408_v58 }
  0x3f   :  { %473 = vmatprep.subr.bf16.mxu0 %v472_v61 }
  0x41   :  { %411 = vmatpush1.bf16.msra.mxu1 %v410_v0 }
  0x42   :  { %475 = vmatpush1.bf16.msra.mxu0 %v474_v1 }
  0x44   :  { %231 = vmatmul.mubr.f32.vlgmr.msra.gmra.mrb[0].mxu1 %v18_v2 }
  0x45   :  { %308 = vmatmul.mubr.f32.vlgmr.msra.gmra.mrb[0].mxu0 %v20_v3  ;;  %236 = vmatprep.mubr.f32.mxu1 %v23_v4 }
  0x46   :  { %313 = vmatprep.mubr.f32.mxu0 %v25_v5 }
  0x48   :  { %237 = vmatmul.mubr.f32.gmra.mrb[2].mxu1 %v22_v6 }
  0x49   :  { %314 = vmatmul.mubr.f32.gmra.mrb[2].mxu0 %v24_v7 }
 0x117   :  { %v232_v15 = vpop.f32.mrb[0].mxu1 }
 0x118   :  { %v233_v16 = vadd.f32 %v232_v15, %v159_v13  ;;  %v234_v17 = vpop.f32.mrb[1].mxu1  ;;  %v309_v18 = vpop.f32.mrb[0].mxu0 }
 0x119   :  { %v235_v19 = vadd.f32 %v234_v17, %v163_v14  ;;  %v311_v21 = vpop.f32.mrb[1].mxu0 }
 0x11a   :  { %v310_v22 = vadd.f32 %v309_v18, %v233_v16 }
 0x11b   :  { %v312_v24 = vadd.f32 %v311_v21, %v235_v19  ;;  %v238_v25 = vpop.f32.mrb[2].mxu1 }
 0x11c   :  { %v324_v26 = vadd.f32 %v320_v20, %v310_v22  ;;  %v239_v27 = vadd.f32 %v238_v25, %v159_v13  ;;  %v240_v28 = vpop.f32.mrb[3].mxu1  ;;  %v315_v29 = vpop.f32.mrb[2].mxu0 }
 0x11d   :  { %v325_v30 = vadd.f32 %v321_v23, %v312_v24  ;;  %v241_v31 = vadd.f32 %v240_v28, %v163_v14  ;;  %v317_v33 = vpop.f32.mrb[3].mxu0 }
 0x11e   :  { %328 = vst [vmem:[#allocation2] sm:$0xff] %v324_v26  ;;  %v316_v34 = vadd.f32 %v315_v29, %v239_v27 }
 0x11f   :  { %329 = vst [vmem:[#allocation2 + $0x8] sm:$0xff] %v325_v30  ;;  %v318_v36 = vadd.f32 %v317_v33, %v241_v31 }
 0x120   :  { %v326_v37 = vadd.f32 %v322_v32, %v316_v34 }
 0x121   :  { %v327_v38 = vadd.f32 %v323_v35, %v318_v36 }
 0x122   :  { %330 = vst [vmem:[#allocation2 + $0x10] sm:$0xff] %v326_v37 }
 0x123   :  { %331 = vst [vmem:[#allocation2 + $0x18] sm:$0xff] %v327_v38 }
 0x124   :  { %498 = shalt.err (!%p495_p4)
}
 0x125   :  { %s499_s13 = scalar_lea.hbm %s978_s4, 512 }
 0x126   :  { %p500_p5 = scmp.ne.s32.totalorder %s978_s4, %s499_s13  ;;  %p503_p6 = scmp.lt.u32.totalorder %s499_s13, %s978_s4 }
 0x128   :  { %p505_p7 = pnand %p503_p6, %p500_p5 }
 0x12a   :  { %508 = shalt.err (!%p505_p7)
}
 0x12b   :  { %s512_s17 = smov 256   ;;  %s513_s18 = smov 16  }
 0x12c   :  { %343 = dma.vmem_to_hbm [thread:$0]  %s338_s7, 512, %s978_s4, [#allocation3], %s512_s17, %s512_s17, %s513_s18  }
 0x12d   :  { %509 = dma.done.wait [#allocation3], 512  }
 0x12e   :  { %510 = vsyncadd [#allocation3], 4294966784 }
 0x12f   :  { %347 = vsyncpa [#allocation3], 1 }

</bundles_post_ra>
